<compile_context>
chip_gen: v6e
topology: v6e:2x2x1
jax: 0.10.0
libtpu: 0.0.40
codegen_flags: <defaults>
</compile_context>

<pallas_src>
import jax
import jax.numpy as jnp
from jax.experimental import pallas as pl
from jax.experimental.pallas import tpu as pltpu

# ----------------------------- config ---------------------------------------
HIDDEN = 32          # transformer width (both towers, synthetic)
NUM_HEADS = 2
HEAD_DIM = HIDDEN // NUM_HEADS
MLP_DIM = 64
NUM_LAYERS = 2
PROJ_DIM = 32        # enc_dim of the returned features
OUT_PAD = 128        # lane-dense kernel output width (sliced back to PROJ_DIM)
PATCH = 8
IMG_SIZE = 16
IMG_CHANNELS = 3
VOCAB = 64
MAX_TEXT_LEN = 8
LN_EPS = 1e-5
NEG_INF = -1e9

LAYER_KEYS = ("ln1_g", "ln1_b", "qkv_w", "qkv_b", "o_w", "o_b",
              "ln2_g", "ln2_b", "fc1_w", "fc1_b", "fc2_w", "fc2_b")


# ----------------------------- in-kernel helpers ------------------------------
def _layernorm(x, g, b):
    # x: (M, D) f32; g, b: (1, D) f32
    mu = jnp.mean(x, axis=-1, keepdims=True)
    var = jnp.mean(jnp.square(x - mu), axis=-1, keepdims=True)
    return (x - mu) * jax.lax.rsqrt(var + LN_EPS) * g + b


def _quick_gelu(x):
    return x * jax.nn.sigmoid(1.702 * x)   # CLIP's quick_gelu (EUP sigmoid)


def _encoder_stack(x, bias, bb, t, lw):
    """x: (bb*t, D) f32; bias: (bb, t, t) additive f32 or None; lw: dict of
    stacked per-layer weight refs (layer dim indexed statically)."""
    # TODO(synk): at real CLIP depth (12-24 layers) switch this static unroll
    # to lax.fori_loop over a layer grid axis with streamed weight BlockSpecs
    # (the all-resident-weights design does not fit v7x 64 MiB VMEM at CLIP-B).
    for l in range(NUM_LAYERS):
        # --- attention block (fused QKV, batch-fused per-head einsums) -------
        h = _layernorm(x, lw["ln1_g"][l], lw["ln1_b"][l])
        qkv = jnp.dot(h.astype(jnp.bfloat16), lw["qkv_w"][l],
                      preferred_element_type=jnp.float32) + lw["qkv_b"][l]
        qkv = qkv.astype(jnp.bfloat16)              # single cast feeds q, k, v
        ctx_heads = []
        for hd in range(NUM_HEADS):                 # H=2: tiny static loop
            lo = hd * HEAD_DIM
            q = qkv[:, lo:lo + HEAD_DIM].reshape(bb, t, HEAD_DIM)
            k = qkv[:, HIDDEN + lo:HIDDEN + lo + HEAD_DIM].reshape(bb, t, HEAD_DIM)
            v = qkv[:, 2 * HIDDEN + lo:2 * HIDDEN + lo + HEAD_DIM].reshape(bb, t, HEAD_DIM)
            # attention scale is folded into q_w/q_b host-side.
            s = jnp.einsum('bqd,bkd->bqk', q, k,
                           preferred_element_type=jnp.float32)
            if bias is not None:
                s = s + bias
            s = s - jnp.max(s, axis=-1, keepdims=True)
            p = jnp.exp(s)
            p = p * pl.reciprocal(jnp.sum(p, axis=-1, keepdims=True), approx=True)
            ctx_heads.append(jnp.einsum('bqk,bkd->bqd', p.astype(jnp.bfloat16), v,
                                        preferred_element_type=jnp.float32))
        ctx = jnp.concatenate(ctx_heads, axis=-1).reshape(bb * t, HIDDEN)
        attn = jnp.dot(ctx.astype(jnp.bfloat16), lw["o_w"][l],
                       preferred_element_type=jnp.float32) + lw["o_b"][l]
        x = x + attn

        # --- MLP block --------------------------------------------------------
        h = _layernorm(x, lw["ln2_g"][l], lw["ln2_b"][l])
        h = jnp.dot(h.astype(jnp.bfloat16), lw["fc1_w"][l],
                    preferred_element_type=jnp.float32) + lw["fc1_b"][l]
        h = _quick_gelu(h)
        h = jnp.dot(h.astype(jnp.bfloat16), lw["fc2_w"][l],
                    preferred_element_type=jnp.float32) + lw["fc2_b"][l]
        x = x + h
    return x


# ----------------------------- fused tower kernels ----------------------------
def _vision_kernel(patches_ref, patch_w_ref, pos_cls_ref, pre_g_ref, pre_b_ref,
                   *rest):
    lw = dict(zip(LAYER_KEYS, rest[:len(LAYER_KEYS)]))
    post_g_ref, post_b_ref, proj_w_ref, out_ref = rest[len(LAYER_KEYS):]

    bb, t, pd = patches_ref.shape
    # patch-embedding conv (kernel=stride=PATCH, no bias) as one (bb*t, PD)
    # matmul; row 0 of each sample is a zero CLS slot and pos_cls row 0 has
    # the class embedding folded in.
    patches = patches_ref[...].reshape(bb * t, pd)                 # bf16
    x = jnp.dot(patches, patch_w_ref[...], preferred_element_type=jnp.float32)
    x = (x.reshape(bb, t, HIDDEN) + pos_cls_ref[...][None]).reshape(bb * t, HIDDEN)
    x = _layernorm(x, pre_g_ref[...], pre_b_ref[...])

    x = _encoder_stack(x, None, bb, t, lw)                         # no mask (vision)

    # pool the CLS token of every sample (static rows 0, t, 2t, ...)
    cls = jnp.concatenate([x[b * t:b * t + 1, :] for b in range(bb)], axis=0)
    pooled = _layernorm(cls, post_g_ref[...], post_b_ref[...])
    out_ref[...] = jnp.dot(pooled.astype(jnp.bfloat16), proj_w_ref[...],
                           preferred_element_type=jnp.float32)     # (bb, 128) lane-dense


def _text_kernel(eos_ref, x_ref, pad_ref, *rest):
    lw = dict(zip(LAYER_KEYS, rest[:len(LAYER_KEYS)]))
    fin_g_ref, fin_b_ref, proj_w_ref, out_ref, x_scr = rest[len(LAYER_KEYS):]

    bb, t, d = x_ref.shape
    x = x_ref[...].astype(jnp.float32).reshape(bb * t, d)

    # causal + padding additive bias, built once per call (single grid step).
    row = jax.lax.broadcasted_iota(jnp.int32, (t, t), 0)
    col = jax.lax.broadcasted_iota(jnp.int32, (t, t), 1)
    causal = jnp.where(col > row, jnp.float32(NEG_INF), jnp.float32(0.0))
    bias = causal[None] + pad_ref[...]                             # (bb, t, t)

    x = _encoder_stack(x, bias, bb, t, lw)

    # CLIP pools at the EOS position (EOS = max token id, as in CLIP's BPE).
    # eos indices were scalar-prefetched into SMEM; select rows with pl.ds.
    x_scr[...] = x
    base = pl.program_id(0) * bb
    rows = [x_scr[pl.ds(b * t + eos_ref[base + b], 1), :] for b in range(bb)]
    pooled = jnp.concatenate(rows, axis=0)                         # (bb, D)
    pooled = _layernorm(pooled, fin_g_ref[...], fin_b_ref[...])
    out_ref[...] = jnp.dot(pooled.astype(jnp.bfloat16), proj_w_ref[...],
                           preferred_element_type=jnp.float32)     # (bb, 128) lane-dense


# ----------------------------- pallas_call wrappers ---------------------------
def _resident_spec(arr):
    """Whole-array block, constant index map (stays resident across the grid)."""
    rank = arr.ndim

    def idx(*_args):          # accepts grid indices and any prefetch refs
        return (0,) * rank

    return pl.BlockSpec(arr.shape, idx)


def _cost_estimate(b, t, extra_flops, arrays, out_elems):
    m = b * t
    per_layer = (2 * m * HIDDEN * 3 * HIDDEN                       # fused QKV
                 + 4 * b * NUM_HEADS * t * t * HEAD_DIM            # scores + ctx
                 + 2 * m * HIDDEN * HIDDEN                         # o_proj
                 + 4 * m * HIDDEN * MLP_DIM)                       # fc1 + fc2
    flops = NUM_LAYERS * per_layer + 2 * b * HIDDEN * OUT_PAD + extra_flops
    trans = NUM_LAYERS * (b * NUM_HEADS * t * t + m * MLP_DIM)     # exp + sigmoid
    bytes_accessed = out_elems * 4 + sum(int(a.size) * a.dtype.itemsize
                                         for a in arrays)
    return pl.CostEstimate(flops=int(flops), transcendentals=int(trans),
                           bytes_accessed=int(bytes_accessed))


def get_image_features(pixel_values, vp):
    # pixel_values: (B, C, H, W)  -- NCHW, matching PyTorch conv input layout
    B, C, H, W = pixel_values.shape
    Hn, Wn = H // PATCH, W // PATCH
    Np = Hn * Wn
    T = Np + 1
    PD = C * PATCH * PATCH

    patches = (pixel_values.reshape(B, C, Hn, PATCH, Wn, PATCH)
               .transpose(0, 2, 4, 1, 3, 5)
               .reshape(B, Np, PD))
    patches = jnp.concatenate(                                      # zero CLS slot
        [jnp.zeros((B, 1, PD), patches.dtype), patches], axis=1).astype(jnp.bfloat16)
    pos_cls = vp["pos_emb"].at[0].add(vp["class_emb"])              # (T, D) f32

    layer_inputs = [vp["layers"][k] for k in LAYER_KEYS]
    resident = (vp["patch_w"], pos_cls, vp["pre_ln_g"], vp["pre_ln_b"],
                *layer_inputs, vp["post_ln_g"], vp["post_ln_b"], vp["proj_w_pad"])

    bb = B                            # whole batch in one step (B//2 x2 for v7x)
    args = (patches, *resident)
    out = pl.pallas_call(
        _vision_kernel,
        out_shape=jax.ShapeDtypeStruct((B, OUT_PAD), jnp.float32),
        grid=(B // bb,),
        in_specs=[pl.BlockSpec((bb, T, PD), lambda i: (i, 0, 0))]
                 + [_resident_spec(a) for a in resident],
        out_specs=pl.BlockSpec((bb, OUT_PAD), lambda i: (i, 0)),
        compiler_params=pltpu.CompilerParams(dimension_semantics=("arbitrary",)),
        cost_estimate=_cost_estimate(B, T, 2 * B * T * PD * HIDDEN,
                                     args, B * OUT_PAD),
    )(*args)
    return out[:, :PROJ_DIM]


def get_text_features(input_ids, attention_mask, tp):
    B, T = input_ids.shape
    # token-embedding gather + positional add (XLA host-side glue); ship bf16
    x = (jnp.take(tp["tok_emb"], input_ids, axis=0)
         + tp["pos_emb"][None, :T]).astype(jnp.bfloat16)
    pad_bias = ((1.0 - attention_mask.astype(jnp.float32))
                .reshape(B, 1, T) * NEG_INF)
    # EOS position = argmax of token ids (EOS is the highest id, as in CLIP BPE)
    eos_idx = jnp.argmax(input_ids, axis=-1).astype(jnp.int32)

    layer_inputs = [tp["layers"][k] for k in LAYER_KEYS]
    resident = (*layer_inputs, tp["final_ln_g"], tp["final_ln_b"], tp["proj_w_pad"])

    bb = B                            # whole batch in one step (B//2 x2 for v7x)
    args = (eos_idx, x, pad_bias, *resident)
    out = pl.pallas_call(
        _text_kernel,
        out_shape=jax.ShapeDtypeStruct((B, OUT_PAD), jnp.float32),
        grid_spec=pltpu.PrefetchScalarGridSpec(
            num_scalar_prefetch=1,
            grid=(B // bb,),
            in_specs=[pl.BlockSpec((bb, T, HIDDEN), lambda i, eos: (i, 0, 0)),
                      pl.BlockSpec((bb, 1, T), lambda i, eos: (i, 0, 0))]
                     + [_resident_spec(a) for a in resident],
            out_specs=pl.BlockSpec((bb, OUT_PAD), lambda i, eos: (i, 0)),
            scratch_shapes=[pltpu.VMEM((bb * T, HIDDEN), jnp.float32)]),
        compiler_params=pltpu.CompilerParams(dimension_semantics=("arbitrary",)),
        cost_estimate=_cost_estimate(B, T, 0, args, B * OUT_PAD),
    )(*args)
    return out[:, :PROJ_DIM]


def clip_feature_extractor(pixel_values, input_ids, attention_mask, params):
    """Mirrors CLIPFeatureExtractor.forward(images=..., texts=...) -> tuple."""
    img_feats = get_image_features(pixel_values, params["vision"])
    txt_feats = get_text_features(input_ids, attention_mask, params["text"])
    return img_feats, txt_feats


# ----------------------------- parameter init --------------------------------
def _layer_params(key):
    ks = jax.random.split(key, 6)
    w = lambda k, shp: jax.random.normal(k, shp, jnp.float32) * 0.02
    ones = lambda n: jnp.ones((1, n), jnp.float32)
    zeros = lambda n: jnp.zeros((1, n), jnp.float32)

    scale = HEAD_DIM ** -0.5
    q_w = w(ks[0], (HIDDEN, HIDDEN)) * scale       # attention scale folded into q
    k_w = w(ks[1], (HIDDEN, HIDDEN))
    v_w = w(ks[2], (HIDDEN, HIDDEN))
    qkv_w = jnp.concatenate([q_w, k_w, v_w], axis=1)          # (D, 3D)
    qkv_b = zeros(3 * HIDDEN)                      # q-part would be scaled too

    return {
        "ln1_g": ones(HIDDEN), "ln1_b": zeros(HIDDEN),
        "qkv_w": qkv_w.astype(jnp.bfloat16), "qkv_b": qkv_b,
        "o_w": w(ks[3], (HIDDEN, HIDDEN)).astype(jnp.bfloat16), "o_b": zeros(HIDDEN),
        "ln2_g": ones(HIDDEN), "ln2_b": zeros(HIDDEN),
        "fc1_w": w(ks[4], (HIDDEN, MLP_DIM)).astype(jnp.bfloat16), "fc1_b": zeros(MLP_DIM),
        "fc2_w": w(ks[5], (MLP_DIM, HIDDEN)).astype(jnp.bfloat16), "fc2_b": zeros(HIDDEN),
    }


def _stack_layers(keys):
    per = [_layer_params(k) for k in keys]
    return {k: jnp.stack([p[k] for p in per], axis=0) for k in LAYER_KEYS}


def _pad_proj(w):
    return jnp.pad(w, ((0, 0), (0, OUT_PAD - PROJ_DIM))).astype(jnp.bfloat16)


def init_params(key):
    kv, kt = jax.random.split(key)
    w = lambda k, shp: jax.random.normal(k, shp, jnp.float32) * 0.02

    kvs = jax.random.split(kv, 4 + NUM_LAYERS)
    n_pos_img = (IMG_SIZE // PATCH) ** 2 + 1
    vision = {
        "patch_w": w(kvs[0], (IMG_CHANNELS * PATCH * PATCH, HIDDEN)).astype(jnp.bfloat16),
        "class_emb": w(kvs[1], (HIDDEN,)),
        "pos_emb": w(kvs[2], (n_pos_img, HIDDEN)),
        "pre_ln_g": jnp.ones((1, HIDDEN), jnp.float32),
        "pre_ln_b": jnp.zeros((1, HIDDEN), jnp.float32),
        "post_ln_g": jnp.ones((1, HIDDEN), jnp.float32),
        "post_ln_b": jnp.zeros((1, HIDDEN), jnp.float32),
        "proj_w_pad": _pad_proj(w(kvs[3], (HIDDEN, PROJ_DIM))),
        "layers": _stack_layers(list(kvs[4:4 + NUM_LAYERS])),
    }

    kts = jax.random.split(kt, 3 + NUM_LAYERS)
    text = {
        "tok_emb": w(kts[0], (VOCAB, HIDDEN)),
        "pos_emb": w(kts[1], (MAX_TEXT_LEN, HIDDEN)),
        "final_ln_g": jnp.ones((1, HIDDEN), jnp.float32),
        "final_ln_b": jnp.zeros((1, HIDDEN), jnp.float32),
        "proj_w_pad": _pad_proj(w(kts[2], (HIDDEN, PROJ_DIM))),
        "layers": _stack_layers(list(kts[3:3 + NUM_LAYERS])),
    }
    return {"vision": vision, "text": text}


# ----------------------------- main ------------------------------------------
if __name__ == "__main__":
    key = jax.random.PRNGKey(0)
    k_param, k_img, k_ids = jax.random.split(key, 3)

    params = init_params(k_param)

    # "Preprocessed" inputs (the CLIPProcessor itself is not a TPU kernel).
    B_IMG, B_TXT = 2, 2
    pixel_values = jax.random.normal(
        k_img, (B_IMG, IMG_CHANNELS, IMG_SIZE, IMG_SIZE), jnp.float32)

    # token ids: random tokens, EOS = VOCAB-1 (highest id), then padding.
    input_ids = jax.random.randint(k_ids, (B_TXT, MAX_TEXT_LEN), 1, VOCAB - 1)
    eos_positions = jnp.array([5, 7])
    pos = jnp.arange(MAX_TEXT_LEN)[None, :]
    input_ids = jnp.where(pos == eos_positions[:, None], VOCAB - 1, input_ids)
    input_ids = jnp.where(pos > eos_positions[:, None], 0, input_ids)
    attention_mask = (pos <= eos_positions[:, None]).astype(jnp.int32)

    fwd = jax.jit(lambda pv, ids, am: clip_feature_extractor(pv, ids, am, params))
    image_feats, text_feats = fwd(pixel_values, input_ids, attention_mask)
    jax.block_until_ready((image_feats, text_feats))

    assert image_feats.shape == (B_IMG, PROJ_DIM)
    assert text_feats.shape == (B_TXT, PROJ_DIM)
    assert jnp.all(jnp.isfinite(image_feats)) and jnp.all(jnp.isfinite(text_feats))
    # TODO(synk): CLIPProcessor (PIL resize/normalize + BPE tokenization) is host-side
    # preprocessing with no Pallas equivalent; kernel consumes preprocessed tensors.
    print("KERNEL_OK")
</pallas_src>

<mosaic_0001>
module attributes {stable_mosaic.version = 11 : i64} {
  func.func @_vision_kernel(%arg0: i32, %arg1: memref<2x5x192xbf16, #tpu.memory_space<vmem>>, %arg2: memref<192x32xbf16, #tpu.memory_space<vmem>>, %arg3: memref<5x32xf32, #tpu.memory_space<vmem>>, %arg4: memref<1x32xf32, #tpu.memory_space<vmem>>, %arg5: memref<1x32xf32, #tpu.memory_space<vmem>>, %arg6: memref<2x1x32xf32, #tpu.memory_space<vmem>>, %arg7: memref<2x1x32xf32, #tpu.memory_space<vmem>>, %arg8: memref<2x32x96xbf16, #tpu.memory_space<vmem>>, %arg9: memref<2x1x96xf32, #tpu.memory_space<vmem>>, %arg10: memref<2x32x32xbf16, #tpu.memory_space<vmem>>, %arg11: memref<2x1x32xf32, #tpu.memory_space<vmem>>, %arg12: memref<2x1x32xf32, #tpu.memory_space<vmem>>, %arg13: memref<2x1x32xf32, #tpu.memory_space<vmem>>, %arg14: memref<2x32x64xbf16, #tpu.memory_space<vmem>>, %arg15: memref<2x1x64xf32, #tpu.memory_space<vmem>>, %arg16: memref<2x64x32xbf16, #tpu.memory_space<vmem>>, %arg17: memref<2x1x32xf32, #tpu.memory_space<vmem>>, %arg18: memref<1x32xf32, #tpu.memory_space<vmem>>, %arg19: memref<1x32xf32, #tpu.memory_space<vmem>>, %arg20: memref<32x128xbf16, #tpu.memory_space<vmem>>, %arg21: memref<2x128xf32, #tpu.memory_space<vmem>>) attributes {dimension_semantics = [#tpu.dimension_semantics<arbitrary>], iteration_bounds = array<i64: 1>, scalar_prefetch = 0 : i64, scratch_operands = 0 : i64, tpu.core_type = #tpu.core_type<tc>, window_params = [{transform_indices = @transform_0, window_bounds = array<i64: 2, 5, 192>}, {pipeline_mode = #tpu.pipeline_mode<synchronous>, transform_indices = @transform_1, window_bounds = array<i64: 192, 32>}, {pipeline_mode = #tpu.pipeline_mode<synchronous>, transform_indices = @transform_2, window_bounds = array<i64: 5, 32>}, {pipeline_mode = #tpu.pipeline_mode<synchronous>, transform_indices = @transform_3, window_bounds = array<i64: 1, 32>}, {pipeline_mode = #tpu.pipeline_mode<synchronous>, transform_indices = @transform_4, window_bounds = array<i64: 1, 32>}, {pipeline_mode = #tpu.pipeline_mode<synchronous>, transform_indices = @transform_5, window_bounds = array<i64: 2, 1, 32>}, {pipeline_mode = #tpu.pipeline_mode<synchronous>, transform_indices = @transform_6, window_bounds = array<i64: 2, 1, 32>}, {pipeline_mode = #tpu.pipeline_mode<synchronous>, transform_indices = @transform_7, window_bounds = array<i64: 2, 32, 96>}, {pipeline_mode = #tpu.pipeline_mode<synchronous>, transform_indices = @transform_8, window_bounds = array<i64: 2, 1, 96>}, {pipeline_mode = #tpu.pipeline_mode<synchronous>, transform_indices = @transform_9, window_bounds = array<i64: 2, 32, 32>}, {pipeline_mode = #tpu.pipeline_mode<synchronous>, transform_indices = @transform_10, window_bounds = array<i64: 2, 1, 32>}, {pipeline_mode = #tpu.pipeline_mode<synchronous>, transform_indices = @transform_11, window_bounds = array<i64: 2, 1, 32>}, {pipeline_mode = #tpu.pipeline_mode<synchronous>, transform_indices = @transform_12, window_bounds = array<i64: 2, 1, 32>}, {pipeline_mode = #tpu.pipeline_mode<synchronous>, transform_indices = @transform_13, window_bounds = array<i64: 2, 32, 64>}, {pipeline_mode = #tpu.pipeline_mode<synchronous>, transform_indices = @transform_14, window_bounds = array<i64: 2, 1, 64>}, {pipeline_mode = #tpu.pipeline_mode<synchronous>, transform_indices = @transform_15, window_bounds = array<i64: 2, 64, 32>}, {pipeline_mode = #tpu.pipeline_mode<synchronous>, transform_indices = @transform_16, window_bounds = array<i64: 2, 1, 32>}, {pipeline_mode = #tpu.pipeline_mode<synchronous>, transform_indices = @transform_17, window_bounds = array<i64: 1, 32>}, {pipeline_mode = #tpu.pipeline_mode<synchronous>, transform_indices = @transform_18, window_bounds = array<i64: 1, 32>}, {pipeline_mode = #tpu.pipeline_mode<synchronous>, transform_indices = @transform_19, window_bounds = array<i64: 32, 128>}, {transform_indices = @transform_20, window_bounds = array<i64: 2, 128>}]} {
    %c0 = arith.constant 0 : index
    %c0_0 = arith.constant 0 : index
    %c0_1 = arith.constant 0 : index
    %0 = vector.load %arg1[%c0, %c0_0, %c0_1] : memref<2x5x192xbf16, #tpu.memory_space<vmem>>, vector<2x5x192xbf16>
    %1 = vector.shape_cast %0 : vector<2x5x192xbf16> to vector<10x192xbf16>
    %c0_2 = arith.constant 0 : index
    %c0_3 = arith.constant 0 : index
    %2 = vector.load %arg2[%c0_2, %c0_3] : memref<192x32xbf16, #tpu.memory_space<vmem>>, vector<192x32xbf16>
    %cst = arith.constant dense<0.000000e+00> : vector<10x32xf32>
    %3 = tpu.matmul %1, %2, %cst {dimension_numbers = #tpu.dot_dimension_numbers<[1], [0], [0], [1], [0, 0, 1, 1], [], []>} : vector<10x192xbf16>, vector<192x32xbf16>, vector<10x32xf32> -> vector<10x32xf32>
    %4 = vector.shape_cast %3 : vector<10x32xf32> to vector<2x5x32xf32>
    %c0_4 = arith.constant 0 : index
    %c0_5 = arith.constant 0 : index
    %5 = vector.load %arg3[%c0_4, %c0_5] : memref<5x32xf32, #tpu.memory_space<vmem>>, vector<5x32xf32>
    %6 = vector.shape_cast %5 : vector<5x32xf32> to vector<1x5x32xf32>
    %7 = vector.broadcast %6 : vector<1x5x32xf32> to vector<2x5x32xf32>
    %8 = arith.addf %4, %7 : vector<2x5x32xf32>
    %9 = vector.shape_cast %8 : vector<2x5x32xf32> to vector<10x32xf32>
    %c0_6 = arith.constant 0 : index
    %c0_7 = arith.constant 0 : index
    %10 = vector.load %arg4[%c0_6, %c0_7] : memref<1x32xf32, #tpu.memory_space<vmem>>, vector<1x32xf32>
    %c0_8 = arith.constant 0 : index
    %c0_9 = arith.constant 0 : index
    %11 = vector.load %arg5[%c0_8, %c0_9] : memref<1x32xf32, #tpu.memory_space<vmem>>, vector<1x32xf32>
    %cst_10 = arith.constant dense<0.000000e+00> : vector<10xf32>
    %12 = vector.multi_reduction <add>, %9, %cst_10 [1] : vector<10x32xf32> to vector<10xf32>
    %13 = vector.shape_cast %12 : vector<10xf32> to vector<10x1xf32>
    %cst_11 = arith.constant 3.200000e+01 : f32
    %14 = vector.broadcast %cst_11 : f32 to vector<10x1xf32>
    %15 = arith.divf %13, %14 : vector<10x1xf32>
    %16 = vector.broadcast %15 : vector<10x1xf32> to vector<10x32xf32>
    %17 = arith.subf %9, %16 : vector<10x32xf32>
    %18 = arith.mulf %17, %17 : vector<10x32xf32>
    %cst_12 = arith.constant dense<0.000000e+00> : vector<10xf32>
    %19 = vector.multi_reduction <add>, %18, %cst_12 [1] : vector<10x32xf32> to vector<10xf32>
    %20 = vector.shape_cast %19 : vector<10xf32> to vector<10x1xf32>
    %cst_13 = arith.constant 3.200000e+01 : f32
    %21 = vector.broadcast %cst_13 : f32 to vector<10x1xf32>
    %22 = arith.divf %20, %21 : vector<10x1xf32>
    %23 = vector.broadcast %15 : vector<10x1xf32> to vector<10x32xf32>
    %24 = arith.subf %9, %23 : vector<10x32xf32>
    %cst_14 = arith.constant 9.99999974E-6 : f32
    %25 = vector.broadcast %cst_14 : f32 to vector<10x1xf32>
    %26 = arith.addf %22, %25 : vector<10x1xf32>
    %27 = math.rsqrt %26 : vector<10x1xf32>
    %28 = vector.broadcast %27 : vector<10x1xf32> to vector<10x32xf32>
    %29 = arith.mulf %24, %28 : vector<10x32xf32>
    %30 = vector.broadcast %10 : vector<1x32xf32> to vector<10x32xf32>
    %31 = arith.mulf %29, %30 : vector<10x32xf32>
    %32 = vector.broadcast %11 : vector<1x32xf32> to vector<10x32xf32>
    %33 = arith.addf %31, %32 : vector<10x32xf32>
    %c0_15 = arith.constant 0 : index
    %c0_16 = arith.constant 0 : index
    %c0_17 = arith.constant 0 : index
    %34 = vector.load %arg6[%c0_15, %c0_16, %c0_17] : memref<2x1x32xf32, #tpu.memory_space<vmem>>, vector<1x1x32xf32>
    %35 = vector.shape_cast %34 : vector<1x1x32xf32> to vector<1x32xf32>
    %c0_18 = arith.constant 0 : index
    %c0_19 = arith.constant 0 : index
    %c0_20 = arith.constant 0 : index
    %36 = vector.load %arg7[%c0_18, %c0_19, %c0_20] : memref<2x1x32xf32, #tpu.memory_space<vmem>>, vector<1x1x32xf32>
    %37 = vector.shape_cast %36 : vector<1x1x32xf32> to vector<1x32xf32>
    %cst_21 = arith.constant dense<0.000000e+00> : vector<10xf32>
    %38 = vector.multi_reduction <add>, %33, %cst_21 [1] : vector<10x32xf32> to vector<10xf32>
    %39 = vector.shape_cast %38 : vector<10xf32> to vector<10x1xf32>
    %cst_22 = arith.constant 3.200000e+01 : f32
    %40 = vector.broadcast %cst_22 : f32 to vector<10x1xf32>
    %41 = arith.divf %39, %40 : vector<10x1xf32>
    %42 = vector.broadcast %41 : vector<10x1xf32> to vector<10x32xf32>
    %43 = arith.subf %33, %42 : vector<10x32xf32>
    %44 = arith.mulf %43, %43 : vector<10x32xf32>
    %cst_23 = arith.constant dense<0.000000e+00> : vector<10xf32>
    %45 = vector.multi_reduction <add>, %44, %cst_23 [1] : vector<10x32xf32> to vector<10xf32>
    %46 = vector.shape_cast %45 : vector<10xf32> to vector<10x1xf32>
    %cst_24 = arith.constant 3.200000e+01 : f32
    %47 = vector.broadcast %cst_24 : f32 to vector<10x1xf32>
    %48 = arith.divf %46, %47 : vector<10x1xf32>
    %49 = vector.broadcast %41 : vector<10x1xf32> to vector<10x32xf32>
    %50 = arith.subf %33, %49 : vector<10x32xf32>
    %cst_25 = arith.constant 9.99999974E-6 : f32
    %51 = vector.broadcast %cst_25 : f32 to vector<10x1xf32>
    %52 = arith.addf %48, %51 : vector<10x1xf32>
    %53 = math.rsqrt %52 : vector<10x1xf32>
    %54 = vector.broadcast %53 : vector<10x1xf32> to vector<10x32xf32>
    %55 = arith.mulf %50, %54 : vector<10x32xf32>
    %56 = vector.broadcast %35 : vector<1x32xf32> to vector<10x32xf32>
    %57 = arith.mulf %55, %56 : vector<10x32xf32>
    %58 = vector.broadcast %37 : vector<1x32xf32> to vector<10x32xf32>
    %59 = arith.addf %57, %58 : vector<10x32xf32>
    %60 = arith.truncf %59 : vector<10x32xf32> to vector<10x32xbf16>
    %c0_26 = arith.constant 0 : index
    %c0_27 = arith.constant 0 : index
    %c0_28 = arith.constant 0 : index
    %61 = vector.load %arg8[%c0_26, %c0_27, %c0_28] : memref<2x32x96xbf16, #tpu.memory_space<vmem>>, vector<1x32x96xbf16>
    %62 = vector.shape_cast %61 : vector<1x32x96xbf16> to vector<32x96xbf16>
    %cst_29 = arith.constant dense<0.000000e+00> : vector<10x96xf32>
    %63 = tpu.matmul %60, %62, %cst_29 {dimension_numbers = #tpu.dot_dimension_numbers<[1], [0], [0], [1], [0, 0, 1, 1], [], []>} : vector<10x32xbf16>, vector<32x96xbf16>, vector<10x96xf32> -> vector<10x96xf32>
    %c0_30 = arith.constant 0 : index
    %c0_31 = arith.constant 0 : index
    %c0_32 = arith.constant 0 : index
    %64 = vector.load %arg9[%c0_30, %c0_31, %c0_32] : memref<2x1x96xf32, #tpu.memory_space<vmem>>, vector<1x1x96xf32>
    %65 = vector.shape_cast %64 : vector<1x1x96xf32> to vector<1x96xf32>
    %66 = vector.broadcast %65 : vector<1x96xf32> to vector<10x96xf32>
    %67 = arith.addf %63, %66 : vector<10x96xf32>
    %68 = arith.truncf %67 : vector<10x96xf32> to vector<10x96xbf16>
    %69 = vector.extract_strided_slice %68 {offsets = [0, 0], sizes = [10, 16], strides = [1, 1]} : vector<10x96xbf16> to vector<10x16xbf16>
    %70 = vector.shape_cast %69 : vector<10x16xbf16> to vector<2x5x16xbf16>
    %71 = vector.extract_strided_slice %68 {offsets = [0, 32], sizes = [10, 16], strides = [1, 1]} : vector<10x96xbf16> to vector<10x16xbf16>
    %72 = vector.shape_cast %71 : vector<10x16xbf16> to vector<2x5x16xbf16>
    %73 = vector.extract_strided_slice %68 {offsets = [0, 64], sizes = [10, 16], strides = [1, 1]} : vector<10x96xbf16> to vector<10x16xbf16>
    %74 = vector.shape_cast %73 : vector<10x16xbf16> to vector<2x5x16xbf16>
    "tpu.trace_start"() <{level = 10 : i32, message = "bqd,bkd->bqk"}> : () -> ()
    %cst_33 = arith.constant dense<0.000000e+00> : vector<2x5x5xf32>
    %75 = tpu.matmul %70, %72, %cst_33 {dimension_numbers = #tpu.dot_dimension_numbers<[2], [2], [1], [1], [0, 0, 0, 1, 1, 1], [0], [0]>} : vector<2x5x16xbf16>, vector<2x5x16xbf16>, vector<2x5x5xf32> -> vector<2x5x5xf32>
    "tpu.trace_stop"() : () -> ()
    %cst_34 = arith.constant dense<0xFF800000> : vector<2x5xf32>
    %76 = vector.multi_reduction <maximumf>, %75, %cst_34 [2] : vector<2x5x5xf32> to vector<2x5xf32>
    %77 = vector.shape_cast %76 : vector<2x5xf32> to vector<2x5x1xf32>
    %78 = vector.broadcast %77 : vector<2x5x1xf32> to vector<2x5x5xf32>
    %79 = arith.subf %75, %78 : vector<2x5x5xf32>
    %80 = math.exp %79 : vector<2x5x5xf32>
    %cst_35 = arith.constant dense<0.000000e+00> : vector<2x5xf32>
    %81 = vector.multi_reduction <add>, %80, %cst_35 [2] : vector<2x5x5xf32> to vector<2x5xf32>
    %82 = vector.shape_cast %81 : vector<2x5xf32> to vector<2x5x1xf32>
    %83 = tpu.reciprocal %82 {approx = true} : vector<2x5x1xf32> -> vector<2x5x1xf32>
    %84 = vector.broadcast %83 : vector<2x5x1xf32> to vector<2x5x5xf32>
    %85 = arith.mulf %80, %84 : vector<2x5x5xf32>
    %86 = arith.truncf %85 : vector<2x5x5xf32> to vector<2x5x5xbf16>
    "tpu.trace_start"() <{level = 10 : i32, message = "bqk,bkd->bqd"}> : () -> ()
    %cst_36 = arith.constant dense<0.000000e+00> : vector<2x5x16xf32>
    %87 = tpu.matmul %86, %74, %cst_36 {dimension_numbers = #tpu.dot_dimension_numbers<[2], [1], [1], [2], [0, 0, 0, 1, 1, 2], [0], [0]>} : vector<2x5x5xbf16>, vector<2x5x16xbf16>, vector<2x5x16xf32> -> vector<2x5x16xf32>
    "tpu.trace_stop"() : () -> ()
    %88 = vector.extract_strided_slice %68 {offsets = [0, 16], sizes = [10, 16], strides = [1, 1]} : vector<10x96xbf16> to vector<10x16xbf16>
    %89 = vector.shape_cast %88 : vector<10x16xbf16> to vector<2x5x16xbf16>
    %90 = vector.extract_strided_slice %68 {offsets = [0, 48], sizes = [10, 16], strides = [1, 1]} : vector<10x96xbf16> to vector<10x16xbf16>
    %91 = vector.shape_cast %90 : vector<10x16xbf16> to vector<2x5x16xbf16>
    %92 = vector.extract_strided_slice %68 {offsets = [0, 80], sizes = [10, 16], strides = [1, 1]} : vector<10x96xbf16> to vector<10x16xbf16>
    %93 = vector.shape_cast %92 : vector<10x16xbf16> to vector<2x5x16xbf16>
    "tpu.trace_start"() <{level = 10 : i32, message = "bqd,bkd->bqk"}> : () -> ()
    %cst_37 = arith.constant dense<0.000000e+00> : vector<2x5x5xf32>
    %94 = tpu.matmul %89, %91, %cst_37 {dimension_numbers = #tpu.dot_dimension_numbers<[2], [2], [1], [1], [0, 0, 0, 1, 1, 1], [0], [0]>} : vector<2x5x16xbf16>, vector<2x5x16xbf16>, vector<2x5x5xf32> -> vector<2x5x5xf32>
    "tpu.trace_stop"() : () -> ()
    %cst_38 = arith.constant dense<0xFF800000> : vector<2x5xf32>
    %95 = vector.multi_reduction <maximumf>, %94, %cst_38 [2] : vector<2x5x5xf32> to vector<2x5xf32>
    %96 = vector.shape_cast %95 : vector<2x5xf32> to vector<2x5x1xf32>
    %97 = vector.broadcast %96 : vector<2x5x1xf32> to vector<2x5x5xf32>
    %98 = arith.subf %94, %97 : vector<2x5x5xf32>
    %99 = math.exp %98 : vector<2x5x5xf32>
    %cst_39 = arith.constant dense<0.000000e+00> : vector<2x5xf32>
    %100 = vector.multi_reduction <add>, %99, %cst_39 [2] : vector<2x5x5xf32> to vector<2x5xf32>
    %101 = vector.shape_cast %100 : vector<2x5xf32> to vector<2x5x1xf32>
    %102 = tpu.reciprocal %101 {approx = true} : vector<2x5x1xf32> -> vector<2x5x1xf32>
    %103 = vector.broadcast %102 : vector<2x5x1xf32> to vector<2x5x5xf32>
    %104 = arith.mulf %99, %103 : vector<2x5x5xf32>
    %105 = arith.truncf %104 : vector<2x5x5xf32> to vector<2x5x5xbf16>
    "tpu.trace_start"() <{level = 10 : i32, message = "bqk,bkd->bqd"}> : () -> ()
    %cst_40 = arith.constant dense<0.000000e+00> : vector<2x5x16xf32>
    %106 = tpu.matmul %105, %93, %cst_40 {dimension_numbers = #tpu.dot_dimension_numbers<[2], [1], [1], [2], [0, 0, 0, 1, 1, 2], [0], [0]>} : vector<2x5x5xbf16>, vector<2x5x16xbf16>, vector<2x5x16xf32> -> vector<2x5x16xf32>
    "tpu.trace_stop"() : () -> ()
    %107 = tpu.concatenate %87, %106 in 2 : vector<2x5x16xf32>, vector<2x5x16xf32> -> vector<2x5x32xf32>
    %108 = vector.shape_cast %107 : vector<2x5x32xf32> to vector<10x32xf32>
    %109 = arith.truncf %108 : vector<10x32xf32> to vector<10x32xbf16>
    %c0_41 = arith.constant 0 : index
    %c0_42 = arith.constant 0 : index
    %c0_43 = arith.constant 0 : index
    %110 = vector.load %arg10[%c0_41, %c0_42, %c0_43] : memref<2x32x32xbf16, #tpu.memory_space<vmem>>, vector<1x32x32xbf16>
    %111 = vector.shape_cast %110 : vector<1x32x32xbf16> to vector<32x32xbf16>
    %cst_44 = arith.constant dense<0.000000e+00> : vector<10x32xf32>
    %112 = tpu.matmul %109, %111, %cst_44 {dimension_numbers = #tpu.dot_dimension_numbers<[1], [0], [0], [1], [0, 0, 1, 1], [], []>} : vector<10x32xbf16>, vector<32x32xbf16>, vector<10x32xf32> -> vector<10x32xf32>
    %c0_45 = arith.constant 0 : index
    %c0_46 = arith.constant 0 : index
    %c0_47 = arith.constant 0 : index
    %113 = vector.load %arg11[%c0_45, %c0_46, %c0_47] : memref<2x1x32xf32, #tpu.memory_space<vmem>>, vector<1x1x32xf32>
    %114 = vector.shape_cast %113 : vector<1x1x32xf32> to vector<1x32xf32>
    %115 = vector.broadcast %114 : vector<1x32xf32> to vector<10x32xf32>
    %116 = arith.addf %112, %115 : vector<10x32xf32>
    %117 = arith.addf %33, %116 : vector<10x32xf32>
    %c0_48 = arith.constant 0 : index
    %c0_49 = arith.constant 0 : index
    %c0_50 = arith.constant 0 : index
    %118 = vector.load %arg12[%c0_48, %c0_49, %c0_50] : memref<2x1x32xf32, #tpu.memory_space<vmem>>, vector<1x1x32xf32>
    %119 = vector.shape_cast %118 : vector<1x1x32xf32> to vector<1x32xf32>
    %c0_51 = arith.constant 0 : index
    %c0_52 = arith.constant 0 : index
    %c0_53 = arith.constant 0 : index
    %120 = vector.load %arg13[%c0_51, %c0_52, %c0_53] : memref<2x1x32xf32, #tpu.memory_space<vmem>>, vector<1x1x32xf32>
    %121 = vector.shape_cast %120 : vector<1x1x32xf32> to vector<1x32xf32>
    %cst_54 = arith.constant dense<0.000000e+00> : vector<10xf32>
    %122 = vector.multi_reduction <add>, %117, %cst_54 [1] : vector<10x32xf32> to vector<10xf32>
    %123 = vector.shape_cast %122 : vector<10xf32> to vector<10x1xf32>
    %cst_55 = arith.constant 3.200000e+01 : f32
    %124 = vector.broadcast %cst_55 : f32 to vector<10x1xf32>
    %125 = arith.divf %123, %124 : vector<10x1xf32>
    %126 = vector.broadcast %125 : vector<10x1xf32> to vector<10x32xf32>
    %127 = arith.subf %117, %126 : vector<10x32xf32>
    %128 = arith.mulf %127, %127 : vector<10x32xf32>
    %cst_56 = arith.constant dense<0.000000e+00> : vector<10xf32>
    %129 = vector.multi_reduction <add>, %128, %cst_56 [1] : vector<10x32xf32> to vector<10xf32>
    %130 = vector.shape_cast %129 : vector<10xf32> to vector<10x1xf32>
    %cst_57 = arith.constant 3.200000e+01 : f32
    %131 = vector.broadcast %cst_57 : f32 to vector<10x1xf32>
    %132 = arith.divf %130, %131 : vector<10x1xf32>
    %133 = vector.broadcast %125 : vector<10x1xf32> to vector<10x32xf32>
    %134 = arith.subf %117, %133 : vector<10x32xf32>
    %cst_58 = arith.constant 9.99999974E-6 : f32
    %135 = vector.broadcast %cst_58 : f32 to vector<10x1xf32>
    %136 = arith.addf %132, %135 : vector<10x1xf32>
    %137 = math.rsqrt %136 : vector<10x1xf32>
    %138 = vector.broadcast %137 : vector<10x1xf32> to vector<10x32xf32>
    %139 = arith.mulf %134, %138 : vector<10x32xf32>
    %140 = vector.broadcast %119 : vector<1x32xf32> to vector<10x32xf32>
    %141 = arith.mulf %139, %140 : vector<10x32xf32>
    %142 = vector.broadcast %121 : vector<1x32xf32> to vector<10x32xf32>
    %143 = arith.addf %141, %142 : vector<10x32xf32>
    %144 = arith.truncf %143 : vector<10x32xf32> to vector<10x32xbf16>
    %c0_59 = arith.constant 0 : index
    %c0_60 = arith.constant 0 : index
    %c0_61 = arith.constant 0 : index
    %145 = vector.load %arg14[%c0_59, %c0_60, %c0_61] : memref<2x32x64xbf16, #tpu.memory_space<vmem>>, vector<1x32x64xbf16>
    %146 = vector.shape_cast %145 : vector<1x32x64xbf16> to vector<32x64xbf16>
    %cst_62 = arith.constant dense<0.000000e+00> : vector<10x64xf32>
    %147 = tpu.matmul %144, %146, %cst_62 {dimension_numbers = #tpu.dot_dimension_numbers<[1], [0], [0], [1], [0, 0, 1, 1], [], []>} : vector<10x32xbf16>, vector<32x64xbf16>, vector<10x64xf32> -> vector<10x64xf32>
    %c0_63 = arith.constant 0 : index
    %c0_64 = arith.constant 0 : index
    %c0_65 = arith.constant 0 : index
    %148 = vector.load %arg15[%c0_63, %c0_64, %c0_65] : memref<2x1x64xf32, #tpu.memory_space<vmem>>, vector<1x1x64xf32>
    %149 = vector.shape_cast %148 : vector<1x1x64xf32> to vector<1x64xf32>
    %150 = vector.broadcast %149 : vector<1x64xf32> to vector<10x64xf32>
    %151 = arith.addf %147, %150 : vector<10x64xf32>
    %cst_66 = arith.constant 1.702000e+00 : f32
    %152 = vector.broadcast %cst_66 : f32 to vector<10x64xf32>
    %153 = arith.mulf %152, %151 : vector<10x64xf32>
    %154 = arith.negf %153 : vector<10x64xf32>
    %155 = math.exp %154 : vector<10x64xf32>
    %cst_67 = arith.constant 1.000000e+00 : f32
    %156 = vector.broadcast %cst_67 : f32 to vector<10x64xf32>
    %157 = arith.addf %156, %155 : vector<10x64xf32>
    %158 = arith.divf %156, %157 : vector<10x64xf32>
    %159 = arith.mulf %151, %158 : vector<10x64xf32>
    %160 = arith.truncf %159 : vector<10x64xf32> to vector<10x64xbf16>
    %c0_68 = arith.constant 0 : index
    %c0_69 = arith.constant 0 : index
    %c0_70 = arith.constant 0 : index
    %161 = vector.load %arg16[%c0_68, %c0_69, %c0_70] : memref<2x64x32xbf16, #tpu.memory_space<vmem>>, vector<1x64x32xbf16>
    %162 = vector.shape_cast %161 : vector<1x64x32xbf16> to vector<64x32xbf16>
    %cst_71 = arith.constant dense<0.000000e+00> : vector<10x32xf32>
    %163 = tpu.matmul %160, %162, %cst_71 {dimension_numbers = #tpu.dot_dimension_numbers<[1], [0], [0], [1], [0, 0, 1, 1], [], []>} : vector<10x64xbf16>, vector<64x32xbf16>, vector<10x32xf32> -> vector<10x32xf32>
    %c0_72 = arith.constant 0 : index
    %c0_73 = arith.constant 0 : index
    %c0_74 = arith.constant 0 : index
    %164 = vector.load %arg17[%c0_72, %c0_73, %c0_74] : memref<2x1x32xf32, #tpu.memory_space<vmem>>, vector<1x1x32xf32>
    %165 = vector.shape_cast %164 : vector<1x1x32xf32> to vector<1x32xf32>
    %166 = vector.broadcast %165 : vector<1x32xf32> to vector<10x32xf32>
    %167 = arith.addf %163, %166 : vector<10x32xf32>
    %168 = arith.addf %117, %167 : vector<10x32xf32>
    %c1 = arith.constant 1 : index
    %c0_75 = arith.constant 0 : index
    %c0_76 = arith.constant 0 : index
    %169 = vector.load %arg6[%c1, %c0_75, %c0_76] : memref<2x1x32xf32, #tpu.memory_space<vmem>>, vector<1x1x32xf32>
    %170 = vector.shape_cast %169 : vector<1x1x32xf32> to vector<1x32xf32>
    %c1_77 = arith.constant 1 : index
    %c0_78 = arith.constant 0 : index
    %c0_79 = arith.constant 0 : index
    %171 = vector.load %arg7[%c1_77, %c0_78, %c0_79] : memref<2x1x32xf32, #tpu.memory_space<vmem>>, vector<1x1x32xf32>
    %172 = vector.shape_cast %171 : vector<1x1x32xf32> to vector<1x32xf32>
    %cst_80 = arith.constant dense<0.000000e+00> : vector<10xf32>
    %173 = vector.multi_reduction <add>, %168, %cst_80 [1] : vector<10x32xf32> to vector<10xf32>
    %174 = vector.shape_cast %173 : vector<10xf32> to vector<10x1xf32>
    %cst_81 = arith.constant 3.200000e+01 : f32
    %175 = vector.broadcast %cst_81 : f32 to vector<10x1xf32>
    %176 = arith.divf %174, %175 : vector<10x1xf32>
    %177 = vector.broadcast %176 : vector<10x1xf32> to vector<10x32xf32>
    %178 = arith.subf %168, %177 : vector<10x32xf32>
    %179 = arith.mulf %178, %178 : vector<10x32xf32>
    %cst_82 = arith.constant dense<0.000000e+00> : vector<10xf32>
    %180 = vector.multi_reduction <add>, %179, %cst_82 [1] : vector<10x32xf32> to vector<10xf32>
    %181 = vector.shape_cast %180 : vector<10xf32> to vector<10x1xf32>
    %cst_83 = arith.constant 3.200000e+01 : f32
    %182 = vector.broadcast %cst_83 : f32 to vector<10x1xf32>
    %183 = arith.divf %181, %182 : vector<10x1xf32>
    %184 = vector.broadcast %176 : vector<10x1xf32> to vector<10x32xf32>
    %185 = arith.subf %168, %184 : vector<10x32xf32>
    %cst_84 = arith.constant 9.99999974E-6 : f32
    %186 = vector.broadcast %cst_84 : f32 to vector<10x1xf32>
    %187 = arith.addf %183, %186 : vector<10x1xf32>
    %188 = math.rsqrt %187 : vector<10x1xf32>
    %189 = vector.broadcast %188 : vector<10x1xf32> to vector<10x32xf32>
    %190 = arith.mulf %185, %189 : vector<10x32xf32>
    %191 = vector.broadcast %170 : vector<1x32xf32> to vector<10x32xf32>
    %192 = arith.mulf %190, %191 : vector<10x32xf32>
    %193 = vector.broadcast %172 : vector<1x32xf32> to vector<10x32xf32>
    %194 = arith.addf %192, %193 : vector<10x32xf32>
    %195 = arith.truncf %194 : vector<10x32xf32> to vector<10x32xbf16>
    %c1_85 = arith.constant 1 : index
    %c0_86 = arith.constant 0 : index
    %c0_87 = arith.constant 0 : index
    %196 = vector.load %arg8[%c1_85, %c0_86, %c0_87] : memref<2x32x96xbf16, #tpu.memory_space<vmem>>, vector<1x32x96xbf16>
    %197 = vector.shape_cast %196 : vector<1x32x96xbf16> to vector<32x96xbf16>
    %cst_88 = arith.constant dense<0.000000e+00> : vector<10x96xf32>
    %198 = tpu.matmul %195, %197, %cst_88 {dimension_numbers = #tpu.dot_dimension_numbers<[1], [0], [0], [1], [0, 0, 1, 1], [], []>} : vector<10x32xbf16>, vector<32x96xbf16>, vector<10x96xf32> -> vector<10x96xf32>
    %c1_89 = arith.constant 1 : index
    %c0_90 = arith.constant 0 : index
    %c0_91 = arith.constant 0 : index
    %199 = vector.load %arg9[%c1_89, %c0_90, %c0_91] : memref<2x1x96xf32, #tpu.memory_space<vmem>>, vector<1x1x96xf32>
    %200 = vector.shape_cast %199 : vector<1x1x96xf32> to vector<1x96xf32>
    %201 = vector.broadcast %200 : vector<1x96xf32> to vector<10x96xf32>
    %202 = arith.addf %198, %201 : vector<10x96xf32>
    %203 = arith.truncf %202 : vector<10x96xf32> to vector<10x96xbf16>
    %204 = vector.extract_strided_slice %203 {offsets = [0, 0], sizes = [10, 16], strides = [1, 1]} : vector<10x96xbf16> to vector<10x16xbf16>
    %205 = vector.shape_cast %204 : vector<10x16xbf16> to vector<2x5x16xbf16>
    %206 = vector.extract_strided_slice %203 {offsets = [0, 32], sizes = [10, 16], strides = [1, 1]} : vector<10x96xbf16> to vector<10x16xbf16>
    %207 = vector.shape_cast %206 : vector<10x16xbf16> to vector<2x5x16xbf16>
    %208 = vector.extract_strided_slice %203 {offsets = [0, 64], sizes = [10, 16], strides = [1, 1]} : vector<10x96xbf16> to vector<10x16xbf16>
    %209 = vector.shape_cast %208 : vector<10x16xbf16> to vector<2x5x16xbf16>
    "tpu.trace_start"() <{level = 10 : i32, message = "bqd,bkd->bqk"}> : () -> ()
    %cst_92 = arith.constant dense<0.000000e+00> : vector<2x5x5xf32>
    %210 = tpu.matmul %205, %207, %cst_92 {dimension_numbers = #tpu.dot_dimension_numbers<[2], [2], [1], [1], [0, 0, 0, 1, 1, 1], [0], [0]>} : vector<2x5x16xbf16>, vector<2x5x16xbf16>, vector<2x5x5xf32> -> vector<2x5x5xf32>
    "tpu.trace_stop"() : () -> ()
    %cst_93 = arith.constant dense<0xFF800000> : vector<2x5xf32>
    %211 = vector.multi_reduction <maximumf>, %210, %cst_93 [2] : vector<2x5x5xf32> to vector<2x5xf32>
    %212 = vector.shape_cast %211 : vector<2x5xf32> to vector<2x5x1xf32>
    %213 = vector.broadcast %212 : vector<2x5x1xf32> to vector<2x5x5xf32>
    %214 = arith.subf %210, %213 : vector<2x5x5xf32>
    %215 = math.exp %214 : vector<2x5x5xf32>
    %cst_94 = arith.constant dense<0.000000e+00> : vector<2x5xf32>
    %216 = vector.multi_reduction <add>, %215, %cst_94 [2] : vector<2x5x5xf32> to vector<2x5xf32>
    %217 = vector.shape_cast %216 : vector<2x5xf32> to vector<2x5x1xf32>
    %218 = tpu.reciprocal %217 {approx = true} : vector<2x5x1xf32> -> vector<2x5x1xf32>
    %219 = vector.broadcast %218 : vector<2x5x1xf32> to vector<2x5x5xf32>
    %220 = arith.mulf %215, %219 : vector<2x5x5xf32>
    %221 = arith.truncf %220 : vector<2x5x5xf32> to vector<2x5x5xbf16>
    "tpu.trace_start"() <{level = 10 : i32, message = "bqk,bkd->bqd"}> : () -> ()
    %cst_95 = arith.constant dense<0.000000e+00> : vector<2x5x16xf32>
    %222 = tpu.matmul %221, %209, %cst_95 {dimension_numbers = #tpu.dot_dimension_numbers<[2], [1], [1], [2], [0, 0, 0, 1, 1, 2], [0], [0]>} : vector<2x5x5xbf16>, vector<2x5x16xbf16>, vector<2x5x16xf32> -> vector<2x5x16xf32>
    "tpu.trace_stop"() : () -> ()
    %223 = vector.extract_strided_slice %203 {offsets = [0, 16], sizes = [10, 16], strides = [1, 1]} : vector<10x96xbf16> to vector<10x16xbf16>
    %224 = vector.shape_cast %223 : vector<10x16xbf16> to vector<2x5x16xbf16>
    %225 = vector.extract_strided_slice %203 {offsets = [0, 48], sizes = [10, 16], strides = [1, 1]} : vector<10x96xbf16> to vector<10x16xbf16>
    %226 = vector.shape_cast %225 : vector<10x16xbf16> to vector<2x5x16xbf16>
    %227 = vector.extract_strided_slice %203 {offsets = [0, 80], sizes = [10, 16], strides = [1, 1]} : vector<10x96xbf16> to vector<10x16xbf16>
    %228 = vector.shape_cast %227 : vector<10x16xbf16> to vector<2x5x16xbf16>
    "tpu.trace_start"() <{level = 10 : i32, message = "bqd,bkd->bqk"}> : () -> ()
    %cst_96 = arith.constant dense<0.000000e+00> : vector<2x5x5xf32>
    %229 = tpu.matmul %224, %226, %cst_96 {dimension_numbers = #tpu.dot_dimension_numbers<[2], [2], [1], [1], [0, 0, 0, 1, 1, 1], [0], [0]>} : vector<2x5x16xbf16>, vector<2x5x16xbf16>, vector<2x5x5xf32> -> vector<2x5x5xf32>
    "tpu.trace_stop"() : () -> ()
    %cst_97 = arith.constant dense<0xFF800000> : vector<2x5xf32>
    %230 = vector.multi_reduction <maximumf>, %229, %cst_97 [2] : vector<2x5x5xf32> to vector<2x5xf32>
    %231 = vector.shape_cast %230 : vector<2x5xf32> to vector<2x5x1xf32>
    %232 = vector.broadcast %231 : vector<2x5x1xf32> to vector<2x5x5xf32>
    %233 = arith.subf %229, %232 : vector<2x5x5xf32>
    %234 = math.exp %233 : vector<2x5x5xf32>
    %cst_98 = arith.constant dense<0.000000e+00> : vector<2x5xf32>
    %235 = vector.multi_reduction <add>, %234, %cst_98 [2] : vector<2x5x5xf32> to vector<2x5xf32>
    %236 = vector.shape_cast %235 : vector<2x5xf32> to vector<2x5x1xf32>
    %237 = tpu.reciprocal %236 {approx = true} : vector<2x5x1xf32> -> vector<2x5x1xf32>
    %238 = vector.broadcast %237 : vector<2x5x1xf32> to vector<2x5x5xf32>
    %239 = arith.mulf %234, %238 : vector<2x5x5xf32>
    %240 = arith.truncf %239 : vector<2x5x5xf32> to vector<2x5x5xbf16>
    "tpu.trace_start"() <{level = 10 : i32, message = "bqk,bkd->bqd"}> : () -> ()
    %cst_99 = arith.constant dense<0.000000e+00> : vector<2x5x16xf32>
    %241 = tpu.matmul %240, %228, %cst_99 {dimension_numbers = #tpu.dot_dimension_numbers<[2], [1], [1], [2], [0, 0, 0, 1, 1, 2], [0], [0]>} : vector<2x5x5xbf16>, vector<2x5x16xbf16>, vector<2x5x16xf32> -> vector<2x5x16xf32>
    "tpu.trace_stop"() : () -> ()
    %242 = tpu.concatenate %222, %241 in 2 : vector<2x5x16xf32>, vector<2x5x16xf32> -> vector<2x5x32xf32>
    %243 = vector.shape_cast %242 : vector<2x5x32xf32> to vector<10x32xf32>
    %244 = arith.truncf %243 : vector<10x32xf32> to vector<10x32xbf16>
    %c1_100 = arith.constant 1 : index
    %c0_101 = arith.constant 0 : index
    %c0_102 = arith.constant 0 : index
    %245 = vector.load %arg10[%c1_100, %c0_101, %c0_102] : memref<2x32x32xbf16, #tpu.memory_space<vmem>>, vector<1x32x32xbf16>
    %246 = vector.shape_cast %245 : vector<1x32x32xbf16> to vector<32x32xbf16>
    %cst_103 = arith.constant dense<0.000000e+00> : vector<10x32xf32>
    %247 = tpu.matmul %244, %246, %cst_103 {dimension_numbers = #tpu.dot_dimension_numbers<[1], [0], [0], [1], [0, 0, 1, 1], [], []>} : vector<10x32xbf16>, vector<32x32xbf16>, vector<10x32xf32> -> vector<10x32xf32>
    %c1_104 = arith.constant 1 : index
    %c0_105 = arith.constant 0 : index
    %c0_106 = arith.constant 0 : index
    %248 = vector.load %arg11[%c1_104, %c0_105, %c0_106] : memref<2x1x32xf32, #tpu.memory_space<vmem>>, vector<1x1x32xf32>
    %249 = vector.shape_cast %248 : vector<1x1x32xf32> to vector<1x32xf32>
    %250 = vector.broadcast %249 : vector<1x32xf32> to vector<10x32xf32>
    %251 = arith.addf %247, %250 : vector<10x32xf32>
    %252 = arith.addf %168, %251 : vector<10x32xf32>
    %c1_107 = arith.constant 1 : index
    %c0_108 = arith.constant 0 : index
    %c0_109 = arith.constant 0 : index
    %253 = vector.load %arg12[%c1_107, %c0_108, %c0_109] : memref<2x1x32xf32, #tpu.memory_space<vmem>>, vector<1x1x32xf32>
    %254 = vector.shape_cast %253 : vector<1x1x32xf32> to vector<1x32xf32>
    %c1_110 = arith.constant 1 : index
    %c0_111 = arith.constant 0 : index
    %c0_112 = arith.constant 0 : index
    %255 = vector.load %arg13[%c1_110, %c0_111, %c0_112] : memref<2x1x32xf32, #tpu.memory_space<vmem>>, vector<1x1x32xf32>
    %256 = vector.shape_cast %255 : vector<1x1x32xf32> to vector<1x32xf32>
    %cst_113 = arith.constant dense<0.000000e+00> : vector<10xf32>
    %257 = vector.multi_reduction <add>, %252, %cst_113 [1] : vector<10x32xf32> to vector<10xf32>
    %258 = vector.shape_cast %257 : vector<10xf32> to vector<10x1xf32>
    %cst_114 = arith.constant 3.200000e+01 : f32
    %259 = vector.broadcast %cst_114 : f32 to vector<10x1xf32>
    %260 = arith.divf %258, %259 : vector<10x1xf32>
    %261 = vector.broadcast %260 : vector<10x1xf32> to vector<10x32xf32>
    %262 = arith.subf %252, %261 : vector<10x32xf32>
    %263 = arith.mulf %262, %262 : vector<10x32xf32>
    %cst_115 = arith.constant dense<0.000000e+00> : vector<10xf32>
    %264 = vector.multi_reduction <add>, %263, %cst_115 [1] : vector<10x32xf32> to vector<10xf32>
    %265 = vector.shape_cast %264 : vector<10xf32> to vector<10x1xf32>
    %cst_116 = arith.constant 3.200000e+01 : f32
    %266 = vector.broadcast %cst_116 : f32 to vector<10x1xf32>
    %267 = arith.divf %265, %266 : vector<10x1xf32>
    %268 = vector.broadcast %260 : vector<10x1xf32> to vector<10x32xf32>
    %269 = arith.subf %252, %268 : vector<10x32xf32>
    %cst_117 = arith.constant 9.99999974E-6 : f32
    %270 = vector.broadcast %cst_117 : f32 to vector<10x1xf32>
    %271 = arith.addf %267, %270 : vector<10x1xf32>
    %272 = math.rsqrt %271 : vector<10x1xf32>
    %273 = vector.broadcast %272 : vector<10x1xf32> to vector<10x32xf32>
    %274 = arith.mulf %269, %273 : vector<10x32xf32>
    %275 = vector.broadcast %254 : vector<1x32xf32> to vector<10x32xf32>
    %276 = arith.mulf %274, %275 : vector<10x32xf32>
    %277 = vector.broadcast %256 : vector<1x32xf32> to vector<10x32xf32>
    %278 = arith.addf %276, %277 : vector<10x32xf32>
    %279 = arith.truncf %278 : vector<10x32xf32> to vector<10x32xbf16>
    %c1_118 = arith.constant 1 : index
    %c0_119 = arith.constant 0 : index
    %c0_120 = arith.constant 0 : index
    %280 = vector.load %arg14[%c1_118, %c0_119, %c0_120] : memref<2x32x64xbf16, #tpu.memory_space<vmem>>, vector<1x32x64xbf16>
    %281 = vector.shape_cast %280 : vector<1x32x64xbf16> to vector<32x64xbf16>
    %cst_121 = arith.constant dense<0.000000e+00> : vector<10x64xf32>
    %282 = tpu.matmul %279, %281, %cst_121 {dimension_numbers = #tpu.dot_dimension_numbers<[1], [0], [0], [1], [0, 0, 1, 1], [], []>} : vector<10x32xbf16>, vector<32x64xbf16>, vector<10x64xf32> -> vector<10x64xf32>
    %c1_122 = arith.constant 1 : index
    %c0_123 = arith.constant 0 : index
    %c0_124 = arith.constant 0 : index
    %283 = vector.load %arg15[%c1_122, %c0_123, %c0_124] : memref<2x1x64xf32, #tpu.memory_space<vmem>>, vector<1x1x64xf32>
    %284 = vector.shape_cast %283 : vector<1x1x64xf32> to vector<1x64xf32>
    %285 = vector.broadcast %284 : vector<1x64xf32> to vector<10x64xf32>
    %286 = arith.addf %282, %285 : vector<10x64xf32>
    %cst_125 = arith.constant 1.702000e+00 : f32
    %287 = vector.broadcast %cst_125 : f32 to vector<10x64xf32>
    %288 = arith.mulf %287, %286 : vector<10x64xf32>
    %289 = arith.negf %288 : vector<10x64xf32>
    %290 = math.exp %289 : vector<10x64xf32>
    %cst_126 = arith.constant 1.000000e+00 : f32
    %291 = vector.broadcast %cst_126 : f32 to vector<10x64xf32>
    %292 = arith.addf %291, %290 : vector<10x64xf32>
    %293 = arith.divf %291, %292 : vector<10x64xf32>
    %294 = arith.mulf %286, %293 : vector<10x64xf32>
    %295 = arith.truncf %294 : vector<10x64xf32> to vector<10x64xbf16>
    %c1_127 = arith.constant 1 : index
    %c0_128 = arith.constant 0 : index
    %c0_129 = arith.constant 0 : index
    %296 = vector.load %arg16[%c1_127, %c0_128, %c0_129] : memref<2x64x32xbf16, #tpu.memory_space<vmem>>, vector<1x64x32xbf16>
    %297 = vector.shape_cast %296 : vector<1x64x32xbf16> to vector<64x32xbf16>
    %cst_130 = arith.constant dense<0.000000e+00> : vector<10x32xf32>
    %298 = tpu.matmul %295, %297, %cst_130 {dimension_numbers = #tpu.dot_dimension_numbers<[1], [0], [0], [1], [0, 0, 1, 1], [], []>} : vector<10x64xbf16>, vector<64x32xbf16>, vector<10x32xf32> -> vector<10x32xf32>
    %c1_131 = arith.constant 1 : index
    %c0_132 = arith.constant 0 : index
    %c0_133 = arith.constant 0 : index
    %299 = vector.load %arg17[%c1_131, %c0_132, %c0_133] : memref<2x1x32xf32, #tpu.memory_space<vmem>>, vector<1x1x32xf32>
    %300 = vector.shape_cast %299 : vector<1x1x32xf32> to vector<1x32xf32>
    %301 = vector.broadcast %300 : vector<1x32xf32> to vector<10x32xf32>
    %302 = arith.addf %298, %301 : vector<10x32xf32>
    %303 = arith.addf %252, %302 : vector<10x32xf32>
    %304 = vector.extract_strided_slice %303 {offsets = [0, 0], sizes = [1, 32], strides = [1, 1]} : vector<10x32xf32> to vector<1x32xf32>
    %305 = vector.extract_strided_slice %303 {offsets = [5, 0], sizes = [1, 32], strides = [1, 1]} : vector<10x32xf32> to vector<1x32xf32>
    %306 = tpu.concatenate %304, %305 in 0 : vector<1x32xf32>, vector<1x32xf32> -> vector<2x32xf32>
    %c0_134 = arith.constant 0 : index
    %c0_135 = arith.constant 0 : index
    %307 = vector.load %arg18[%c0_134, %c0_135] : memref<1x32xf32, #tpu.memory_space<vmem>>, vector<1x32xf32>
    %c0_136 = arith.constant 0 : index
    %c0_137 = arith.constant 0 : index
    %308 = vector.load %arg19[%c0_136, %c0_137] : memref<1x32xf32, #tpu.memory_space<vmem>>, vector<1x32xf32>
    %cst_138 = arith.constant dense<0.000000e+00> : vector<2xf32>
    %309 = vector.multi_reduction <add>, %306, %cst_138 [1] : vector<2x32xf32> to vector<2xf32>
    %310 = vector.shape_cast %309 : vector<2xf32> to vector<2x1xf32>
    %cst_139 = arith.constant 3.200000e+01 : f32
    %311 = vector.broadcast %cst_139 : f32 to vector<2x1xf32>
    %312 = arith.divf %310, %311 : vector<2x1xf32>
    %313 = vector.broadcast %312 : vector<2x1xf32> to vector<2x32xf32>
    %314 = arith.subf %306, %313 : vector<2x32xf32>
    %315 = arith.mulf %314, %314 : vector<2x32xf32>
    %cst_140 = arith.constant dense<0.000000e+00> : vector<2xf32>
    %316 = vector.multi_reduction <add>, %315, %cst_140 [1] : vector<2x32xf32> to vector<2xf32>
    %317 = vector.shape_cast %316 : vector<2xf32> to vector<2x1xf32>
    %cst_141 = arith.constant 3.200000e+01 : f32
    %318 = vector.broadcast %cst_141 : f32 to vector<2x1xf32>
    %319 = arith.divf %317, %318 : vector<2x1xf32>
    %320 = vector.broadcast %312 : vector<2x1xf32> to vector<2x32xf32>
    %321 = arith.subf %306, %320 : vector<2x32xf32>
    %cst_142 = arith.constant 9.99999974E-6 : f32
    %322 = vector.broadcast %cst_142 : f32 to vector<2x1xf32>
    %323 = arith.addf %319, %322 : vector<2x1xf32>
    %324 = math.rsqrt %323 : vector<2x1xf32>
    %325 = vector.broadcast %324 : vector<2x1xf32> to vector<2x32xf32>
    %326 = arith.mulf %321, %325 : vector<2x32xf32>
    %327 = vector.broadcast %307 : vector<1x32xf32> to vector<2x32xf32>
    %328 = arith.mulf %326, %327 : vector<2x32xf32>
    %329 = vector.broadcast %308 : vector<1x32xf32> to vector<2x32xf32>
    %330 = arith.addf %328, %329 : vector<2x32xf32>
    %331 = arith.truncf %330 : vector<2x32xf32> to vector<2x32xbf16>
    %c0_143 = arith.constant 0 : index
    %c0_144 = arith.constant 0 : index
    %332 = vector.load %arg20[%c0_143, %c0_144] : memref<32x128xbf16, #tpu.memory_space<vmem>>, vector<32x128xbf16>
    %cst_145 = arith.constant dense<0.000000e+00> : vector<2x128xf32>
    %333 = tpu.matmul %331, %332, %cst_145 {dimension_numbers = #tpu.dot_dimension_numbers<[1], [0], [0], [1], [0, 0, 1, 1], [], []>} : vector<2x32xbf16>, vector<32x128xbf16>, vector<2x128xf32> -> vector<2x128xf32>
    %c0_146 = arith.constant 0 : index
    %c0_147 = arith.constant 0 : index
    %334 = vector.load %arg21[%c0_146, %c0_147] : memref<2x128xf32, #tpu.memory_space<vmem>>, vector<2x128xf32>
    tpu.vector_store %arg21[%c0_146, %c0_147], %333 {strides = array<i32>} : memref<2x128xf32, #tpu.memory_space<vmem>>, vector<2x128xf32>,
    return
  }
  func.func @transform_0(%arg0: i32) -> (i32, i32, i32) {
    %c0_i32 = arith.constant 0 : i32
    %c0_i32_0 = arith.constant 0 : i32
    %c0_i32_1 = arith.constant 0 : i32
    return %arg0, %c0_i32, %c0_i32_0 : i32, i32, i32
  }
  func.func @transform_1(%arg0: i32) -> (i32, i32) {
    %c0_i32 = arith.constant 0 : i32
    %c0_i32_0 = arith.constant 0 : i32
    %c0_i32_1 = arith.constant 0 : i32
    return %c0_i32, %c0_i32_0 : i32, i32
  }
  func.func @transform_2(%arg0: i32) -> (i32, i32) {
    %c0_i32 = arith.constant 0 : i32
    %c0_i32_0 = arith.constant 0 : i32
    %c0_i32_1 = arith.constant 0 : i32
    return %c0_i32, %c0_i32_0 : i32, i32
  }
  func.func @transform_3(%arg0: i32) -> (i32, i32) {
    %c0_i32 = arith.constant 0 : i32
    %c0_i32_0 = arith.constant 0 : i32
    %c0_i32_1 = arith.constant 0 : i32
    return %c0_i32, %c0_i32_0 : i32, i32
  }
  func.func @transform_4(%arg0: i32) -> (i32, i32) {
    %c0_i32 = arith.constant 0 : i32
    %c0_i32_0 = arith.constant 0 : i32
    %c0_i32_1 = arith.constant 0 : i32
    return %c0_i32, %c0_i32_0 : i32, i32
  }
  func.func @transform_5(%arg0: i32) -> (i32, i32, i32) {
    %c0_i32 = arith.constant 0 : i32
    %c0_i32_0 = arith.constant 0 : i32
    %c0_i32_1 = arith.constant 0 : i32
    %c0_i32_2 = arith.constant 0 : i32
    return %c0_i32, %c0_i32_0, %c0_i32_1 : i32, i32, i32
  }
  func.func @transform_6(%arg0: i32) -> (i32, i32, i32) {
    %c0_i32 = arith.constant 0 : i32
    %c0_i32_0 = arith.constant 0 : i32
    %c0_i32_1 = arith.constant 0 : i32
    %c0_i32_2 = arith.constant 0 : i32
    return %c0_i32, %c0_i32_0, %c0_i32_1 : i32, i32, i32
  }
  func.func @transform_7(%arg0: i32) -> (i32, i32, i32) {
    %c0_i32 = arith.constant 0 : i32
    %c0_i32_0 = arith.constant 0 : i32
    %c0_i32_1 = arith.constant 0 : i32
    %c0_i32_2 = arith.constant 0 : i32
    return %c0_i32, %c0_i32_0, %c0_i32_1 : i32, i32, i32
  }
  func.func @transform_8(%arg0: i32) -> (i32, i32, i32) {
    %c0_i32 = arith.constant 0 : i32
    %c0_i32_0 = arith.constant 0 : i32
    %c0_i32_1 = arith.constant 0 : i32
    %c0_i32_2 = arith.constant 0 : i32
    return %c0_i32, %c0_i32_0, %c0_i32_1 : i32, i32, i32
  }
  func.func @transform_9(%arg0: i32) -> (i32, i32, i32) {
    %c0_i32 = arith.constant 0 : i32
    %c0_i32_0 = arith.constant 0 : i32
    %c0_i32_1 = arith.constant 0 : i32
    %c0_i32_2 = arith.constant 0 : i32
    return %c0_i32, %c0_i32_0, %c0_i32_1 : i32, i32, i32
  }
  func.func @transform_10(%arg0: i32) -> (i32, i32, i32) {
    %c0_i32 = arith.constant 0 : i32
    %c0_i32_0 = arith.constant 0 : i32
    %c0_i32_1 = arith.constant 0 : i32
    %c0_i32_2 = arith.constant 0 : i32
    return %c0_i32, %c0_i32_0, %c0_i32_1 : i32, i32, i32
  }
  func.func @transform_11(%arg0: i32) -> (i32, i32, i32) {
    %c0_i32 = arith.constant 0 : i32
    %c0_i32_0 = arith.constant 0 : i32
    %c0_i32_1 = arith.constant 0 : i32
    %c0_i32_2 = arith.constant 0 : i32
    return %c0_i32, %c0_i32_0, %c0_i32_1 : i32, i32, i32
  }
  func.func @transform_12(%arg0: i32) -> (i32, i32, i32) {
    %c0_i32 = arith.constant 0 : i32
    %c0_i32_0 = arith.constant 0 : i32
    %c0_i32_1 = arith.constant 0 : i32
    %c0_i32_2 = arith.constant 0 : i32
    return %c0_i32, %c0_i32_0, %c0_i32_1 : i32, i32, i32
  }
  func.func @transform_13(%arg0: i32) -> (i32, i32, i32) {
    %c0_i32 = arith.constant 0 : i32
    %c0_i32_0 = arith.constant 0 : i32
    %c0_i32_1 = arith.constant 0 : i32
    %c0_i32_2 = arith.constant 0 : i32
    return %c0_i32, %c0_i32_0, %c0_i32_1 : i32, i32, i32
  }
  func.func @transform_14(%arg0: i32) -> (i32, i32, i32) {
    %c0_i32 = arith.constant 0 : i32
    %c0_i32_0 = arith.constant 0 : i32
    %c0_i32_1 = arith.constant 0 : i32
    %c0_i32_2 = arith.constant 0 : i32
    return %c0_i32, %c0_i32_0, %c0_i32_1 : i32, i32, i32
  }
  func.func @transform_15(%arg0: i32) -> (i32, i32, i32) {
    %c0_i32 = arith.constant 0 : i32
    %c0_i32_0 = arith.constant 0 : i32
    %c0_i32_1 = arith.constant 0 : i32
    %c0_i32_2 = arith.constant 0 : i32
    return %c0_i32, %c0_i32_0, %c0_i32_1 : i32, i32, i32
  }
  func.func @transform_16(%arg0: i32) -> (i32, i32, i32) {
    %c0_i32 = arith.constant 0 : i32
    %c0_i32_0 = arith.constant 0 : i32
    %c0_i32_1 = arith.constant 0 : i32
    %c0_i32_2 = arith.constant 0 : i32
    return %c0_i32, %c0_i32_0, %c0_i32_1 : i32, i32, i32
  }
  func.func @transform_17(%arg0: i32) -> (i32, i32) {
    %c0_i32 = arith.constant 0 : i32
    %c0_i32_0 = arith.constant 0 : i32
    %c0_i32_1 = arith.constant 0 : i32
    return %c0_i32, %c0_i32_0 : i32, i32
  }
  func.func @transform_18(%arg0: i32) -> (i32, i32) {
    %c0_i32 = arith.constant 0 : i32
    %c0_i32_0 = arith.constant 0 : i32
    %c0_i32_1 = arith.constant 0 : i32
    return %c0_i32, %c0_i32_0 : i32, i32
  }
  func.func @transform_19(%arg0: i32) -> (i32, i32) {
    %c0_i32 = arith.constant 0 : i32
    %c0_i32_0 = arith.constant 0 : i32
    %c0_i32_1 = arith.constant 0 : i32
    return %c0_i32, %c0_i32_0 : i32, i32
  }
  func.func @transform_20(%arg0: i32) -> (i32, i32) {
    %c0_i32 = arith.constant 0 : i32
    %c0_i32_0 = arith.constant 0 : i32
    return %arg0, %c0_i32 : i32, i32
  }
}

module attributes {stable_mosaic.version = 11 : i64} {
  func.func @_text_kernel(%arg0: i32, %arg1: memref<2xi32, #tpu.memory_space<smem>>, %arg2: memref<2x8x32xbf16, #tpu.memory_space<vmem>>, %arg3: memref<2x1x8xf32, #tpu.memory_space<vmem>>, %arg4: memref<2x1x32xf32, #tpu.memory_space<vmem>>, %arg5: memref<2x1x32xf32, #tpu.memory_space<vmem>>, %arg6: memref<2x32x96xbf16, #tpu.memory_space<vmem>>, %arg7: memref<2x1x96xf32, #tpu.memory_space<vmem>>, %arg8: memref<2x32x32xbf16, #tpu.memory_space<vmem>>, %arg9: memref<2x1x32xf32, #tpu.memory_space<vmem>>, %arg10: memref<2x1x32xf32, #tpu.memory_space<vmem>>, %arg11: memref<2x1x32xf32, #tpu.memory_space<vmem>>, %arg12: memref<2x32x64xbf16, #tpu.memory_space<vmem>>, %arg13: memref<2x1x64xf32, #tpu.memory_space<vmem>>, %arg14: memref<2x64x32xbf16, #tpu.memory_space<vmem>>, %arg15: memref<2x1x32xf32, #tpu.memory_space<vmem>>, %arg16: memref<1x32xf32, #tpu.memory_space<vmem>>, %arg17: memref<1x32xf32, #tpu.memory_space<vmem>>, %arg18: memref<32x128xbf16, #tpu.memory_space<vmem>>, %arg19: memref<2x128xf32, #tpu.memory_space<vmem>>, %arg20: memref<16x32xf32, #tpu.memory_space<vmem>>) attributes {dimension_semantics = [#tpu.dimension_semantics<arbitrary>], iteration_bounds = array<i64: 1>, scalar_prefetch = 1 : i64, scratch_operands = 1 : i64, tpu.core_type = #tpu.core_type<tc>, window_params = [{transform_indices = @transform_0, window_bounds = array<i64: 2, 8, 32>}, {transform_indices = @transform_1, window_bounds = array<i64: 2, 1, 8>}, {pipeline_mode = #tpu.pipeline_mode<synchronous>, transform_indices = @transform_2, window_bounds = array<i64: 2, 1, 32>}, {pipeline_mode = #tpu.pipeline_mode<synchronous>, transform_indices = @transform_3, window_bounds = array<i64: 2, 1, 32>}, {pipeline_mode = #tpu.pipeline_mode<synchronous>, transform_indices = @transform_4, window_bounds = array<i64: 2, 32, 96>}, {pipeline_mode = #tpu.pipeline_mode<synchronous>, transform_indices = @transform_5, window_bounds = array<i64: 2, 1, 96>}, {pipeline_mode = #tpu.pipeline_mode<synchronous>, transform_indices = @transform_6, window_bounds = array<i64: 2, 32, 32>}, {pipeline_mode = #tpu.pipeline_mode<synchronous>, transform_indices = @transform_7, window_bounds = array<i64: 2, 1, 32>}, {pipeline_mode = #tpu.pipeline_mode<synchronous>, transform_indices = @transform_8, window_bounds = array<i64: 2, 1, 32>}, {pipeline_mode = #tpu.pipeline_mode<synchronous>, transform_indices = @transform_9, window_bounds = array<i64: 2, 1, 32>}, {pipeline_mode = #tpu.pipeline_mode<synchronous>, transform_indices = @transform_10, window_bounds = array<i64: 2, 32, 64>}, {pipeline_mode = #tpu.pipeline_mode<synchronous>, transform_indices = @transform_11, window_bounds = array<i64: 2, 1, 64>}, {pipeline_mode = #tpu.pipeline_mode<synchronous>, transform_indices = @transform_12, window_bounds = array<i64: 2, 64, 32>}, {pipeline_mode = #tpu.pipeline_mode<synchronous>, transform_indices = @transform_13, window_bounds = array<i64: 2, 1, 32>}, {pipeline_mode = #tpu.pipeline_mode<synchronous>, transform_indices = @transform_14, window_bounds = array<i64: 1, 32>}, {pipeline_mode = #tpu.pipeline_mode<synchronous>, transform_indices = @transform_15, window_bounds = array<i64: 1, 32>}, {pipeline_mode = #tpu.pipeline_mode<synchronous>, transform_indices = @transform_16, window_bounds = array<i64: 32, 128>}, {transform_indices = @transform_17, window_bounds = array<i64: 2, 128>}]} {
    %c0 = arith.constant 0 : index
    %c0_0 = arith.constant 0 : index
    %c0_1 = arith.constant 0 : index
    %0 = vector.load %arg2[%c0, %c0_0, %c0_1] : memref<2x8x32xbf16, #tpu.memory_space<vmem>>, vector<2x8x32xbf16>
    %1 = arith.extf %0 : vector<2x8x32xbf16> to vector<2x8x32xf32>
    %2 = vector.shape_cast %1 : vector<2x8x32xf32> to vector<16x32xf32>
    %3 = tpu.iota {dimensions = array<i32: 0>} : vector<8x8xi32>
    %4 = tpu.iota {dimensions = array<i32: 1>} : vector<8x8xi32>
    %5 = arith.cmpi sgt, %4, %3 : vector<8x8xi32>
    %cst = arith.constant -1.000000e+09 : f32
    %cst_2 = arith.constant 0.000000e+00 : f32
    %6 = vector.broadcast %cst : f32 to vector<8x8xf32>
    %7 = vector.broadcast %cst_2 : f32 to vector<8x8xf32>
    %8 = arith.select %5, %6, %7 : vector<8x8xi1>, vector<8x8xf32>
    %9 = vector.shape_cast %8 : vector<8x8xf32> to vector<1x8x8xf32>
    %c0_3 = arith.constant 0 : index
    %c0_4 = arith.constant 0 : index
    %c0_5 = arith.constant 0 : index
    %10 = vector.load %arg3[%c0_3, %c0_4, %c0_5] : memref<2x1x8xf32, #tpu.memory_space<vmem>>, vector<2x1x8xf32>
    %11 = vector.broadcast %9 : vector<1x8x8xf32> to vector<2x8x8xf32>
    %12 = vector.broadcast %10 : vector<2x1x8xf32> to vector<2x8x8xf32>
    %13 = arith.addf %11, %12 : vector<2x8x8xf32>
    %c0_6 = arith.constant 0 : index
    %c0_7 = arith.constant 0 : index
    %c0_8 = arith.constant 0 : index
    %14 = vector.load %arg4[%c0_6, %c0_7, %c0_8] : memref<2x1x32xf32, #tpu.memory_space<vmem>>, vector<1x1x32xf32>
    %15 = vector.shape_cast %14 : vector<1x1x32xf32> to vector<1x32xf32>
    %c0_9 = arith.constant 0 : index
    %c0_10 = arith.constant 0 : index
    %c0_11 = arith.constant 0 : index
    %16 = vector.load %arg5[%c0_9, %c0_10, %c0_11] : memref<2x1x32xf32, #tpu.memory_space<vmem>>, vector<1x1x32xf32>
    %17 = vector.shape_cast %16 : vector<1x1x32xf32> to vector<1x32xf32>
    %cst_12 = arith.constant dense<0.000000e+00> : vector<16xf32>
    %18 = vector.multi_reduction <add>, %2, %cst_12 [1] : vector<16x32xf32> to vector<16xf32>
    %19 = vector.shape_cast %18 : vector<16xf32> to vector<16x1xf32>
    %cst_13 = arith.constant 3.200000e+01 : f32
    %20 = vector.broadcast %cst_13 : f32 to vector<16x1xf32>
    %21 = arith.divf %19, %20 : vector<16x1xf32>
    %22 = vector.broadcast %21 : vector<16x1xf32> to vector<16x32xf32>
    %23 = arith.subf %2, %22 : vector<16x32xf32>
    %24 = arith.mulf %23, %23 : vector<16x32xf32>
    %cst_14 = arith.constant dense<0.000000e+00> : vector<16xf32>
    %25 = vector.multi_reduction <add>, %24, %cst_14 [1] : vector<16x32xf32> to vector<16xf32>
    %26 = vector.shape_cast %25 : vector<16xf32> to vector<16x1xf32>
    %cst_15 = arith.constant 3.200000e+01 : f32
    %27 = vector.broadcast %cst_15 : f32 to vector<16x1xf32>
    %28 = arith.divf %26, %27 : vector<16x1xf32>
    %29 = vector.broadcast %21 : vector<16x1xf32> to vector<16x32xf32>
    %30 = arith.subf %2, %29 : vector<16x32xf32>
    %cst_16 = arith.constant 9.99999974E-6 : f32
    %31 = vector.broadcast %cst_16 : f32 to vector<16x1xf32>
    %32 = arith.addf %28, %31 : vector<16x1xf32>
    %33 = math.rsqrt %32 : vector<16x1xf32>
    %34 = vector.broadcast %33 : vector<16x1xf32> to vector<16x32xf32>
    %35 = arith.mulf %30, %34 : vector<16x32xf32>
    %36 = vector.broadcast %15 : vector<1x32xf32> to vector<16x32xf32>
    %37 = arith.mulf %35, %36 : vector<16x32xf32>
    %38 = vector.broadcast %17 : vector<1x32xf32> to vector<16x32xf32>
    %39 = arith.addf %37, %38 : vector<16x32xf32>
    %40 = arith.truncf %39 : vector<16x32xf32> to vector<16x32xbf16>
    %c0_17 = arith.constant 0 : index
    %c0_18 = arith.constant 0 : index
    %c0_19 = arith.constant 0 : index
    %41 = vector.load %arg6[%c0_17, %c0_18, %c0_19] : memref<2x32x96xbf16, #tpu.memory_space<vmem>>, vector<1x32x96xbf16>
    %42 = vector.shape_cast %41 : vector<1x32x96xbf16> to vector<32x96xbf16>
    %cst_20 = arith.constant dense<0.000000e+00> : vector<16x96xf32>
    %43 = tpu.matmul %40, %42, %cst_20 {dimension_numbers = #tpu.dot_dimension_numbers<[1], [0], [0], [1], [0, 0, 1, 1], [], []>} : vector<16x32xbf16>, vector<32x96xbf16>, vector<16x96xf32> -> vector<16x96xf32>
    %c0_21 = arith.constant 0 : index
    %c0_22 = arith.constant 0 : index
    %c0_23 = arith.constant 0 : index
    %44 = vector.load %arg7[%c0_21, %c0_22, %c0_23] : memref<2x1x96xf32, #tpu.memory_space<vmem>>, vector<1x1x96xf32>
    %45 = vector.shape_cast %44 : vector<1x1x96xf32> to vector<1x96xf32>
    %46 = vector.broadcast %45 : vector<1x96xf32> to vector<16x96xf32>
    %47 = arith.addf %43, %46 : vector<16x96xf32>
    %48 = arith.truncf %47 : vector<16x96xf32> to vector<16x96xbf16>
    %49 = vector.extract_strided_slice %48 {offsets = [0, 0], sizes = [16, 16], strides = [1, 1]} : vector<16x96xbf16> to vector<16x16xbf16>
    %50 = vector.shape_cast %49 : vector<16x16xbf16> to vector<2x8x16xbf16>
    %51 = vector.extract_strided_slice %48 {offsets = [0, 32], sizes = [16, 16], strides = [1, 1]} : vector<16x96xbf16> to vector<16x16xbf16>
    %52 = vector.shape_cast %51 : vector<16x16xbf16> to vector<2x8x16xbf16>
    %53 = vector.extract_strided_slice %48 {offsets = [0, 64], sizes = [16, 16], strides = [1, 1]} : vector<16x96xbf16> to vector<16x16xbf16>
    %54 = vector.shape_cast %53 : vector<16x16xbf16> to vector<2x8x16xbf16>
    "tpu.trace_start"() <{level = 10 : i32, message = "bqd,bkd->bqk"}> : () -> ()
    %cst_24 = arith.constant dense<0.000000e+00> : vector<2x8x8xf32>
    %55 = tpu.matmul %50, %52, %cst_24 {dimension_numbers = #tpu.dot_dimension_numbers<[2], [2], [1], [1], [0, 0, 0, 1, 1, 1], [0], [0]>} : vector<2x8x16xbf16>, vector<2x8x16xbf16>, vector<2x8x8xf32> -> vector<2x8x8xf32>
    "tpu.trace_stop"() : () -> ()
    %56 = arith.addf %55, %13 : vector<2x8x8xf32>
    %cst_25 = arith.constant dense<0xFF800000> : vector<2x8xf32>
    %57 = vector.multi_reduction <maximumf>, %56, %cst_25 [2] : vector<2x8x8xf32> to vector<2x8xf32>
    %58 = vector.shape_cast %57 : vector<2x8xf32> to vector<2x8x1xf32>
    %59 = vector.broadcast %58 : vector<2x8x1xf32> to vector<2x8x8xf32>
    %60 = arith.subf %56, %59 : vector<2x8x8xf32>
    %61 = math.exp %60 : vector<2x8x8xf32>
    %cst_26 = arith.constant dense<0.000000e+00> : vector<2x8xf32>
    %62 = vector.multi_reduction <add>, %61, %cst_26 [2] : vector<2x8x8xf32> to vector<2x8xf32>
    %63 = vector.shape_cast %62 : vector<2x8xf32> to vector<2x8x1xf32>
    %64 = tpu.reciprocal %63 {approx = true} : vector<2x8x1xf32> -> vector<2x8x1xf32>
    %65 = vector.broadcast %64 : vector<2x8x1xf32> to vector<2x8x8xf32>
    %66 = arith.mulf %61, %65 : vector<2x8x8xf32>
    %67 = arith.truncf %66 : vector<2x8x8xf32> to vector<2x8x8xbf16>
    "tpu.trace_start"() <{level = 10 : i32, message = "bqk,bkd->bqd"}> : () -> ()
    %cst_27 = arith.constant dense<0.000000e+00> : vector<2x8x16xf32>
    %68 = tpu.matmul %67, %54, %cst_27 {dimension_numbers = #tpu.dot_dimension_numbers<[2], [1], [1], [2], [0, 0, 0, 1, 1, 2], [0], [0]>} : vector<2x8x8xbf16>, vector<2x8x16xbf16>, vector<2x8x16xf32> -> vector<2x8x16xf32>
    "tpu.trace_stop"() : () -> ()
    %69 = vector.extract_strided_slice %48 {offsets = [0, 16], sizes = [16, 16], strides = [1, 1]} : vector<16x96xbf16> to vector<16x16xbf16>
    %70 = vector.shape_cast %69 : vector<16x16xbf16> to vector<2x8x16xbf16>
    %71 = vector.extract_strided_slice %48 {offsets = [0, 48], sizes = [16, 16], strides = [1, 1]} : vector<16x96xbf16> to vector<16x16xbf16>
    %72 = vector.shape_cast %71 : vector<16x16xbf16> to vector<2x8x16xbf16>
    %73 = vector.extract_strided_slice %48 {offsets = [0, 80], sizes = [16, 16], strides = [1, 1]} : vector<16x96xbf16> to vector<16x16xbf16>
    %74 = vector.shape_cast %73 : vector<16x16xbf16> to vector<2x8x16xbf16>
    "tpu.trace_start"() <{level = 10 : i32, message = "bqd,bkd->bqk"}> : () -> ()
    %cst_28 = arith.constant dense<0.000000e+00> : vector<2x8x8xf32>
    %75 = tpu.matmul %70, %72, %cst_28 {dimension_numbers = #tpu.dot_dimension_numbers<[2], [2], [1], [1], [0, 0, 0, 1, 1, 1], [0], [0]>} : vector<2x8x16xbf16>, vector<2x8x16xbf16>, vector<2x8x8xf32> -> vector<2x8x8xf32>
    "tpu.trace_stop"() : () -> ()
    %76 = arith.addf %75, %13 : vector<2x8x8xf32>
    %cst_29 = arith.constant dense<0xFF800000> : vector<2x8xf32>
    %77 = vector.multi_reduction <maximumf>, %76, %cst_29 [2] : vector<2x8x8xf32> to vector<2x8xf32>
    %78 = vector.shape_cast %77 : vector<2x8xf32> to vector<2x8x1xf32>
    %79 = vector.broadcast %78 : vector<2x8x1xf32> to vector<2x8x8xf32>
    %80 = arith.subf %76, %79 : vector<2x8x8xf32>
    %81 = math.exp %80 : vector<2x8x8xf32>
    %cst_30 = arith.constant dense<0.000000e+00> : vector<2x8xf32>
    %82 = vector.multi_reduction <add>, %81, %cst_30 [2] : vector<2x8x8xf32> to vector<2x8xf32>
    %83 = vector.shape_cast %82 : vector<2x8xf32> to vector<2x8x1xf32>
    %84 = tpu.reciprocal %83 {approx = true} : vector<2x8x1xf32> -> vector<2x8x1xf32>
    %85 = vector.broadcast %84 : vector<2x8x1xf32> to vector<2x8x8xf32>
    %86 = arith.mulf %81, %85 : vector<2x8x8xf32>
    %87 = arith.truncf %86 : vector<2x8x8xf32> to vector<2x8x8xbf16>
    "tpu.trace_start"() <{level = 10 : i32, message = "bqk,bkd->bqd"}> : () -> ()
    %cst_31 = arith.constant dense<0.000000e+00> : vector<2x8x16xf32>
    %88 = tpu.matmul %87, %74, %cst_31 {dimension_numbers = #tpu.dot_dimension_numbers<[2], [1], [1], [2], [0, 0, 0, 1, 1, 2], [0], [0]>} : vector<2x8x8xbf16>, vector<2x8x16xbf16>, vector<2x8x16xf32> -> vector<2x8x16xf32>
    "tpu.trace_stop"() : () -> ()
    %89 = tpu.concatenate %68, %88 in 2 : vector<2x8x16xf32>, vector<2x8x16xf32> -> vector<2x8x32xf32>
    %90 = vector.shape_cast %89 : vector<2x8x32xf32> to vector<16x32xf32>
    %91 = arith.truncf %90 : vector<16x32xf32> to vector<16x32xbf16>
    %c0_32 = arith.constant 0 : index
    %c0_33 = arith.constant 0 : index
    %c0_34 = arith.constant 0 : index
    %92 = vector.load %arg8[%c0_32, %c0_33, %c0_34] : memref<2x32x32xbf16, #tpu.memory_space<vmem>>, vector<1x32x32xbf16>
    %93 = vector.shape_cast %92 : vector<1x32x32xbf16> to vector<32x32xbf16>
    %cst_35 = arith.constant dense<0.000000e+00> : vector<16x32xf32>
    %94 = tpu.matmul %91, %93, %cst_35 {dimension_numbers = #tpu.dot_dimension_numbers<[1], [0], [0], [1], [0, 0, 1, 1], [], []>} : vector<16x32xbf16>, vector<32x32xbf16>, vector<16x32xf32> -> vector<16x32xf32>
    %c0_36 = arith.constant 0 : index
    %c0_37 = arith.constant 0 : index
    %c0_38 = arith.constant 0 : index
    %95 = vector.load %arg9[%c0_36, %c0_37, %c0_38] : memref<2x1x32xf32, #tpu.memory_space<vmem>>, vector<1x1x32xf32>
    %96 = vector.shape_cast %95 : vector<1x1x32xf32> to vector<1x32xf32>
    %97 = vector.broadcast %96 : vector<1x32xf32> to vector<16x32xf32>
    %98 = arith.addf %94, %97 : vector<16x32xf32>
    %99 = arith.addf %2, %98 : vector<16x32xf32>
    %c0_39 = arith.constant 0 : index
    %c0_40 = arith.constant 0 : index
    %c0_41 = arith.constant 0 : index
    %100 = vector.load %arg10[%c0_39, %c0_40, %c0_41] : memref<2x1x32xf32, #tpu.memory_space<vmem>>, vector<1x1x32xf32>
    %101 = vector.shape_cast %100 : vector<1x1x32xf32> to vector<1x32xf32>
    %c0_42 = arith.constant 0 : index
    %c0_43 = arith.constant 0 : index
    %c0_44 = arith.constant 0 : index
    %102 = vector.load %arg11[%c0_42, %c0_43, %c0_44] : memref<2x1x32xf32, #tpu.memory_space<vmem>>, vector<1x1x32xf32>
    %103 = vector.shape_cast %102 : vector<1x1x32xf32> to vector<1x32xf32>
    %cst_45 = arith.constant dense<0.000000e+00> : vector<16xf32>
    %104 = vector.multi_reduction <add>, %99, %cst_45 [1] : vector<16x32xf32> to vector<16xf32>
    %105 = vector.shape_cast %104 : vector<16xf32> to vector<16x1xf32>
    %cst_46 = arith.constant 3.200000e+01 : f32
    %106 = vector.broadcast %cst_46 : f32 to vector<16x1xf32>
    %107 = arith.divf %105, %106 : vector<16x1xf32>
    %108 = vector.broadcast %107 : vector<16x1xf32> to vector<16x32xf32>
    %109 = arith.subf %99, %108 : vector<16x32xf32>
    %110 = arith.mulf %109, %109 : vector<16x32xf32>
    %cst_47 = arith.constant dense<0.000000e+00> : vector<16xf32>
    %111 = vector.multi_reduction <add>, %110, %cst_47 [1] : vector<16x32xf32> to vector<16xf32>
    %112 = vector.shape_cast %111 : vector<16xf32> to vector<16x1xf32>
    %cst_48 = arith.constant 3.200000e+01 : f32
    %113 = vector.broadcast %cst_48 : f32 to vector<16x1xf32>
    %114 = arith.divf %112, %113 : vector<16x1xf32>
    %115 = vector.broadcast %107 : vector<16x1xf32> to vector<16x32xf32>
    %116 = arith.subf %99, %115 : vector<16x32xf32>
    %cst_49 = arith.constant 9.99999974E-6 : f32
    %117 = vector.broadcast %cst_49 : f32 to vector<16x1xf32>
    %118 = arith.addf %114, %117 : vector<16x1xf32>
    %119 = math.rsqrt %118 : vector<16x1xf32>
    %120 = vector.broadcast %119 : vector<16x1xf32> to vector<16x32xf32>
    %121 = arith.mulf %116, %120 : vector<16x32xf32>
    %122 = vector.broadcast %101 : vector<1x32xf32> to vector<16x32xf32>
    %123 = arith.mulf %121, %122 : vector<16x32xf32>
    %124 = vector.broadcast %103 : vector<1x32xf32> to vector<16x32xf32>
    %125 = arith.addf %123, %124 : vector<16x32xf32>
    %126 = arith.truncf %125 : vector<16x32xf32> to vector<16x32xbf16>
    %c0_50 = arith.constant 0 : index
    %c0_51 = arith.constant 0 : index
    %c0_52 = arith.constant 0 : index
    %127 = vector.load %arg12[%c0_50, %c0_51, %c0_52] : memref<2x32x64xbf16, #tpu.memory_space<vmem>>, vector<1x32x64xbf16>
    %128 = vector.shape_cast %127 : vector<1x32x64xbf16> to vector<32x64xbf16>
    %cst_53 = arith.constant dense<0.000000e+00> : vector<16x64xf32>
    %129 = tpu.matmul %126, %128, %cst_53 {dimension_numbers = #tpu.dot_dimension_numbers<[1], [0], [0], [1], [0, 0, 1, 1], [], []>} : vector<16x32xbf16>, vector<32x64xbf16>, vector<16x64xf32> -> vector<16x64xf32>
    %c0_54 = arith.constant 0 : index
    %c0_55 = arith.constant 0 : index
    %c0_56 = arith.constant 0 : index
    %130 = vector.load %arg13[%c0_54, %c0_55, %c0_56] : memref<2x1x64xf32, #tpu.memory_space<vmem>>, vector<1x1x64xf32>
    %131 = vector.shape_cast %130 : vector<1x1x64xf32> to vector<1x64xf32>
    %132 = vector.broadcast %131 : vector<1x64xf32> to vector<16x64xf32>
    %133 = arith.addf %129, %132 : vector<16x64xf32>
    %cst_57 = arith.constant 1.702000e+00 : f32
    %134 = vector.broadcast %cst_57 : f32 to vector<16x64xf32>
    %135 = arith.mulf %134, %133 : vector<16x64xf32>
    %136 = arith.negf %135 : vector<16x64xf32>
    %137 = math.exp %136 : vector<16x64xf32>
    %cst_58 = arith.constant 1.000000e+00 : f32
    %138 = vector.broadcast %cst_58 : f32 to vector<16x64xf32>
    %139 = arith.addf %138, %137 : vector<16x64xf32>
    %140 = arith.divf %138, %139 : vector<16x64xf32>
    %141 = arith.mulf %133, %140 : vector<16x64xf32>
    %142 = arith.truncf %141 : vector<16x64xf32> to vector<16x64xbf16>
    %c0_59 = arith.constant 0 : index
    %c0_60 = arith.constant 0 : index
    %c0_61 = arith.constant 0 : index
    %143 = vector.load %arg14[%c0_59, %c0_60, %c0_61] : memref<2x64x32xbf16, #tpu.memory_space<vmem>>, vector<1x64x32xbf16>
    %144 = vector.shape_cast %143 : vector<1x64x32xbf16> to vector<64x32xbf16>
    %cst_62 = arith.constant dense<0.000000e+00> : vector<16x32xf32>
    %145 = tpu.matmul %142, %144, %cst_62 {dimension_numbers = #tpu.dot_dimension_numbers<[1], [0], [0], [1], [0, 0, 1, 1], [], []>} : vector<16x64xbf16>, vector<64x32xbf16>, vector<16x32xf32> -> vector<16x32xf32>
    %c0_63 = arith.constant 0 : index
    %c0_64 = arith.constant 0 : index
    %c0_65 = arith.constant 0 : index
    %146 = vector.load %arg15[%c0_63, %c0_64, %c0_65] : memref<2x1x32xf32, #tpu.memory_space<vmem>>, vector<1x1x32xf32>
    %147 = vector.shape_cast %146 : vector<1x1x32xf32> to vector<1x32xf32>
    %148 = vector.broadcast %147 : vector<1x32xf32> to vector<16x32xf32>
    %149 = arith.addf %145, %148 : vector<16x32xf32>
    %150 = arith.addf %99, %149 : vector<16x32xf32>
    %c1 = arith.constant 1 : index
    %c0_66 = arith.constant 0 : index
    %c0_67 = arith.constant 0 : index
    %151 = vector.load %arg4[%c1, %c0_66, %c0_67] : memref<2x1x32xf32, #tpu.memory_space<vmem>>, vector<1x1x32xf32>
    %152 = vector.shape_cast %151 : vector<1x1x32xf32> to vector<1x32xf32>
    %c1_68 = arith.constant 1 : index
    %c0_69 = arith.constant 0 : index
    %c0_70 = arith.constant 0 : index
    %153 = vector.load %arg5[%c1_68, %c0_69, %c0_70] : memref<2x1x32xf32, #tpu.memory_space<vmem>>, vector<1x1x32xf32>
    %154 = vector.shape_cast %153 : vector<1x1x32xf32> to vector<1x32xf32>
    %cst_71 = arith.constant dense<0.000000e+00> : vector<16xf32>
    %155 = vector.multi_reduction <add>, %150, %cst_71 [1] : vector<16x32xf32> to vector<16xf32>
    %156 = vector.shape_cast %155 : vector<16xf32> to vector<16x1xf32>
    %cst_72 = arith.constant 3.200000e+01 : f32
    %157 = vector.broadcast %cst_72 : f32 to vector<16x1xf32>
    %158 = arith.divf %156, %157 : vector<16x1xf32>
    %159 = vector.broadcast %158 : vector<16x1xf32> to vector<16x32xf32>
    %160 = arith.subf %150, %159 : vector<16x32xf32>
    %161 = arith.mulf %160, %160 : vector<16x32xf32>
    %cst_73 = arith.constant dense<0.000000e+00> : vector<16xf32>
    %162 = vector.multi_reduction <add>, %161, %cst_73 [1] : vector<16x32xf32> to vector<16xf32>
    %163 = vector.shape_cast %162 : vector<16xf32> to vector<16x1xf32>
    %cst_74 = arith.constant 3.200000e+01 : f32
    %164 = vector.broadcast %cst_74 : f32 to vector<16x1xf32>
    %165 = arith.divf %163, %164 : vector<16x1xf32>
    %166 = vector.broadcast %158 : vector<16x1xf32> to vector<16x32xf32>
    %167 = arith.subf %150, %166 : vector<16x32xf32>
    %cst_75 = arith.constant 9.99999974E-6 : f32
    %168 = vector.broadcast %cst_75 : f32 to vector<16x1xf32>
    %169 = arith.addf %165, %168 : vector<16x1xf32>
    %170 = math.rsqrt %169 : vector<16x1xf32>
    %171 = vector.broadcast %170 : vector<16x1xf32> to vector<16x32xf32>
    %172 = arith.mulf %167, %171 : vector<16x32xf32>
    %173 = vector.broadcast %152 : vector<1x32xf32> to vector<16x32xf32>
    %174 = arith.mulf %172, %173 : vector<16x32xf32>
    %175 = vector.broadcast %154 : vector<1x32xf32> to vector<16x32xf32>
    %176 = arith.addf %174, %175 : vector<16x32xf32>
    %177 = arith.truncf %176 : vector<16x32xf32> to vector<16x32xbf16>
    %c1_76 = arith.constant 1 : index
    %c0_77 = arith.constant 0 : index
    %c0_78 = arith.constant 0 : index
    %178 = vector.load %arg6[%c1_76, %c0_77, %c0_78] : memref<2x32x96xbf16, #tpu.memory_space<vmem>>, vector<1x32x96xbf16>
    %179 = vector.shape_cast %178 : vector<1x32x96xbf16> to vector<32x96xbf16>
    %cst_79 = arith.constant dense<0.000000e+00> : vector<16x96xf32>
    %180 = tpu.matmul %177, %179, %cst_79 {dimension_numbers = #tpu.dot_dimension_numbers<[1], [0], [0], [1], [0, 0, 1, 1], [], []>} : vector<16x32xbf16>, vector<32x96xbf16>, vector<16x96xf32> -> vector<16x96xf32>
    %c1_80 = arith.constant 1 : index
    %c0_81 = arith.constant 0 : index
    %c0_82 = arith.constant 0 : index
    %181 = vector.load %arg7[%c1_80, %c0_81, %c0_82] : memref<2x1x96xf32, #tpu.memory_space<vmem>>, vector<1x1x96xf32>
    %182 = vector.shape_cast %181 : vector<1x1x96xf32> to vector<1x96xf32>
    %183 = vector.broadcast %182 : vector<1x96xf32> to vector<16x96xf32>
    %184 = arith.addf %180, %183 : vector<16x96xf32>
    %185 = arith.truncf %184 : vector<16x96xf32> to vector<16x96xbf16>
    %186 = vector.extract_strided_slice %185 {offsets = [0, 0], sizes = [16, 16], strides = [1, 1]} : vector<16x96xbf16> to vector<16x16xbf16>
    %187 = vector.shape_cast %186 : vector<16x16xbf16> to vector<2x8x16xbf16>
    %188 = vector.extract_strided_slice %185 {offsets = [0, 32], sizes = [16, 16], strides = [1, 1]} : vector<16x96xbf16> to vector<16x16xbf16>
    %189 = vector.shape_cast %188 : vector<16x16xbf16> to vector<2x8x16xbf16>
    %190 = vector.extract_strided_slice %185 {offsets = [0, 64], sizes = [16, 16], strides = [1, 1]} : vector<16x96xbf16> to vector<16x16xbf16>
    %191 = vector.shape_cast %190 : vector<16x16xbf16> to vector<2x8x16xbf16>
    "tpu.trace_start"() <{level = 10 : i32, message = "bqd,bkd->bqk"}> : () -> ()
    %cst_83 = arith.constant dense<0.000000e+00> : vector<2x8x8xf32>
    %192 = tpu.matmul %187, %189, %cst_83 {dimension_numbers = #tpu.dot_dimension_numbers<[2], [2], [1], [1], [0, 0, 0, 1, 1, 1], [0], [0]>} : vector<2x8x16xbf16>, vector<2x8x16xbf16>, vector<2x8x8xf32> -> vector<2x8x8xf32>
    "tpu.trace_stop"() : () -> ()
    %193 = arith.addf %192, %13 : vector<2x8x8xf32>
    %cst_84 = arith.constant dense<0xFF800000> : vector<2x8xf32>
    %194 = vector.multi_reduction <maximumf>, %193, %cst_84 [2] : vector<2x8x8xf32> to vector<2x8xf32>
    %195 = vector.shape_cast %194 : vector<2x8xf32> to vector<2x8x1xf32>
    %196 = vector.broadcast %195 : vector<2x8x1xf32> to vector<2x8x8xf32>
    %197 = arith.subf %193, %196 : vector<2x8x8xf32>
    %198 = math.exp %197 : vector<2x8x8xf32>
    %cst_85 = arith.constant dense<0.000000e+00> : vector<2x8xf32>
    %199 = vector.multi_reduction <add>, %198, %cst_85 [2] : vector<2x8x8xf32> to vector<2x8xf32>
    %200 = vector.shape_cast %199 : vector<2x8xf32> to vector<2x8x1xf32>
    %201 = tpu.reciprocal %200 {approx = true} : vector<2x8x1xf32> -> vector<2x8x1xf32>
    %202 = vector.broadcast %201 : vector<2x8x1xf32> to vector<2x8x8xf32>
    %203 = arith.mulf %198, %202 : vector<2x8x8xf32>
    %204 = arith.truncf %203 : vector<2x8x8xf32> to vector<2x8x8xbf16>
    "tpu.trace_start"() <{level = 10 : i32, message = "bqk,bkd->bqd"}> : () -> ()
    %cst_86 = arith.constant dense<0.000000e+00> : vector<2x8x16xf32>
    %205 = tpu.matmul %204, %191, %cst_86 {dimension_numbers = #tpu.dot_dimension_numbers<[2], [1], [1], [2], [0, 0, 0, 1, 1, 2], [0], [0]>} : vector<2x8x8xbf16>, vector<2x8x16xbf16>, vector<2x8x16xf32> -> vector<2x8x16xf32>
    "tpu.trace_stop"() : () -> ()
    %206 = vector.extract_strided_slice %185 {offsets = [0, 16], sizes = [16, 16], strides = [1, 1]} : vector<16x96xbf16> to vector<16x16xbf16>
    %207 = vector.shape_cast %206 : vector<16x16xbf16> to vector<2x8x16xbf16>
    %208 = vector.extract_strided_slice %185 {offsets = [0, 48], sizes = [16, 16], strides = [1, 1]} : vector<16x96xbf16> to vector<16x16xbf16>
    %209 = vector.shape_cast %208 : vector<16x16xbf16> to vector<2x8x16xbf16>
    %210 = vector.extract_strided_slice %185 {offsets = [0, 80], sizes = [16, 16], strides = [1, 1]} : vector<16x96xbf16> to vector<16x16xbf16>
    %211 = vector.shape_cast %210 : vector<16x16xbf16> to vector<2x8x16xbf16>
    "tpu.trace_start"() <{level = 10 : i32, message = "bqd,bkd->bqk"}> : () -> ()
    %cst_87 = arith.constant dense<0.000000e+00> : vector<2x8x8xf32>
    %212 = tpu.matmul %207, %209, %cst_87 {dimension_numbers = #tpu.dot_dimension_numbers<[2], [2], [1], [1], [0, 0, 0, 1, 1, 1], [0], [0]>} : vector<2x8x16xbf16>, vector<2x8x16xbf16>, vector<2x8x8xf32> -> vector<2x8x8xf32>
    "tpu.trace_stop"() : () -> ()
    %213 = arith.addf %212, %13 : vector<2x8x8xf32>
    %cst_88 = arith.constant dense<0xFF800000> : vector<2x8xf32>
    %214 = vector.multi_reduction <maximumf>, %213, %cst_88 [2] : vector<2x8x8xf32> to vector<2x8xf32>
    %215 = vector.shape_cast %214 : vector<2x8xf32> to vector<2x8x1xf32>
    %216 = vector.broadcast %215 : vector<2x8x1xf32> to vector<2x8x8xf32>
    %217 = arith.subf %213, %216 : vector<2x8x8xf32>
    %218 = math.exp %217 : vector<2x8x8xf32>
    %cst_89 = arith.constant dense<0.000000e+00> : vector<2x8xf32>
    %219 = vector.multi_reduction <add>, %218, %cst_89 [2] : vector<2x8x8xf32> to vector<2x8xf32>
    %220 = vector.shape_cast %219 : vector<2x8xf32> to vector<2x8x1xf32>
    %221 = tpu.reciprocal %220 {approx = true} : vector<2x8x1xf32> -> vector<2x8x1xf32>
    %222 = vector.broadcast %221 : vector<2x8x1xf32> to vector<2x8x8xf32>
    %223 = arith.mulf %218, %222 : vector<2x8x8xf32>
    %224 = arith.truncf %223 : vector<2x8x8xf32> to vector<2x8x8xbf16>
    "tpu.trace_start"() <{level = 10 : i32, message = "bqk,bkd->bqd"}> : () -> ()
    %cst_90 = arith.constant dense<0.000000e+00> : vector<2x8x16xf32>
    %225 = tpu.matmul %224, %211, %cst_90 {dimension_numbers = #tpu.dot_dimension_numbers<[2], [1], [1], [2], [0, 0, 0, 1, 1, 2], [0], [0]>} : vector<2x8x8xbf16>, vector<2x8x16xbf16>, vector<2x8x16xf32> -> vector<2x8x16xf32>
    "tpu.trace_stop"() : () -> ()
    %226 = tpu.concatenate %205, %225 in 2 : vector<2x8x16xf32>, vector<2x8x16xf32> -> vector<2x8x32xf32>
    %227 = vector.shape_cast %226 : vector<2x8x32xf32> to vector<16x32xf32>
    %228 = arith.truncf %227 : vector<16x32xf32> to vector<16x32xbf16>
    %c1_91 = arith.constant 1 : index
    %c0_92 = arith.constant 0 : index
    %c0_93 = arith.constant 0 : index
    %229 = vector.load %arg8[%c1_91, %c0_92, %c0_93] : memref<2x32x32xbf16, #tpu.memory_space<vmem>>, vector<1x32x32xbf16>
    %230 = vector.shape_cast %229 : vector<1x32x32xbf16> to vector<32x32xbf16>
    %cst_94 = arith.constant dense<0.000000e+00> : vector<16x32xf32>
    %231 = tpu.matmul %228, %230, %cst_94 {dimension_numbers = #tpu.dot_dimension_numbers<[1], [0], [0], [1], [0, 0, 1, 1], [], []>} : vector<16x32xbf16>, vector<32x32xbf16>, vector<16x32xf32> -> vector<16x32xf32>
    %c1_95 = arith.constant 1 : index
    %c0_96 = arith.constant 0 : index
    %c0_97 = arith.constant 0 : index
    %232 = vector.load %arg9[%c1_95, %c0_96, %c0_97] : memref<2x1x32xf32, #tpu.memory_space<vmem>>, vector<1x1x32xf32>
    %233 = vector.shape_cast %232 : vector<1x1x32xf32> to vector<1x32xf32>
    %234 = vector.broadcast %233 : vector<1x32xf32> to vector<16x32xf32>
    %235 = arith.addf %231, %234 : vector<16x32xf32>
    %236 = arith.addf %150, %235 : vector<16x32xf32>
    %c1_98 = arith.constant 1 : index
    %c0_99 = arith.constant 0 : index
    %c0_100 = arith.constant 0 : index
    %237 = vector.load %arg10[%c1_98, %c0_99, %c0_100] : memref<2x1x32xf32, #tpu.memory_space<vmem>>, vector<1x1x32xf32>
    %238 = vector.shape_cast %237 : vector<1x1x32xf32> to vector<1x32xf32>
    %c1_101 = arith.constant 1 : index
    %c0_102 = arith.constant 0 : index
    %c0_103 = arith.constant 0 : index
    %239 = vector.load %arg11[%c1_101, %c0_102, %c0_103] : memref<2x1x32xf32, #tpu.memory_space<vmem>>, vector<1x1x32xf32>
    %240 = vector.shape_cast %239 : vector<1x1x32xf32> to vector<1x32xf32>
    %cst_104 = arith.constant dense<0.000000e+00> : vector<16xf32>
    %241 = vector.multi_reduction <add>, %236, %cst_104 [1] : vector<16x32xf32> to vector<16xf32>
    %242 = vector.shape_cast %241 : vector<16xf32> to vector<16x1xf32>
    %cst_105 = arith.constant 3.200000e+01 : f32
    %243 = vector.broadcast %cst_105 : f32 to vector<16x1xf32>
    %244 = arith.divf %242, %243 : vector<16x1xf32>
    %245 = vector.broadcast %244 : vector<16x1xf32> to vector<16x32xf32>
    %246 = arith.subf %236, %245 : vector<16x32xf32>
    %247 = arith.mulf %246, %246 : vector<16x32xf32>
    %cst_106 = arith.constant dense<0.000000e+00> : vector<16xf32>
    %248 = vector.multi_reduction <add>, %247, %cst_106 [1] : vector<16x32xf32> to vector<16xf32>
    %249 = vector.shape_cast %248 : vector<16xf32> to vector<16x1xf32>
    %cst_107 = arith.constant 3.200000e+01 : f32
    %250 = vector.broadcast %cst_107 : f32 to vector<16x1xf32>
    %251 = arith.divf %249, %250 : vector<16x1xf32>
    %252 = vector.broadcast %244 : vector<16x1xf32> to vector<16x32xf32>
    %253 = arith.subf %236, %252 : vector<16x32xf32>
    %cst_108 = arith.constant 9.99999974E-6 : f32
    %254 = vector.broadcast %cst_108 : f32 to vector<16x1xf32>
    %255 = arith.addf %251, %254 : vector<16x1xf32>
    %256 = math.rsqrt %255 : vector<16x1xf32>
    %257 = vector.broadcast %256 : vector<16x1xf32> to vector<16x32xf32>
    %258 = arith.mulf %253, %257 : vector<16x32xf32>
    %259 = vector.broadcast %238 : vector<1x32xf32> to vector<16x32xf32>
    %260 = arith.mulf %258, %259 : vector<16x32xf32>
    %261 = vector.broadcast %240 : vector<1x32xf32> to vector<16x32xf32>
    %262 = arith.addf %260, %261 : vector<16x32xf32>
    %263 = arith.truncf %262 : vector<16x32xf32> to vector<16x32xbf16>
    %c1_109 = arith.constant 1 : index
    %c0_110 = arith.constant 0 : index
    %c0_111 = arith.constant 0 : index
    %264 = vector.load %arg12[%c1_109, %c0_110, %c0_111] : memref<2x32x64xbf16, #tpu.memory_space<vmem>>, vector<1x32x64xbf16>
    %265 = vector.shape_cast %264 : vector<1x32x64xbf16> to vector<32x64xbf16>
    %cst_112 = arith.constant dense<0.000000e+00> : vector<16x64xf32>
    %266 = tpu.matmul %263, %265, %cst_112 {dimension_numbers = #tpu.dot_dimension_numbers<[1], [0], [0], [1], [0, 0, 1, 1], [], []>} : vector<16x32xbf16>, vector<32x64xbf16>, vector<16x64xf32> -> vector<16x64xf32>
    %c1_113 = arith.constant 1 : index
    %c0_114 = arith.constant 0 : index
    %c0_115 = arith.constant 0 : index
    %267 = vector.load %arg13[%c1_113, %c0_114, %c0_115] : memref<2x1x64xf32, #tpu.memory_space<vmem>>, vector<1x1x64xf32>
    %268 = vector.shape_cast %267 : vector<1x1x64xf32> to vector<1x64xf32>
    %269 = vector.broadcast %268 : vector<1x64xf32> to vector<16x64xf32>
    %270 = arith.addf %266, %269 : vector<16x64xf32>
    %cst_116 = arith.constant 1.702000e+00 : f32
    %271 = vector.broadcast %cst_116 : f32 to vector<16x64xf32>
    %272 = arith.mulf %271, %270 : vector<16x64xf32>
    %273 = arith.negf %272 : vector<16x64xf32>
    %274 = math.exp %273 : vector<16x64xf32>
    %cst_117 = arith.constant 1.000000e+00 : f32
    %275 = vector.broadcast %cst_117 : f32 to vector<16x64xf32>
    %276 = arith.addf %275, %274 : vector<16x64xf32>
    %277 = arith.divf %275, %276 : vector<16x64xf32>
    %278 = arith.mulf %270, %277 : vector<16x64xf32>
    %279 = arith.truncf %278 : vector<16x64xf32> to vector<16x64xbf16>
    %c1_118 = arith.constant 1 : index
    %c0_119 = arith.constant 0 : index
    %c0_120 = arith.constant 0 : index
    %280 = vector.load %arg14[%c1_118, %c0_119, %c0_120] : memref<2x64x32xbf16, #tpu.memory_space<vmem>>, vector<1x64x32xbf16>
    %281 = vector.shape_cast %280 : vector<1x64x32xbf16> to vector<64x32xbf16>
    %cst_121 = arith.constant dense<0.000000e+00> : vector<16x32xf32>
    %282 = tpu.matmul %279, %281, %cst_121 {dimension_numbers = #tpu.dot_dimension_numbers<[1], [0], [0], [1], [0, 0, 1, 1], [], []>} : vector<16x64xbf16>, vector<64x32xbf16>, vector<16x32xf32> -> vector<16x32xf32>
    %c1_122 = arith.constant 1 : index
    %c0_123 = arith.constant 0 : index
    %c0_124 = arith.constant 0 : index
    %283 = vector.load %arg15[%c1_122, %c0_123, %c0_124] : memref<2x1x32xf32, #tpu.memory_space<vmem>>, vector<1x1x32xf32>
    %284 = vector.shape_cast %283 : vector<1x1x32xf32> to vector<1x32xf32>
    %285 = vector.broadcast %284 : vector<1x32xf32> to vector<16x32xf32>
    %286 = arith.addf %282, %285 : vector<16x32xf32>
    %287 = arith.addf %236, %286 : vector<16x32xf32>
    %c0_125 = arith.constant 0 : index
    %c0_126 = arith.constant 0 : index
    %288 = vector.load %arg20[%c0_125, %c0_126] : memref<16x32xf32, #tpu.memory_space<vmem>>, vector<16x32xf32>
    tpu.vector_store %arg20[%c0_125, %c0_126], %287 {strides = array<i32>} : memref<16x32xf32, #tpu.memory_space<vmem>>, vector<16x32xf32>,
    %c2_i32 = arith.constant 2 : i32
    %289 = arith.muli %arg0, %c2_i32 : i32
    %c0_i32 = arith.constant 0 : i32
    %290 = arith.addi %289, %c0_i32 : i32
    %291 = arith.index_cast %290 : i32 to index
    %292 = memref.load %arg1[%291] : memref<2xi32, #tpu.memory_space<smem>>
    %c0_i32_127 = arith.constant 0 : i32
    %293 = arith.addi %c0_i32_127, %292 : i32
    %294 = arith.index_cast %293 : i32 to index
    %c0_128 = arith.constant 0 : index
    %295 = vector.load %arg20[%294, %c0_128] : memref<16x32xf32, #tpu.memory_space<vmem>>, vector<1x32xf32>
    %c1_i32 = arith.constant 1 : i32
    %296 = arith.addi %289, %c1_i32 : i32
    %297 = arith.index_cast %296 : i32 to index
    %298 = memref.load %arg1[%297] : memref<2xi32, #tpu.memory_space<smem>>
    %c8_i32 = arith.constant 8 : i32
    %299 = arith.addi %c8_i32, %298 : i32
    %300 = arith.index_cast %299 : i32 to index
    %c0_129 = arith.constant 0 : index
    %301 = vector.load %arg20[%300, %c0_129] : memref<16x32xf32, #tpu.memory_space<vmem>>, vector<1x32xf32>
    %302 = tpu.concatenate %295, %301 in 0 : vector<1x32xf32>, vector<1x32xf32> -> vector<2x32xf32>
    %c0_130 = arith.constant 0 : index
    %c0_131 = arith.constant 0 : index
    %303 = vector.load %arg16[%c0_130, %c0_131] : memref<1x32xf32, #tpu.memory_space<vmem>>, vector<1x32xf32>
    %c0_132 = arith.constant 0 : index
    %c0_133 = arith.constant 0 : index
    %304 = vector.load %arg17[%c0_132, %c0_133] : memref<1x32xf32, #tpu.memory_space<vmem>>, vector<1x32xf32>
    %cst_134 = arith.constant dense<0.000000e+00> : vector<2xf32>
    %305 = vector.multi_reduction <add>, %302, %cst_134 [1] : vector<2x32xf32> to vector<2xf32>
    %306 = vector.shape_cast %305 : vector<2xf32> to vector<2x1xf32>
    %cst_135 = arith.constant 3.200000e+01 : f32
    %307 = vector.broadcast %cst_135 : f32 to vector<2x1xf32>
    %308 = arith.divf %306, %307 : vector<2x1xf32>
    %309 = vector.broadcast %308 : vector<2x1xf32> to vector<2x32xf32>
    %310 = arith.subf %302, %309 : vector<2x32xf32>
    %311 = arith.mulf %310, %310 : vector<2x32xf32>
    %cst_136 = arith.constant dense<0.000000e+00> : vector<2xf32>
    %312 = vector.multi_reduction <add>, %311, %cst_136 [1] : vector<2x32xf32> to vector<2xf32>
    %313 = vector.shape_cast %312 : vector<2xf32> to vector<2x1xf32>
    %cst_137 = arith.constant 3.200000e+01 : f32
    %314 = vector.broadcast %cst_137 : f32 to vector<2x1xf32>
    %315 = arith.divf %313, %314 : vector<2x1xf32>
    %316 = vector.broadcast %308 : vector<2x1xf32> to vector<2x32xf32>
    %317 = arith.subf %302, %316 : vector<2x32xf32>
    %cst_138 = arith.constant 9.99999974E-6 : f32
    %318 = vector.broadcast %cst_138 : f32 to vector<2x1xf32>
    %319 = arith.addf %315, %318 : vector<2x1xf32>
    %320 = math.rsqrt %319 : vector<2x1xf32>
    %321 = vector.broadcast %320 : vector<2x1xf32> to vector<2x32xf32>
    %322 = arith.mulf %317, %321 : vector<2x32xf32>
    %323 = vector.broadcast %303 : vector<1x32xf32> to vector<2x32xf32>
    %324 = arith.mulf %322, %323 : vector<2x32xf32>
    %325 = vector.broadcast %304 : vector<1x32xf32> to vector<2x32xf32>
    %326 = arith.addf %324, %325 : vector<2x32xf32>
    %327 = arith.truncf %326 : vector<2x32xf32> to vector<2x32xbf16>
    %c0_139 = arith.constant 0 : index
    %c0_140 = arith.constant 0 : index
    %328 = vector.load %arg18[%c0_139, %c0_140] : memref<32x128xbf16, #tpu.memory_space<vmem>>, vector<32x128xbf16>
    %cst_141 = arith.constant dense<0.000000e+00> : vector<2x128xf32>
    %329 = tpu.matmul %327, %328, %cst_141 {dimension_numbers = #tpu.dot_dimension_numbers<[1], [0], [0], [1], [0, 0, 1, 1], [], []>} : vector<2x32xbf16>, vector<32x128xbf16>, vector<2x128xf32> -> vector<2x128xf32>
    %c0_142 = arith.constant 0 : index
    %c0_143 = arith.constant 0 : index
    %330 = vector.load %arg19[%c0_142, %c0_143] : memref<2x128xf32, #tpu.memory_space<vmem>>, vector<2x128xf32>
    tpu.vector_store %arg19[%c0_142, %c0_143], %329 {strides = array<i32>} : memref<2x128xf32, #tpu.memory_space<vmem>>, vector<2x128xf32>,
    return
  }
  func.func @transform_0(%arg0: i32, %arg1: memref<2xi32, #tpu.memory_space<smem>>) -> (i32, i32, i32) {
    %c0_i32 = arith.constant 0 : i32
    %c0_i32_0 = arith.constant 0 : i32
    %c0_i32_1 = arith.constant 0 : i32
    return %arg0, %c0_i32, %c0_i32_0 : i32, i32, i32
  }
  func.func @transform_1(%arg0: i32, %arg1: memref<2xi32, #tpu.memory_space<smem>>) -> (i32, i32, i32) {
    %c0_i32 = arith.constant 0 : i32
    %c0_i32_0 = arith.constant 0 : i32
    %c0_i32_1 = arith.constant 0 : i32
    return %arg0, %c0_i32, %c0_i32_0 : i32, i32, i32
  }
  func.func @transform_2(%arg0: i32, %arg1: memref<2xi32, #tpu.memory_space<smem>>) -> (i32, i32, i32) {
    %c0_i32 = arith.constant 0 : i32
    %c0_i32_0 = arith.constant 0 : i32
    %c0_i32_1 = arith.constant 0 : i32
    %c0_i32_2 = arith.constant 0 : i32
    return %c0_i32, %c0_i32_0, %c0_i32_1 : i32, i32, i32
  }
  func.func @transform_3(%arg0: i32, %arg1: memref<2xi32, #tpu.memory_space<smem>>) -> (i32, i32, i32) {
    %c0_i32 = arith.constant 0 : i32
    %c0_i32_0 = arith.constant 0 : i32
    %c0_i32_1 = arith.constant 0 : i32
    %c0_i32_2 = arith.constant 0 : i32
    return %c0_i32, %c0_i32_0, %c0_i32_1 : i32, i32, i32
  }
  func.func @transform_4(%arg0: i32, %arg1: memref<2xi32, #tpu.memory_space<smem>>) -> (i32, i32, i32) {
    %c0_i32 = arith.constant 0 : i32
    %c0_i32_0 = arith.constant 0 : i32
    %c0_i32_1 = arith.constant 0 : i32
    %c0_i32_2 = arith.constant 0 : i32
    return %c0_i32, %c0_i32_0, %c0_i32_1 : i32, i32, i32
  }
  func.func @transform_5(%arg0: i32, %arg1: memref<2xi32, #tpu.memory_space<smem>>) -> (i32, i32, i32) {
    %c0_i32 = arith.constant 0 : i32
    %c0_i32_0 = arith.constant 0 : i32
    %c0_i32_1 = arith.constant 0 : i32
    %c0_i32_2 = arith.constant 0 : i32
    return %c0_i32, %c0_i32_0, %c0_i32_1 : i32, i32, i32
  }
  func.func @transform_6(%arg0: i32, %arg1: memref<2xi32, #tpu.memory_space<smem>>) -> (i32, i32, i32) {
    %c0_i32 = arith.constant 0 : i32
    %c0_i32_0 = arith.constant 0 : i32
    %c0_i32_1 = arith.constant 0 : i32
    %c0_i32_2 = arith.constant 0 : i32
    return %c0_i32, %c0_i32_0, %c0_i32_1 : i32, i32, i32
  }
  func.func @transform_7(%arg0: i32, %arg1: memref<2xi32, #tpu.memory_space<smem>>) -> (i32, i32, i32) {
    %c0_i32 = arith.constant 0 : i32
    %c0_i32_0 = arith.constant 0 : i32
    %c0_i32_1 = arith.constant 0 : i32
    %c0_i32_2 = arith.constant 0 : i32
    return %c0_i32, %c0_i32_0, %c0_i32_1 : i32, i32, i32
  }
  func.func @transform_8(%arg0: i32, %arg1: memref<2xi32, #tpu.memory_space<smem>>) -> (i32, i32, i32) {
    %c0_i32 = arith.constant 0 : i32
    %c0_i32_0 = arith.constant 0 : i32
    %c0_i32_1 = arith.constant 0 : i32
    %c0_i32_2 = arith.constant 0 : i32
    return %c0_i32, %c0_i32_0, %c0_i32_1 : i32, i32, i32
  }
  func.func @transform_9(%arg0: i32, %arg1: memref<2xi32, #tpu.memory_space<smem>>) -> (i32, i32, i32) {
    %c0_i32 = arith.constant 0 : i32
    %c0_i32_0 = arith.constant 0 : i32
    %c0_i32_1 = arith.constant 0 : i32
    %c0_i32_2 = arith.constant 0 : i32
    return %c0_i32, %c0_i32_0, %c0_i32_1 : i32, i32, i32
  }
  func.func @transform_10(%arg0: i32, %arg1: memref<2xi32, #tpu.memory_space<smem>>) -> (i32, i32, i32) {
    %c0_i32 = arith.constant 0 : i32
    %c0_i32_0 = arith.constant 0 : i32
    %c0_i32_1 = arith.constant 0 : i32
    %c0_i32_2 = arith.constant 0 : i32
    return %c0_i32, %c0_i32_0, %c0_i32_1 : i32, i32, i32
  }
  func.func @transform_11(%arg0: i32, %arg1: memref<2xi32, #tpu.memory_space<smem>>) -> (i32, i32, i32) {
    %c0_i32 = arith.constant 0 : i32
    %c0_i32_0 = arith.constant 0 : i32
    %c0_i32_1 = arith.constant 0 : i32
    %c0_i32_2 = arith.constant 0 : i32
    return %c0_i32, %c0_i32_0, %c0_i32_1 : i32, i32, i32
  }
  func.func @transform_12(%arg0: i32, %arg1: memref<2xi32, #tpu.memory_space<smem>>) -> (i32, i32, i32) {
    %c0_i32 = arith.constant 0 : i32
    %c0_i32_0 = arith.constant 0 : i32
    %c0_i32_1 = arith.constant 0 : i32
    %c0_i32_2 = arith.constant 0 : i32
    return %c0_i32, %c0_i32_0, %c0_i32_1 : i32, i32, i32
  }
  func.func @transform_13(%arg0: i32, %arg1: memref<2xi32, #tpu.memory_space<smem>>) -> (i32, i32, i32) {
    %c0_i32 = arith.constant 0 : i32
    %c0_i32_0 = arith.constant 0 : i32
    %c0_i32_1 = arith.constant 0 : i32
    %c0_i32_2 = arith.constant 0 : i32
    return %c0_i32, %c0_i32_0, %c0_i32_1 : i32, i32, i32
  }
  func.func @transform_14(%arg0: i32, %arg1: memref<2xi32, #tpu.memory_space<smem>>) -> (i32, i32) {
    %c0_i32 = arith.constant 0 : i32
    %c0_i32_0 = arith.constant 0 : i32
    %c0_i32_1 = arith.constant 0 : i32
    return %c0_i32, %c0_i32_0 : i32, i32
  }
  func.func @transform_15(%arg0: i32, %arg1: memref<2xi32, #tpu.memory_space<smem>>) -> (i32, i32) {
    %c0_i32 = arith.constant 0 : i32
    %c0_i32_0 = arith.constant 0 : i32
    %c0_i32_1 = arith.constant 0 : i32
    return %c0_i32, %c0_i32_0 : i32, i32
  }
  func.func @transform_16(%arg0: i32, %arg1: memref<2xi32, #tpu.memory_space<smem>>) -> (i32, i32) {
    %c0_i32 = arith.constant 0 : i32
    %c0_i32_0 = arith.constant 0 : i32
    %c0_i32_1 = arith.constant 0 : i32
    return %c0_i32, %c0_i32_0 : i32, i32
  }
  func.func @transform_17(%arg0: i32, %arg1: memref<2xi32, #tpu.memory_space<smem>>) -> (i32, i32) {
    %c0_i32 = arith.constant 0 : i32
    %c0_i32_0 = arith.constant 0 : i32
    return %arg0, %c0_i32 : i32, i32
  }
}

</mosaic_0001>

<bundles_post_ra>
// kernel: _lambda_.3
= control target key start
LH: loop header
LB: loop body
LE: loop exit
PB: predicated region body
PF: predicated region fallthrough
CT: control target
= control target key end

     0   :  { %s2951_s0 = inlined_call_operand.vmem [shape: s32[2], index: 0, kind: input, shape index: {}]   ;;  %s2952_s1 = inlined_call_operand.vmem [shape: bf16[2,8,32], index: 1, kind: input, shape index: {}]   ;;  %s2953_s2 = inlined_call_operand.vmem [shape: f32[2,1,8], index: 2, kind: input, shape index: {}]   ;;  %s2954_s3 = inlined_call_operand.vmem [shape: f32[2,1,32], index: 3, kind: input, shape index: {}, may-alias: {3,9}]   ;;  %s2955_s4 = inlined_call_operand.vmem [shape: f32[2,1,32], index: 4, kind: input, shape index: {}, may-alias: {4,8,10,14}]   ;;  %s2956_s5 = inlined_call_operand.vmem [shape: bf16[2,32,96], index: 5, kind: input, shape index: {}]   ;;  %s2957_s6 = inlined_call_operand.vmem [shape: f32[2,1,96], index: 6, kind: input, shape index: {}]   ;;  %s2958_s7 = inlined_call_operand.vmem [shape: bf16[2,32,32], index: 7, kind: input, shape index: {}]   ;;  %s2959_s8 = inlined_call_operand.vmem [shape: f32[2,1,32], index: 8, kind: input, shape index: {}, may-alias: {4,8,10,14}]   ;;  %s2960_s9 = inlined_call_operand.vmem [shape: f32[2,1,32], index: 9, kind: input, shape index: {}, may-alias: {3,9}]   ;;  %s2961_s10 = inlined_call_operand.vmem [shape: f32[2,1,32], index: 10, kind: input, shape index: {}, may-alias: {4,8,10,14}]   ;;  %s2962_s11 = inlined_call_operand.vmem [shape: bf16[2,32,64], index: 11, kind: input, shape index: {}]   ;;  %s2963_s12 = inlined_call_operand.vmem [shape: f32[2,1,64], index: 12, kind: input, shape index: {}]   ;;  %s2964_s13 = inlined_call_operand.vmem [shape: bf16[2,64,32], index: 13, kind: input, shape index: {}]   ;;  %s2965_s14 = inlined_call_operand.vmem [shape: f32[2,1,32], index: 14, kind: input, shape index: {}, may-alias: {4,8,10,14}]   ;;  %s2966_s15 = inlined_call_operand.vmem [shape: f32[1,32], index: 15, kind: input, shape index: {}]   ;;  %s2967_s16 = inlined_call_operand.vmem [shape: f32[1,32], index: 16, kind: input, shape index: {}]   ;;  %s2968_s17 = inlined_call_operand.vmem [shape: bf16[32,128], index: 17, kind: input, shape index: {}]   ;;  %s2969_s18 = inlined_call_operand.hbm [shape: f32[2,128], index: 18, kind: output, shape index: {}]  }
   0x1   :  { %2972 = sst [smem:[#allocation9_spill]] %s2951_s0 }
   0x2   :  { %2973 = sst [smem:[#allocation10_spill]] %s2952_s1 }
   0x3   :  { %2974 = sst [smem:[#allocation11_spill]] %s2953_s2 }
   0x4   :  { %2975 = sst [smem:[#allocation12_spill]] %s2963_s12 }
   0x5   :  { %s2976_s29 = sld [smem:[#allocation9_spill]] }
   0xb   :  { %s23_s12 = sshll.u32 %s2976_s29, 4  ;;  %s24_s12 = int_to_ptr.vmem [resolvable:$true] %s23_s12 }
   0xc   :  { %s2389_s30 = scalar_lea.vmem %s24_s12, 16  ;;  %p2394_p1 = scmp.lt.s32.totalorder %s24_s12, %s24_s12 }
   0xd   :  { %p2390_p0 = scmp.ne.s32.totalorder %s24_s12, %s2389_s30  ;;  %p2395_p2 = scmp.lt.s32.totalorder %s2389_s30, %s2389_s30 }
   0xf   :  { %p2396_p3 = por %p2395_p2, %p2394_p1 }
  0x11   :  { %p2397_p4 = pnand %p2396_p3, %p2390_p0 }
  0x13   :  { %2400 = shalt.err (!%p2397_p4)  }
  0x14   :  { %s2425_s0 = smov [#allocation4]  }
  0x15   :  { %26 = dma.vmem_to_smem %s24_s12, 16, %s2425_s0, [#allocation3] }
  0x16   :  { %2421 = dma.done.wait [#allocation3], 16 }
  0x17   :  { %2422 = vsyncadd [#allocation3], 4294967280 }
  0x18   :  { %28 = sfence }
  0x19   :  { %s2977_s20 = sld [smem:[#allocation10_spill]]  ;;  %vm93_vm0 = vcmask 261120  }
  0x1f   :  { %v2039_v0 = vld [vmem:[%s2977_s20] sm:$0xff]  }
  0x20   :  { %v2536_v1 = vunpack.c.l.bf16 %v2039_v0  ;;  %v2538_v2 = vunpack.c.h.bf16 %v2039_v0 }
  0x22   :  { %v94_v3 = vsel %vm93_vm0, %v2536_v1, 0.0  ;;  %v97_v4 = vsel %vm93_vm0, %v2538_v2, 0.0 }
  0x23   :  { %95 = vadd.xlane.f32.xlu0 %v94_v3 }
  0x27   :  { %98 = vadd.xlane.f32.xlu0 %v97_v4 }
  0x28   :  { %29 = vsyncpa [#allocation6], 0  ;;  %v2301_v15 = vld [vmem:[%s2956_s5 + $0x8] sm:$0xff]   ;;  %v2426_v16 = vmov 0.0   ;;  %vm2427_vm1 = vmmov 0   ;;  %v2302_v17 = vld [vmem:[%s2956_s5] sm:$0xff]   ;;  %v69_v48 = vlaneseq }
  0x29   :  { %2105 = vmatprep.subr.bf16.mxu0 %v2426_v16  ;;  %2109 = vmatprep.mubr.msk.bf16.mxu0 %vm2427_vm1, %v2426_v16  ;;  %v1931_v26 = vld [vmem:[%s2954_s3] ss:$0 sm:$0xff]  ;;  %s2428_s29 = smov 96   ;;  %vm213_vm2 = vcmask 130048   ;;  %s2978_s19 = sld [smem:[#allocation11_spill]]  ;;  %vm308_vm4 = vcmask 64512  }
  0x2a   :  { %2106 = vmatpush3.bf16.msra.mxu0 %v2301_v15  ;;  %2113 = vmatprep.subr.bf16.mxu1 %v2426_v16  ;;  %v1932_v30 = vld [vmem:[%s2955_s4] ss:$0 sm:$0xff]  ;;  %v70_v49 = vshrl.u32 %v69_v48, 7  ;;  %v72_v50 = vand.u32 127, %v69_v48  ;;  %s2429_s12 = smov 64   ;;  %s2430_s21 = smov 80  }
  0x2b   :  { %2107 = vmatprep.subr.bf16.mxu0 %v2426_v16  ;;  %2115 = vmatprep.mubr.msk.bf16.mxu1 %vm2427_vm1, %v2426_v16  ;;  %v1933_v35 = vld [vmem:[%s2957_s6] ss:$0 sm:$0xff]  ;;  %vm338_vm5 = vcmask 1043456   ;;  %s2431_s22 = smov 112   ;;  %s2432_s2 = smov 48   ;;  %vm898_vm6 = vcmask 523264  }
  0x2c   :  { %vm73_vm3 = vcmp.gt.s32.totalorder %v72_v50, %v70_v49  ;;  %s2433_s27 = smov 16   ;;  %s2979_s28 = sld [smem:[#allocation12_spill]]  ;;  %vm1819_vm7 = vcmask 1040384   ;;  %vm1823_vm8 = vcmask 254976  }
  0x2d   :  { %v74_v51 = vsel %vm73_vm3, -1e+09, %v2426_v16 }
  0x2e   :  { %2108 = vmatpush3.bf16.msra.mxu0 %v2302_v17 }
  0x2f   :  { %2119 = vmatprep.subr.bf16.mxu0 %v2426_v16  ;;  %v1929_v52 = vld [vmem:[%s2978_s19] ss:$0 sm:$0xff]  ;;  %v1930_v54 = vld [vmem:[%s2978_s19 + $0x1] ss:$0 sm:$0xff] }
  0x30   :  { %v2598_v53 = vadd.f32 %v1929_v52, %v74_v51  ;;  %v2604_v57 = vadd.f32 %v1930_v54, %v74_v51 }
  0xac   :  { %v96_v5 = vpop.xlane.xlu0 %95 }
  0xad   :  { %v101_v6 = vmul.f32 0.03125, %v96_v5 }
  0xaf   :  { %v103_v7 = vsub.f32 %v2536_v1, %v101_v6 }
  0xb0   :  { %v99_v8 = vpop.xlane.xlu0 %98 }
  0xb1   :  { %v102_v9 = vmul.f32 0.03125, %v99_v8  ;;  %v105_v10 = vmul.f32 %v103_v7, %v103_v7 }
  0xb3   :  { %v104_v11 = vsub.f32 %v2538_v2, %v102_v9  ;;  %v107_v12 = vsel %vm93_vm0, %v105_v10, 0.0 }
  0xb4   :  { %108 = vadd.xlane.f32.xlu1 %v107_v12 }
  0xb5   :  { %v106_v13 = vmul.f32 %v104_v11, %v104_v11 }
  0xb7   :  { %v110_v14 = vsel %vm93_vm0, %v106_v13, 0.0 }
  0xb8   :  { %111 = vadd.xlane.f32.xlu1 %v110_v14 }
 0x13d   :  { %v109_v18 = vpop.xlane.xlu1 %108 }
 0x13e   :  { %v113_v19 = vmul.f32 0.03125, %v109_v18 }
 0x140   :  { %v115_v20 = vadd.f32 1e-05, %v113_v19 }
 0x141   :  { %v112_v21 = vpop.xlane.xlu1 %111 }
 0x142   :  { %2323 = vrsqrt.f32 %v115_v20  ;;  %v114_v22 = vmul.f32 0.03125, %v112_v21 }
 0x144   :  { %v116_v23 = vadd.f32 1e-05, %v114_v22 }
 0x146   :  { %2325 = vrsqrt.f32 %v116_v23 }
 0x14f   :  { %v2324_v24 = vpop.eup %2323 }
 0x150   :  { %v119_v25 = vmul.f32 %v2324_v24, %v103_v7 }
 0x152   :  { %v127_v29 = vmul.f32 %v1931_v26, %v119_v25 }
 0x153   :  { %v2326_v27 = vpop.eup %2325 }
 0x154   :  { %v120_v28 = vmul.f32 %v2326_v27, %v104_v11  ;;  %v135_v32 = vadd.f32 %v1932_v30, %v127_v29 }
 0x156   :  { %v128_v31 = vmul.f32 %v1931_v26, %v120_v28 }
 0x158   :  { %v136_v33 = vadd.f32 %v1932_v30, %v128_v31 }
 0x15a   :  { %v137_v34 = vpack.c.bf16 %v136_v33, %v135_v32 }
 0x15c   :  { %2110 = vmatmul.mubr.msk.bf16.vlgmr.msra.gmra.mxu0 %vm93_vm0, %v137_v34 }
 0x15d   :  { %2121 = vmatprep.mubr.msk.bf16.mxu0 %vm2427_vm1, %v2426_v16 }
 0x21c   :  { %v198_v36 = vpop.f32.mrf.mxu0 }
 0x21d   :  { %v199_v37 = vadd.f32 %v1933_v35, %v198_v36 }
 0x21e   :  { %v2111_v38 = vpop.f32.mrf.mxu0 }
 0x21f   :  { %v2574_v39 = vpack.c.bf16 %v199_v37, %v199_v37 }
 0x220   :  { %v201_v40 = vpop.f32.mrf.mxu0 }
 0x221   :  { %v202_v41 = vadd.f32 %v1933_v35, %v201_v40  ;;  %211 = vrot.lane.b32.xlu0 %v2574_v39, %s2428_s29 }
 0x222   :  { %v2112_v42 = vpop.f32.mrf.mxu0 }
 0x223   :  { %v2578_v43 = vpack.c.bf16 %v202_v41, %v202_v41 }
 0x225   :  { %260 = vrot.lane.b32.xlu1 %v2578_v43, %s2428_s29 }
 0x293   :  { %v212_v44 = vpop.permute.xlu0 %211 }
 0x294   :  { %v218_v45 = vsel %vm213_vm2, %v212_v44, 0 }
 0x295   :  { %2114 = vmatpush3.bf16.xpose.msra.mxu1 %v218_v45 }
 0x296   :  { %2125 = vmatprep.subr.bf16.mxu1 %v2426_v16 }
 0x297   :  { %v261_v46 = vpop.permute.xlu1 %260 }
 0x298   :  { %v266_v47 = vsel %vm213_vm2, %v261_v46, 0 }
 0x299   :  { %2120 = vmatpush3.bf16.xpose.msra.mxu0 %v266_v47 }
 0x29a   :  { %2131 = vmatprep.subr.bf16.mxu0 %v2426_v16 }
 0x29c   :  { %2116 = vmatmul.mubr.msk.bf16.vlgmr.msra.gmra.mxu1 %vm213_vm2, %v2574_v39 }
 0x29d   :  { %2127 = vmatprep.mubr.msk.bf16.mxu1 %vm2427_vm1, %v2426_v16 }
 0x2a0   :  { %2122 = vmatmul.mubr.msk.bf16.vlgmr.msra.gmra.mxu0 %vm213_vm2, %v2578_v43 }
 0x2a1   :  { %2133 = vmatprep.mubr.msk.bf16.mxu0 %vm2427_vm1, %v2426_v16 }
 0x35c   :  { %v254_v55 = vpop.f32.mrf.mxu1 }
 0x35d   :  { %v255_v56 = vadd.f32 %v254_v55, %v2598_v53 }
 0x35e   :  { %v2117_v58 = vpop.f32.mrf.mxu1 }
 0x35f   :  { %v309_v59 = vsel %vm308_vm4, %v255_v56, -inf }
 0x360   :  { %v257_v60 = vpop.f32.mrf.mxu1  ;;  %310 = vmax.xlane.f32.xlu1 %v309_v59  ;;  %v302_v61 = vpop.f32.mrf.mxu0 }
 0x361   :  { %v303_v62 = vadd.f32 %v302_v61, %v2604_v57 }
 0x362   :  { %v2118_v63 = vpop.f32.mrf.mxu1  ;;  %v2123_v0 = vpop.f32.mrf.mxu0 }
 0x363   :  { %v312_v3 = vsel %vm308_vm4, %v303_v62, -inf }
 0x364   :  { %313 = vmax.xlane.f32.xlu0 %v312_v3  ;;  %v305_v4 = vpop.f32.mrf.mxu0 }
 0x366   :  { %v2124_v5 = vpop.f32.mrf.mxu0 }
 0x371   :  { %382 = vrot.lane.b32.xlu1 %v2578_v43, %s2429_s12 }
 0x375   :  { %432 = vrot.lane.b32.xlu1 %v2574_v39, %s2430_s21 }
 0x3e9   :  { %v311_v6 = vpop.xlane.xlu1 %310 }
 0x3ea   :  { %v315_v7 = vsub.f32 %v255_v56, %v311_v6 }
 0x3ec   :  { %v317_v8 = vmul.f32 1.442695, %v315_v7 }
 0x3ed   :  { %v383_v9 = vpop.permute.xlu1 %382  ;;  %v314_v10 = vpop.xlane.xlu0 %313 }
 0x3ee   :  { %2327 = vpow2.f32 %v317_v8  ;;  %v388_v11 = vsel %vm338_vm5, %v383_v9, 0  ;;  %v316_v12 = vsub.f32 %v303_v62, %v314_v10 }
 0x3ef   :  { %2132 = vmatpush3.bf16.msra.mxu0 %v388_v11 }
 0x3f0   :  { %v319_v13 = vmul.f32 1.442695, %v316_v12  ;;  %2143 = vmatprep.subr.bf16.mxu0 %v2426_v16 }
 0x3f1   :  { %v433_v19 = vpop.permute.xlu1 %432 }
 0x3f2   :  { %2329 = vpow2.f32 %v319_v13  ;;  %v438_v28 = vsel %vm213_vm2, %v433_v19, 0  ;;  %v2304_v19 = vld [vmem:[%s2958_s7] sm:$0xff]  }
 0x3fb   :  { %v2328_v14 = vpop.eup %2327 }
 0x3fc   :  { %v321_v15 = vsel %vm308_vm4, %v2328_v14, 0.0 }
 0x3fd   :  { %322 = vadd.xlane.f32.xlu0 %v321_v15 }
 0x3ff   :  { %v2330_v17 = vpop.eup %2329 }
 0x400   :  { %v324_v18 = vsel %vm308_vm4, %v2330_v17, 0.0 }
 0x401   :  { %325 = vadd.xlane.f32.xlu1 %v324_v18  ;;  %v2303_v18 = vld [vmem:[%s2958_s7 + $0x8] sm:$0xff]  }
 0x412   :  { %482 = vrot.lane.b32.xlu1 %v2578_v43, %s2430_s21 }
 0x413   :  { %333 = vrot.lane.b32.xlu0 %v2574_v39, %s2429_s12 }
 0x416   :  { %480 = vrot.lane.b32.xlu1 %v2578_v43, %s2431_s22 }
 0x417   :  { %430 = vrot.lane.b32.xlu0 %v2574_v39, %s2431_s22 }
 0x486   :  { %v323_v20 = vpop.xlane.xlu0 %322 }
 0x487   :  { %2331 = vrcp.f32 %v323_v20 }
 0x48a   :  { %v326_v21 = vpop.xlane.xlu1 %325  ;;  %v334_v22 = vpop.permute.xlu0 %333 }
 0x48b   :  { %2333 = vrcp.f32 %v326_v21  ;;  %v340_v23 = vsel %vm338_vm5, %v334_v22, 0 }
 0x48c   :  { %2126 = vmatpush3.bf16.msra.mxu1 %v340_v23 }
 0x48d   :  { %2137 = vmatprep.subr.bf16.mxu1 %v2426_v16 }
 0x48e   :  { %v483_v30 = vpop.permute.xlu1 %482  ;;  %v431_v33 = vpop.permute.xlu0 %430 }
 0x48f   :  { %v488_v32 = vsel %vm213_vm2, %v483_v30, 0 }
 0x492   :  { %v481_v34 = vpop.permute.xlu1 %480 }
 0x494   :  { %v2332_v24 = vpop.eup %2331 }
 0x495   :  { %v329_v25 = vmul.f32 %v2332_v24, %v2328_v14 }
 0x497   :  { %v331_v26 = vpack.c.bf16 %v329_v25, %v329_v25 }
 0x498   :  { %v2334_v27 = vpop.eup %2333 }
 0x499   :  { %2128 = vmatmul.mubr.msk.bf16.vlgmr.msra.gmra.mxu1 %vm308_vm4, %v331_v26  ;;  %v330_v29 = vmul.f32 %v2334_v27, %v2330_v17 }
 0x49a   :  { %2138 = vmatpush3.bf16.xpose.msra.mxu1 %v438_v28  ;;  %2139 = vmatprep.mubr.msk.bf16.mxu1 %vm2427_vm1, %v2426_v16 }
 0x49b   :  { %v332_v31 = vpack.c.bf16 %v330_v29, %v330_v29  ;;  %2149 = vmatprep.subr.bf16.mxu1 %v2426_v16 }
 0x49d   :  { %2134 = vmatmul.mubr.msk.bf16.vlgmr.msra.gmra.mxu0 %vm308_vm4, %v332_v31 }
 0x49e   :  { %2144 = vmatpush3.bf16.xpose.msra.mxu0 %v488_v32  ;;  %2145 = vmatprep.mubr.msk.bf16.mxu0 %vm2427_vm1, %v2426_v16 }
 0x49f   :  { %2155 = vmatprep.subr.bf16.mxu0 %v2426_v16 }
 0x4a1   :  { %2140 = vmatmul.mubr.msk.bf16.vlgmr.msra.gmra.mxu1 %vm213_vm2, %v431_v33 }
 0x4a2   :  { %2151 = vmatprep.mubr.msk.bf16.mxu1 %vm2427_vm1, %v2426_v16 }
 0x4a5   :  { %2146 = vmatmul.mubr.msk.bf16.vlgmr.msra.gmra.mxu0 %vm213_vm2, %v481_v34 }
 0x4a6   :  { %2157 = vmatprep.mubr.msk.bf16.mxu0 %vm2427_vm1, %v2426_v16 }
 0x559   :  { %v2643_v35 = vpop.f32.mrf.mxu1 }
 0x55b   :  { %v2129_v36 = vpop.f32.mrf.mxu1 }
 0x55c   :  { %v1947_v36 = vld [vmem:[%s2959_s8] ss:$0 sm:$0xff] }
 0x55d   :  { %v379_v37 = vpop.f32.mrf.mxu1  ;;  %v2645_v38 = vpop.f32.mrf.mxu0 }
 0x55f   :  { %v2130_v40 = vpop.f32.mrf.mxu1  ;;  %v2135_v41 = vpop.f32.mrf.mxu0 }
 0x561   :  { %v427_v42 = vpop.f32.mrf.mxu0  ;;  %v474_v44 = vpop.f32.mrf.mxu1 }
 0x562   :  { %v475_v45 = vadd.f32 %v474_v44, %v2598_v53 }
 0x563   :  { %v2136_v46 = vpop.f32.mrf.mxu0  ;;  %v2141_v47 = vpop.f32.mrf.mxu1 }
 0x564   :  { %v530_v48 = vsel %vm308_vm4, %v475_v45, -inf }
 0x565   :  { %531 = vmax.xlane.f32.xlu0 %v530_v48  ;;  %v477_v49 = vpop.f32.mrf.mxu1  ;;  %v524_v50 = vpop.f32.mrf.mxu0 }
 0x566   :  { %v525_v51 = vadd.f32 %v524_v50, %v2604_v57 }
 0x567   :  { %v2142_v52 = vpop.f32.mrf.mxu1  ;;  %v2147_v54 = vpop.f32.mrf.mxu0 }
 0x568   :  { %v533_v55 = vsel %vm308_vm4, %v525_v51, -inf }
 0x569   :  { %534 = vmax.xlane.f32.xlu1 %v533_v55  ;;  %v527_v56 = vpop.f32.mrf.mxu0 }
 0x56b   :  { %v2148_v58 = vpop.f32.mrf.mxu0 }
 0x56c   :  { %v2305_v58 = vld [vmem:[%s2962_s11 + $0x8] sm:$0xff]  }
 0x57a   :  { %602 = vrot.lane.b32.xlu1 %v2578_v43, %s2432_s2 }
 0x5ee   :  { %v532_v59 = vpop.xlane.xlu0 %531 }
 0x5ef   :  { %v536_v60 = vsub.f32 %v475_v45, %v532_v59  ;;  %v2306_v59 = vld [vmem:[%s2962_s11] sm:$0xff]  }
 0x5f1   :  { %v538_v61 = vmul.f32 1.442695, %v536_v60 }
 0x5f2   :  { %v535_v62 = vpop.xlane.xlu1 %534 }
 0x5f3   :  { %2335 = vpow2.f32 %v538_v61  ;;  %v537_v63 = vsub.f32 %v525_v51, %v535_v62 }
 0x5f5   :  { %v540_v0 = vmul.f32 1.442695, %v537_v63 }
 0x5f6   :  { %v603_v3 = vpop.permute.xlu1 %602 }
 0x5f7   :  { %2337 = vpow2.f32 %v540_v0  ;;  %v608_v4 = vsel %vm338_vm5, %v603_v3, 0 }
 0x5f8   :  { %2156 = vmatpush3.bf16.msra.mxu0 %v608_v4 }
 0x5f9   :  { %2169 = vmatprep.subr.bf16.mxu0 %v2426_v16 }
 0x600   :  { %v2336_v5 = vpop.eup %2335 }
 0x601   :  { %v542_v6 = vsel %vm308_vm4, %v2336_v5, 0.0 }
 0x602   :  { %543 = vadd.xlane.f32.xlu0 %v542_v6  ;;  %v1951_v6 = vld [vmem:[%s2960_s9] ss:$0 sm:$0xff] }
 0x604   :  { %v2338_v7 = vpop.eup %2337 }
 0x605   :  { %v545_v43 = vsel %vm308_vm4, %v2338_v7, 0.0 }
 0x606   :  { %546 = vadd.xlane.f32.xlu0 %v545_v43 }
 0x61c   :  { %554 = vrot.lane.b32.xlu0 %v2574_v39, %s2432_s2 }
 0x68b   :  { %v544_v8 = vpop.xlane.xlu0 %543 }
 0x68c   :  { %2339 = vrcp.f32 %v544_v8 }
 0x68f   :  { %v547_v9 = vpop.xlane.xlu0 %546 }
 0x690   :  { %2341 = vrcp.f32 %v547_v9  ;;  %v1952_v9 = vld [vmem:[%s2961_s10] ss:$0 sm:$0xff] }
 0x693   :  { %v555_v10 = vpop.permute.xlu0 %554 }
 0x694   :  { %v560_v11 = vsel %vm338_vm5, %v555_v10, 0 }
 0x695   :  { %2150 = vmatpush3.bf16.msra.mxu1 %v560_v11 }
 0x696   :  { %2161 = vmatprep.subr.bf16.mxu1 %v2426_v16 }
 0x699   :  { %v2340_v12 = vpop.eup %2339 }
 0x69a   :  { %v550_v13 = vmul.f32 %v2340_v12, %v2336_v5 }
 0x69c   :  { %v552_v14 = vpack.c.bf16 %v550_v13, %v550_v13 }
 0x69d   :  { %v2342_v15 = vpop.eup %2341 }
 0x69e   :  { %2152 = vmatmul.mubr.msk.bf16.vlgmr.msra.gmra.mxu1 %vm308_vm4, %v552_v14  ;;  %v551_v17 = vmul.f32 %v2342_v15, %v2338_v7  ;;  %v2307_v14 = vld [vmem:[%s2964_s13 + $0x18] sm:$0xff]   ;;  %v2308_v15 = vld [vmem:[%s2964_s13 + $0x10] sm:$0xff]  }
 0x69f   :  { %2165 = vmatprep.mubr.msk.bf16.mxu1 %vm2427_vm1, %v2426_v16  ;;  %2162 = vmatpush3.bf16.msra.mxu1 %v2303_v18  ;;  %v1953_v18 = vld [vmem:[%s2979_s28] ss:$0 sm:$0xff] }
 0x6a0   :  { %v553_v39 = vpack.c.bf16 %v551_v17, %v551_v17  ;;  %2163 = vmatprep.subr.bf16.mxu1 %v2426_v16  ;;  %v2309_v17 = vld [vmem:[%s2964_s13 + $0x8] sm:$0xff]  }
 0x6a2   :  { %2158 = vmatmul.mubr.msk.bf16.vlgmr.msra.gmra.mxu0 %vm308_vm4, %v553_v39  ;;  %v2310_v39 = vld [vmem:[%s2964_s13] sm:$0xff]  }
 0x6a3   :  { %2173 = vmatprep.mubr.msk.bf16.mxu0 %vm2427_vm1, %v2426_v16  ;;  %2164 = vmatpush3.bf16.msra.mxu1 %v2304_v19 }
 0x6a4   :  { %2177 = vmatprep.subr.bf16.mxu1 %v2426_v16  ;;  %2170 = vmatpush3.bf16.msra.mxu0 %v2305_v58 }
 0x6a5   :  { %2171 = vmatprep.subr.bf16.mxu0 %v2426_v16 }
 0x6a8   :  { %2172 = vmatpush3.bf16.msra.mxu0 %v2306_v59 }
 0x6a9   :  { %2189 = vmatprep.subr.bf16.mxu0 %v2426_v16 }
 0x75e   :  { %v596_v20 = vpop.f32.mrf.mxu1 }
 0x760   :  { %v2153_v21 = vpop.f32.mrf.mxu1 }
 0x762   :  { %v599_v22 = vpop.f32.mrf.mxu1  ;;  %v644_v23 = vpop.f32.mrf.mxu0 }
 0x763   :  { %v2291_v24 = vpack.i.bf16 %v644_v23, %v596_v20 }
 0x764   :  { %v2154_v25 = vpop.f32.mrf.mxu1  ;;  %v2159_v26 = vpop.f32.mrf.mxu0 }
 0x765   :  { %2292 = vrot.lane.b32.xlu1 %v2291_v24, %s2433_s27 }
 0x766   :  { %v647_v27 = vpop.f32.mrf.mxu0 }
 0x768   :  { %v2160_v28 = vpop.f32.mrf.mxu0 }
 0x7d7   :  { %v2293_v29 = vpop.permute.xlu1 %2292 }
 0x7d8   :  { %v2295_v30 = vunpack.i.h.bf16 %v2293_v29  ;;  %v2294_v31 = vunpack.i.l.bf16 %v2293_v29 }
 0x7da   :  { %v659_v32 = vsel %vm213_vm2, %v2645_v38, %v2295_v30  ;;  %v658_v33 = vsel %vm213_vm2, %v2643_v35, %v2294_v31 }
 0x7db   :  { %v660_v34 = vpack.c.bf16 %v659_v32, %v658_v33 }
 0x7dd   :  { %2166 = vmatmul.mubr.msk.bf16.vlgmr.msra.gmra.mxu1 %vm93_vm0, %v660_v34 }
 0x7de   :  { %2185 = vmatprep.mubr.msk.bf16.mxu1 %vm2427_vm1, %v2426_v16  ;;  %2178 = vmatpush3.bf16.msra.mxu1 %v2307_v14 }
 0x7df   :  { %2179 = vmatprep.subr.bf16.mxu1 %v2426_v16 }
 0x7e2   :  { %2180 = vmatpush3.bf16.msra.mxu1 %v2308_v15 }
 0x7e3   :  { %2181 = vmatprep.subr.bf16.mxu1 %v2426_v16 }
 0x7e6   :  { %2182 = vmatpush3.bf16.msra.mxu1 %v2309_v17 }
 0x7e7   :  { %2183 = vmatprep.subr.bf16.mxu1 %v2426_v16 }
 0x7ea   :  { %2184 = vmatpush3.bf16.msra.mxu1 %v2310_v39  ;;  %v1974_v39 = vld [vmem:[%s2957_s6 + $0x1] ss:$0 sm:$0xff] }
 0x7eb   :  { %2203 = vmatprep.subr.bf16.mxu1 %v2426_v16 }
 0x89d   :  { %v721_v37 = vpop.f32.mrf.mxu1 }
 0x89e   :  { %v722_v40 = vadd.f32 %v1947_v36, %v721_v37 }
 0x89f   :  { %v2167_v41 = vpop.f32.mrf.mxu1 }
 0x8a0   :  { %v2687_v42 = vadd.f32 %v2536_v1, %v722_v40  ;;  %v1959_v41 = vld [vmem:[%s2965_s14] ss:$0 sm:$0xff] }
 0x8a1   :  { %v724_v38 = vpop.f32.mrf.mxu1 }
 0x8a2   :  { %v725_v44 = vadd.f32 %v1947_v36, %v724_v38  ;;  %v732_v35 = vsel %vm93_vm0, %v2687_v42, 0.0 }
 0x8a3   :  { %733 = vadd.xlane.f32.xlu1 %v732_v35  ;;  %v2168_v45 = vpop.f32.mrf.mxu1 }
 0x8a4   :  { %v2692_v46 = vadd.f32 %v2538_v2, %v725_v44 }
 0x8a6   :  { %v735_v47 = vsel %vm93_vm0, %v2692_v46, 0.0 }
 0x8a7   :  { %736 = vadd.xlane.f32.xlu0 %v735_v47 }
 0x92c   :  { %v734_v48 = vpop.xlane.xlu1 %733 }
 0x92d   :  { %v738_v49 = vmul.f32 0.03125, %v734_v48 }
 0x92f   :  { %v740_v50 = vsub.f32 %v2687_v42, %v738_v49 }
 0x930   :  { %v737_v1 = vpop.xlane.xlu0 %736 }
 0x931   :  { %v739_v51 = vmul.f32 0.03125, %v737_v1  ;;  %v742_v52 = vmul.f32 %v740_v50, %v740_v50 }
 0x933   :  { %v741_v54 = vsub.f32 %v2692_v46, %v739_v51  ;;  %v744_v55 = vsel %vm93_vm0, %v742_v52, 0.0 }
 0x934   :  { %745 = vadd.xlane.f32.xlu0 %v744_v55 }
 0x935   :  { %v743_v56 = vmul.f32 %v741_v54, %v741_v54 }
 0x937   :  { %v747_v2 = vsel %vm93_vm0, %v743_v56, 0.0 }
 0x938   :  { %748 = vadd.xlane.f32.xlu0 %v747_v2 }
 0x9bd   :  { %v746_v60 = vpop.xlane.xlu0 %745 }
 0x9be   :  { %v750_v61 = vmul.f32 0.03125, %v746_v60 }
 0x9c0   :  { %v752_v62 = vadd.f32 1e-05, %v750_v61  ;;  %v2311_v61 = vld [vmem:[%s2956_s5 + $0x18] sm:$0xff]  }
 0x9c1   :  { %v749_v63 = vpop.xlane.xlu0 %748 }
 0x9c2   :  { %2343 = vrsqrt.f32 %v752_v62  ;;  %v751_v0 = vmul.f32 0.03125, %v749_v63  ;;  %v2312_v62 = vld [vmem:[%s2956_s5 + $0x10] sm:$0xff]  }
 0x9c4   :  { %v753_v3 = vadd.f32 1e-05, %v751_v0 }
 0x9c6   :  { %2345 = vrsqrt.f32 %v753_v3 }
 0x9cf   :  { %v2344_v4 = vpop.eup %2343 }
 0x9d0   :  { %v756_v5 = vmul.f32 %v2344_v4, %v740_v50 }
 0x9d2   :  { %v764_v8 = vmul.f32 %v1951_v6, %v756_v5 }
 0x9d3   :  { %v2346_v7 = vpop.eup %2345 }
 0x9d4   :  { %v757_v43 = vmul.f32 %v2346_v7, %v741_v54  ;;  %v772_v11 = vadd.f32 %v1952_v9, %v764_v8  ;;  %v1967_v8 = vld [vmem:[%s2954_s3 + $0x1] ss:$0 sm:$0xff]  ;;  %s2027_s3 = sld [smem:[#allocation4 + $0x1]] }
 0x9d6   :  { %v765_v10 = vmul.f32 %v1951_v6, %v757_v43 }
 0x9d8   :  { %v773_v12 = vadd.f32 %v1952_v9, %v765_v10 }
 0x9da   :  { %v774_v13 = vpack.c.bf16 %v773_v12, %v772_v11  ;;  %v1968_v12 = vld [vmem:[%s2955_s4 + $0x1] ss:$0 sm:$0xff]  ;;  %s1808_s4 = sld [smem:[#allocation4]]  ;;  %s1927_s6 = scalar_lea.vmem [#allocation2], %s2027_s3 }
 0x9dc   :  { %2174 = vmatmul.mubr.msk.bf16.vlgmr.msra.gmra.mxu0 %vm93_vm0, %v774_v13 }
 0x9dd   :  { %2193 = vmatprep.mubr.msk.bf16.mxu0 %vm2427_vm1, %v2426_v16  ;;  %2190 = vmatpush3.bf16.msra.mxu0 %v2311_v61 }
 0x9de   :  { %2191 = vmatprep.subr.bf16.mxu0 %v2426_v16 }
 0x9e1   :  { %2192 = vmatpush3.bf16.msra.mxu0 %v2312_v62 }
 0x9e2   :  { %2197 = vmatprep.subr.bf16.mxu0 %v2426_v16 }
 0xa9c   :  { %v835_v19 = vpop.f32.mrf.mxu0 }
 0xa9d   :  { %v836_v20 = vadd.f32 %v1953_v18, %v835_v19 }
 0xa9e   :  { %v2175_v21 = vpop.f32.mrf.mxu0 }
 0xa9f   :  { %v1957_v22 = vmul.f32 -1.702, %v836_v20 }
 0xaa0   :  { %v838_v23 = vpop.f32.mrf.mxu0 }
 0xaa1   :  { %v846_v24 = vmul.f32 1.442695, %v1957_v22  ;;  %v839_v25 = vadd.f32 %v1953_v18, %v838_v23 }
 0xaa2   :  { %v2176_v26 = vpop.f32.mrf.mxu0 }
 0xaa3   :  { %2347 = vpow2.f32 %v846_v24  ;;  %v1958_v27 = vmul.f32 -1.702, %v839_v25 }
 0xaa5   :  { %v848_v28 = vmul.f32 1.442695, %v1958_v27 }
 0xaa7   :  { %2349 = vpow2.f32 %v848_v28 }
 0xab0   :  { %v2348_v29 = vpop.eup %2347 }
 0xab1   :  { %v850_v30 = vadd.f32 1.0, %v2348_v29 }
 0xab3   :  { %2351 = vrcp.f32 %v850_v30 }
 0xab4   :  { %v2350_v31 = vpop.eup %2349 }
 0xab5   :  { %v851_v32 = vadd.f32 1.0, %v2350_v31 }
 0xab7   :  { %2353 = vrcp.f32 %v851_v32 }
 0xac0   :  { %v2352_v33 = vpop.eup %2351 }
 0xac1   :  { %v856_v36 = vmul.f32 %v2352_v33, %v836_v20 }
 0xac4   :  { %v2354_v34 = vpop.eup %2353 }
 0xac5   :  { %v857_v37 = vmul.f32 %v2354_v34, %v839_v25 }
 0xac7   :  { %v858_v40 = vpack.c.bf16 %v857_v37, %v856_v36 }
 0xac9   :  { %2186 = vmatmul.mubr.msk.bf16.vlgmr.msra.gmra.mxu1 %vm898_vm6, %v858_v40 }
 0xaca   :  { %2205 = vmatprep.mubr.msk.bf16.mxu1 %vm2427_vm1, %v2426_v16 }
 0xb89   :  { %v936_v38 = vpop.f32.mrf.mxu1 }
 0xb8a   :  { %v937_v44 = vadd.f32 %v1959_v41, %v936_v38 }
 0xb8b   :  { %v2187_v35 = vpop.f32.mrf.mxu1 }
 0xb8c   :  { %v2743_v45 = vadd.f32 %v937_v44, %v2687_v42 }
 0xb8d   :  { %v939_v47 = vpop.f32.mrf.mxu1 }
 0xb8e   :  { %v940_v48 = vadd.f32 %v1959_v41, %v939_v47  ;;  %v949_v49 = vsel %vm93_vm0, %v2743_v45, 0.0 }
 0xb8f   :  { %950 = vadd.xlane.f32.xlu1 %v949_v49  ;;  %v2188_v50 = vpop.f32.mrf.mxu1 }
 0xb90   :  { %v2748_v1 = vadd.f32 %v940_v48, %v2692_v46 }
 0xb92   :  { %v952_v51 = vsel %vm93_vm0, %v2748_v1, 0.0 }
 0xb93   :  { %953 = vadd.xlane.f32.xlu0 %v952_v51 }
 0xc18   :  { %v951_v52 = vpop.xlane.xlu1 %950 }
 0xc19   :  { %v955_v54 = vmul.f32 0.03125, %v951_v52 }
 0xc1b   :  { %v957_v55 = vsub.f32 %v2743_v45, %v955_v54 }
 0xc1c   :  { %v954_v42 = vpop.xlane.xlu0 %953 }
 0xc1d   :  { %v956_v56 = vmul.f32 0.03125, %v954_v42  ;;  %v959_v2 = vmul.f32 %v957_v55, %v957_v55 }
 0xc1f   :  { %v958_v58 = vsub.f32 %v2748_v1, %v956_v56  ;;  %v961_v59 = vsel %vm93_vm0, %v959_v2, 0.0 }
 0xc20   :  { %962 = vadd.xlane.f32.xlu1 %v961_v59 }
 0xc21   :  { %v960_v60 = vmul.f32 %v958_v58, %v958_v58 }
 0xc23   :  { %v964_v46 = vsel %vm93_vm0, %v960_v60, 0.0 }
 0xc24   :  { %965 = vadd.xlane.f32.xlu0 %v964_v46 }
 0xca9   :  { %v963_v63 = vpop.xlane.xlu1 %962 }
 0xcaa   :  { %v967_v0 = vmul.f32 0.03125, %v963_v63 }
 0xcac   :  { %v969_v3 = vadd.f32 1e-05, %v967_v0 }
 0xcad   :  { %v966_v4 = vpop.xlane.xlu0 %965 }
 0xcae   :  { %2355 = vrsqrt.f32 %v969_v3  ;;  %v968_v5 = vmul.f32 0.03125, %v966_v4 }
 0xcb0   :  { %v970_v6 = vadd.f32 1e-05, %v968_v5 }
 0xcb2   :  { %2357 = vrsqrt.f32 %v970_v6 }
 0xcbb   :  { %v2356_v7 = vpop.eup %2355 }
 0xcbc   :  { %v973_v43 = vmul.f32 %v2356_v7, %v957_v55 }
 0xcbe   :  { %v981_v11 = vmul.f32 %v1967_v8, %v973_v43 }
 0xcbf   :  { %v2358_v9 = vpop.eup %2357 }
 0xcc0   :  { %v974_v10 = vmul.f32 %v2358_v9, %v958_v58  ;;  %v989_v14 = vadd.f32 %v1968_v12, %v981_v11 }
 0xcc2   :  { %v982_v13 = vmul.f32 %v1967_v8, %v974_v10 }
 0xcc4   :  { %v990_v15 = vadd.f32 %v1968_v12, %v982_v13 }
 0xcc6   :  { %v991_v17 = vpack.c.bf16 %v990_v15, %v989_v14 }
 0xcc8   :  { %2194 = vmatmul.mubr.msk.bf16.vlgmr.msra.gmra.mxu0 %vm93_vm0, %v991_v17 }
 0xcc9   :  { %2199 = vmatprep.mubr.msk.bf16.mxu0 %vm2427_vm1, %v2426_v16 }
 0xd88   :  { %v1054_v18 = vpop.f32.mrf.mxu0 }
 0xd89   :  { %v1055_v19 = vadd.f32 %v1974_v39, %v1054_v18 }
 0xd8a   :  { %v2195_v20 = vpop.f32.mrf.mxu0 }
 0xd8b   :  { %v2776_v21 = vpack.c.bf16 %v1055_v19, %v1055_v19 }
 0xd8c   :  { %v1057_v22 = vpop.f32.mrf.mxu0 }
 0xd8d   :  { %v1058_v23 = vadd.f32 %v1974_v39, %v1057_v22  ;;  %1067 = vrot.lane.b32.xlu1 %v2776_v21, %s2428_s29 }
 0xd8e   :  { %v2196_v24 = vpop.f32.mrf.mxu0 }
 0xd8f   :  { %v2780_v25 = vpack.c.bf16 %v1058_v23, %v1058_v23 }
 0xd91   :  { %1115 = vrot.lane.b32.xlu0 %v2780_v25, %s2428_s29 }
 0xdff   :  { %v1068_v26 = vpop.permute.xlu1 %1067 }
 0xe00   :  { %v1073_v27 = vsel %vm213_vm2, %v1068_v26, 0 }
 0xe01   :  { %2198 = vmatpush3.bf16.xpose.msra.mxu0 %v1073_v27 }
 0xe02   :  { %2209 = vmatprep.subr.bf16.mxu0 %v2426_v16 }
 0xe03   :  { %v1116_v28 = vpop.permute.xlu0 %1115 }
 0xe04   :  { %v1121_v29 = vsel %vm213_vm2, %v1116_v28, 0 }
 0xe05   :  { %2204 = vmatpush3.bf16.xpose.msra.mxu1 %v1121_v29 }
 0xe06   :  { %2215 = vmatprep.subr.bf16.mxu1 %v2426_v16 }
 0xe08   :  { %2200 = vmatmul.mubr.msk.bf16.vlgmr.msra.gmra.mxu0 %vm213_vm2, %v2776_v21 }
 0xe09   :  { %2211 = vmatprep.mubr.msk.bf16.mxu0 %vm2427_vm1, %v2426_v16 }
 0xe0c   :  { %2206 = vmatmul.mubr.msk.bf16.vlgmr.msra.gmra.mxu1 %vm213_vm2, %v2780_v25 }
 0xe0d   :  { %2217 = vmatprep.mubr.msk.bf16.mxu1 %vm2427_vm1, %v2426_v16 }
 0xec8   :  { %v1109_v30 = vpop.f32.mrf.mxu0 }
 0xec9   :  { %v1110_v31 = vadd.f32 %v1109_v30, %v2598_v53 }
 0xeca   :  { %v2201_v32 = vpop.f32.mrf.mxu0 }
 0xecb   :  { %v1163_v33 = vsel %vm308_vm4, %v1110_v31, -inf }
 0xecc   :  { %v1157_v34 = vpop.f32.mrf.mxu1  ;;  %1164 = vmax.xlane.f32.xlu1 %v1163_v33  ;;  %v1112_v36 = vpop.f32.mrf.mxu0 }
 0xecd   :  { %v1158_v37 = vadd.f32 %v1157_v34, %v2604_v57 }
 0xece   :  { %v2202_v40 = vpop.f32.mrf.mxu0  ;;  %v2207_v41 = vpop.f32.mrf.mxu1 }
 0xecf   :  { %v1166_v38 = vsel %vm308_vm4, %v1158_v37, -inf }
 0xed0   :  { %1167 = vmax.xlane.f32.xlu0 %v1166_v38  ;;  %v1160_v44 = vpop.f32.mrf.mxu1 }
 0xed2   :  { %v2208_v35 = vpop.f32.mrf.mxu1 }
 0xedd   :  { %1187 = vrot.lane.b32.xlu1 %v2776_v21, %s2429_s12 }
 0xf55   :  { %v1165_v47 = vpop.xlane.xlu1 %1164 }
 0xf56   :  { %v1169_v48 = vsub.f32 %v1110_v31, %v1165_v47 }
 0xf58   :  { %v1171_v49 = vmul.f32 1.442695, %v1169_v48 }
 0xf59   :  { %v1168_v50 = vpop.xlane.xlu0 %1167  ;;  %v1188_v51 = vpop.permute.xlu1 %1187 }
 0xf5a   :  { %2359 = vpow2.f32 %v1171_v49  ;;  %v1170_v52 = vsub.f32 %v1158_v37, %v1168_v50  ;;  %v1193_v54 = vsel %vm338_vm5, %v1188_v51, 0 }
 0xf5b   :  { %2210 = vmatpush3.bf16.msra.mxu0 %v1193_v54 }
 0xf5c   :  { %v1173_v55 = vmul.f32 1.442695, %v1170_v52  ;;  %2221 = vmatprep.subr.bf16.mxu0 %v2426_v16 }
 0xf5e   :  { %2361 = vpow2.f32 %v1173_v55 }
 0xf67   :  { %v2360_v42 = vpop.eup %2359 }
 0xf68   :  { %v1175_v56 = vsel %vm308_vm4, %v2360_v42, 0.0 }
 0xf69   :  { %1176 = vadd.xlane.f32.xlu1 %v1175_v56  ;;  %v2313_v56 = vld [vmem:[%s2958_s7 + $0x18] sm:$0xff]  }
 0xf6b   :  { %v2362_v2 = vpop.eup %2361 }
 0xf6c   :  { %v1178_v58 = vsel %vm308_vm4, %v2362_v2, 0.0 }
 0xf6d   :  { %1179 = vadd.xlane.f32.xlu0 %v1178_v58 }
 0xf7a   :  { %1285 = vrot.lane.b32.xlu1 %v2776_v21, %s2430_s21 }
 0xf7e   :  { %1335 = vrot.lane.b32.xlu1 %v2780_v25, %s2430_s21 }
 0xf82   :  { %1283 = vrot.lane.b32.xlu1 %v2776_v21, %s2431_s22 }
 0xf83   :  { %1235 = vrot.lane.b32.xlu0 %v2780_v25, %s2429_s12 }
 0xf87   :  { %1333 = vrot.lane.b32.xlu0 %v2780_v25, %s2431_s22 }
 0xff2   :  { %v1177_v59 = vpop.xlane.xlu1 %1176 }
 0xff3   :  { %2363 = vrcp.f32 %v1177_v59 }
 0xff6   :  { %v1180_v60 = vpop.xlane.xlu0 %1179  ;;  %v1286_v63 = vpop.permute.xlu1 %1285 }
 0xff7   :  { %2365 = vrcp.f32 %v1180_v60  ;;  %v1291_v5 = vsel %vm213_vm2, %v1286_v63, 0 }
 0xffa   :  { %v1236_v46 = vpop.permute.xlu0 %1235  ;;  %v1336_v7 = vpop.permute.xlu1 %1335 }
 0xffb   :  { %v1241_v61 = vsel %vm338_vm5, %v1236_v46, 0  ;;  %v1341_v8 = vsel %vm213_vm2, %v1336_v7, 0 }
 0xffc   :  { %2216 = vmatpush3.bf16.msra.mxu1 %v1241_v61 }
 0xffd   :  { %2227 = vmatprep.subr.bf16.mxu1 %v2426_v16 }
 0xffe   :  { %v1284_v9 = vpop.permute.xlu1 %1283  ;;  %v1334_v10 = vpop.permute.xlu0 %1333 }
0x1000   :  { %v2364_v62 = vpop.eup %2363 }
0x1001   :  { %v1183_v0 = vmul.f32 %v2364_v62, %v2360_v42 }
0x1003   :  { %v1185_v3 = vpack.c.bf16 %v1183_v0, %v1183_v0 }
0x1004   :  { %v2366_v4 = vpop.eup %2365 }
0x1005   :  { %2212 = vmatmul.mubr.msk.bf16.vlgmr.msra.gmra.mxu0 %vm308_vm4, %v1185_v3  ;;  %v1184_v6 = vmul.f32 %v2366_v4, %v2362_v2  ;;  %v2314_v2 = vld [vmem:[%s2958_s7 + $0x10] sm:$0xff]  }
0x1006   :  { %2222 = vmatpush3.bf16.xpose.msra.mxu0 %v1291_v5  ;;  %2223 = vmatprep.mubr.msk.bf16.mxu0 %vm2427_vm1, %v2426_v16 }
0x1007   :  { %v1186_v43 = vpack.c.bf16 %v1184_v6, %v1184_v6  ;;  %2233 = vmatprep.subr.bf16.mxu0 %v2426_v16 }
0x1009   :  { %2218 = vmatmul.mubr.msk.bf16.vlgmr.msra.gmra.mxu1 %vm308_vm4, %v1186_v43 }
0x100a   :  { %2228 = vmatpush3.bf16.xpose.msra.mxu1 %v1341_v8  ;;  %2229 = vmatprep.mubr.msk.bf16.mxu1 %vm2427_vm1, %v2426_v16 }
0x100b   :  { %2239 = vmatprep.subr.bf16.mxu1 %v2426_v16 }
0x100d   :  { %2224 = vmatmul.mubr.msk.bf16.vlgmr.msra.gmra.mxu0 %vm213_vm2, %v1284_v9  ;;  %v1993_v9 = vld [vmem:[%s2959_s8 + $0x1] ss:$0 sm:$0xff] }
0x100e   :  { %2235 = vmatprep.mubr.msk.bf16.mxu0 %vm2427_vm1, %v2426_v16 }
0x1011   :  { %2230 = vmatmul.mubr.msk.bf16.vlgmr.msra.gmra.mxu1 %vm213_vm2, %v1334_v10 }
0x1012   :  { %2241 = vmatprep.mubr.msk.bf16.mxu1 %vm2427_vm1, %v2426_v16 }
0x10c5   :  { %v2834_v11 = vpop.f32.mrf.mxu0 }
0x10c7   :  { %v2213_v12 = vpop.f32.mrf.mxu0 }
0x10c9   :  { %v1232_v13 = vpop.f32.mrf.mxu0  ;;  %v2836_v14 = vpop.f32.mrf.mxu1 }
0x10cb   :  { %v2214_v15 = vpop.f32.mrf.mxu0  ;;  %v2219_v17 = vpop.f32.mrf.mxu1 }
0x10cd   :  { %v1280_v39 = vpop.f32.mrf.mxu1  ;;  %v1327_v18 = vpop.f32.mrf.mxu0 }
0x10ce   :  { %v1328_v19 = vadd.f32 %v1327_v18, %v2598_v53 }
0x10cf   :  { %v2220_v20 = vpop.f32.mrf.mxu1  ;;  %v2225_v22 = vpop.f32.mrf.mxu0 }
0x10d0   :  { %v1383_v23 = vsel %vm308_vm4, %v1328_v19, -inf }
0x10d1   :  { %v1377_v24 = vpop.f32.mrf.mxu1  ;;  %1384 = vmax.xlane.f32.xlu1 %v1383_v23  ;;  %v1330_v26 = vpop.f32.mrf.mxu0 }
0x10d2   :  { %v1378_v27 = vadd.f32 %v1377_v24, %v2604_v57 }
0x10d3   :  { %v2226_v28 = vpop.f32.mrf.mxu0  ;;  %v2231_v29 = vpop.f32.mrf.mxu1 }
0x10d4   :  { %v1386_v30 = vsel %vm308_vm4, %v1378_v27, -inf }
0x10d5   :  { %1387 = vmax.xlane.f32.xlu0 %v1386_v30  ;;  %v1380_v31 = vpop.f32.mrf.mxu1  ;;  %v2315_v30 = vld [vmem:[%s2962_s11 + $0x18] sm:$0xff]  }
0x10d6   :  { %v2316_v31 = vld [vmem:[%s2962_s11 + $0x10] sm:$0xff]  }
0x10d7   :  { %v2232_v32 = vpop.f32.mrf.mxu1 }
0x10e2   :  { %1407 = vrot.lane.b32.xlu1 %v2776_v21, %s2432_s2 }
0x115a   :  { %v1385_v53 = vpop.xlane.xlu1 %1384 }
0x115b   :  { %v1389_v33 = vsub.f32 %v1328_v19, %v1385_v53 }
0x115d   :  { %v1391_v34 = vmul.f32 1.442695, %v1389_v33 }
0x115e   :  { %v1388_v36 = vpop.xlane.xlu0 %1387  ;;  %v1408_v37 = vpop.permute.xlu1 %1407 }
0x115f   :  { %2367 = vpow2.f32 %v1391_v34  ;;  %v1390_v40 = vsub.f32 %v1378_v27, %v1388_v36  ;;  %v1413_v41 = vsel %vm338_vm5, %v1408_v37, 0 }
0x1160   :  { %2234 = vmatpush3.bf16.msra.mxu0 %v1413_v41 }
0x1161   :  { %v1393_v57 = vmul.f32 1.442695, %v1390_v40  ;;  %2245 = vmatprep.subr.bf16.mxu0 %v2426_v16 }
0x1163   :  { %2369 = vpow2.f32 %v1393_v57  ;;  %v1999_v57 = vld [vmem:[%s2960_s9 + $0x1] ss:$0 sm:$0xff] }
0x116c   :  { %v2368_v38 = vpop.eup %2367 }
0x116d   :  { %v1395_v44 = vsel %vm308_vm4, %v2368_v38, 0.0 }
0x116e   :  { %1396 = vadd.xlane.f32.xlu0 %v1395_v44 }
0x1170   :  { %v2370_v35 = vpop.eup %2369 }
0x1171   :  { %v1398_v21 = vsel %vm308_vm4, %v2370_v35, 0.0 }
0x1172   :  { %1399 = vadd.xlane.f32.xlu0 %v1398_v21  ;;  %v2000_v21 = vld [vmem:[%s2961_s10 + $0x1] ss:$0 sm:$0xff] }
0x1188   :  { %1455 = vrot.lane.b32.xlu0 %v2780_v25, %s2432_s2 }
0x11f7   :  { %v1397_v47 = vpop.xlane.xlu0 %1396 }
0x11f8   :  { %2371 = vrcp.f32 %v1397_v47 }
0x11fb   :  { %v1400_v48 = vpop.xlane.xlu0 %1399 }
0x11fc   :  { %2373 = vrcp.f32 %v1400_v48 }
0x11ff   :  { %v1456_v49 = vpop.permute.xlu0 %1455 }
0x1200   :  { %v1461_v50 = vsel %vm338_vm5, %v1456_v49, 0 }
0x1201   :  { %2240 = vmatpush3.bf16.msra.mxu1 %v1461_v50 }
0x1202   :  { %2253 = vmatprep.subr.bf16.mxu1 %v2426_v16 }
0x1205   :  { %v2372_v51 = vpop.eup %2371 }
0x1206   :  { %v1403_v52 = vmul.f32 %v2372_v51, %v2368_v38  ;;  %v2317_v51 = vld [vmem:[%s2964_s13 + $0x38] sm:$0xff]  }
0x1208   :  { %v1405_v54 = vpack.c.bf16 %v1403_v52, %v1403_v52  ;;  %v2318_v52 = vld [vmem:[%s2964_s13 + $0x30] sm:$0xff]  }
0x1209   :  { %v2374_v55 = vpop.eup %2373 }
0x120a   :  { %2236 = vmatmul.mubr.msk.bf16.vlgmr.msra.gmra.mxu0 %vm308_vm4, %v1405_v54  ;;  %v1404_v42 = vmul.f32 %v2374_v55, %v2370_v35  ;;  %v2319_v54 = vld [vmem:[%s2964_s13 + $0x28] sm:$0xff]   ;;  %v2320_v55 = vld [vmem:[%s2964_s13 + $0x20] sm:$0xff]  }
0x120b   :  { %2249 = vmatprep.mubr.msk.bf16.mxu0 %vm2427_vm1, %v2426_v16  ;;  %2246 = vmatpush3.bf16.msra.mxu0 %v2313_v56 }
0x120c   :  { %v1406_v25 = vpack.c.bf16 %v1404_v42, %v1404_v42  ;;  %2247 = vmatprep.subr.bf16.mxu0 %v2426_v16  ;;  %v2006_v42 = vld [vmem:[%s2979_s28 + $0x1] ss:$0 sm:$0xff] }
0x120e   :  { %2242 = vmatmul.mubr.msk.bf16.vlgmr.msra.gmra.mxu1 %vm308_vm4, %v1406_v25 }
0x120f   :  { %2257 = vmatprep.mubr.msk.bf16.mxu1 %vm2427_vm1, %v2426_v16  ;;  %2248 = vmatpush3.bf16.msra.mxu0 %v2314_v2 }
0x1210   :  { %2261 = vmatprep.subr.bf16.mxu0 %v2426_v16  ;;  %2254 = vmatpush3.bf16.msra.mxu1 %v2315_v30  ;;  %v2322_v30 = vld [vmem:[%s2968_s17] sm:$0xff]  }
0x1211   :  { %2255 = vmatprep.subr.bf16.mxu1 %v2426_v16 }
0x1214   :  { %2256 = vmatpush3.bf16.msra.mxu1 %v2316_v31 }
0x1215   :  { %2273 = vmatprep.subr.bf16.mxu1 %v2426_v16 }
0x12ca   :  { %v1449_v58 = vpop.f32.mrf.mxu0 }
0x12cc   :  { %v2237_v59 = vpop.f32.mrf.mxu0 }
0x12ce   :  { %v1452_v60 = vpop.f32.mrf.mxu0  ;;  %v1497_v46 = vpop.f32.mrf.mxu1 }
0x12cf   :  { %v2296_v61 = vpack.i.bf16 %v1497_v46, %v1449_v58 }
0x12d0   :  { %v2238_v62 = vpop.f32.mrf.mxu0  ;;  %v2243_v63 = vpop.f32.mrf.mxu1 }
0x12d1   :  { %2297 = vrot.lane.b32.xlu1 %v2296_v61, %s2433_s27 }
0x12d2   :  { %v1500_v0 = vpop.f32.mrf.mxu1 }
0x12d4   :  { %v2244_v3 = vpop.f32.mrf.mxu1 }
0x1343   :  { %v2298_v4 = vpop.permute.xlu1 %2297 }
0x1344   :  { %v2300_v5 = vunpack.i.h.bf16 %v2298_v4  ;;  %v2299_v6 = vunpack.i.l.bf16 %v2298_v4 }
0x1346   :  { %v1512_v7 = vsel %vm213_vm2, %v2836_v14, %v2300_v5  ;;  %v1511_v43 = vsel %vm213_vm2, %v2834_v11, %v2299_v6 }
0x1347   :  { %v1513_v8 = vpack.c.bf16 %v1512_v7, %v1511_v43 }
0x1349   :  { %2250 = vmatmul.mubr.msk.bf16.vlgmr.msra.gmra.mxu0 %vm93_vm0, %v1513_v8 }
0x134a   :  { %2269 = vmatprep.mubr.msk.bf16.mxu0 %vm2427_vm1, %v2426_v16  ;;  %2262 = vmatpush3.bf16.msra.mxu0 %v2317_v51 }
0x134b   :  { %2263 = vmatprep.subr.bf16.mxu0 %v2426_v16 }
0x134e   :  { %2264 = vmatpush3.bf16.msra.mxu0 %v2318_v52 }
0x134f   :  { %2265 = vmatprep.subr.bf16.mxu0 %v2426_v16 }
0x1352   :  { %2266 = vmatpush3.bf16.msra.mxu0 %v2319_v54 }
0x1353   :  { %2267 = vmatprep.subr.bf16.mxu0 %v2426_v16 }
0x1356   :  { %2268 = vmatpush3.bf16.msra.mxu0 %v2320_v55 }
0x1409   :  { %v1576_v10 = vpop.f32.mrf.mxu0 }
0x140a   :  { %v1577_v12 = vadd.f32 %v1993_v9, %v1576_v10  ;;  %v2021_v10 = vld [vmem:[%s2965_s14 + $0x1] ss:$0 sm:$0xff]  ;;  %s1809_s14 = scalar_lea.vmem [#allocation2], %s1808_s4 }
0x140b   :  { %v2251_v13 = vpop.f32.mrf.mxu0 }
0x140c   :  { %v2878_v15 = vadd.f32 %v1577_v12, %v2743_v45 }
0x140d   :  { %v1579_v14 = vpop.f32.mrf.mxu0 }
0x140e   :  { %v1580_v17 = vadd.f32 %v1993_v9, %v1579_v14  ;;  %v1589_v11 = vsel %vm93_vm0, %v2878_v15, 0.0 }
0x140f   :  { %1590 = vadd.xlane.f32.xlu1 %v1589_v11  ;;  %v2252_v39 = vpop.f32.mrf.mxu0 }
0x1410   :  { %v2883_v18 = vadd.f32 %v1580_v17, %v2748_v1 }
0x1412   :  { %v1592_v19 = vsel %vm93_vm0, %v2883_v18, 0.0 }
0x1413   :  { %1593 = vadd.xlane.f32.xlu0 %v1592_v19 }
0x1498   :  { %v1591_v20 = vpop.xlane.xlu1 %1590 }
0x1499   :  { %v1595_v22 = vmul.f32 0.03125, %v1591_v20 }
0x149b   :  { %v1597_v23 = vsub.f32 %v2878_v15, %v1595_v22 }
0x149c   :  { %v1594_v45 = vpop.xlane.xlu0 %1593 }
0x149d   :  { %v1596_v24 = vmul.f32 0.03125, %v1594_v45  ;;  %v1599_v26 = vmul.f32 %v1597_v23, %v1597_v23 }
0x149f   :  { %v1598_v27 = vsub.f32 %v2883_v18, %v1596_v24  ;;  %v1601_v28 = vsel %vm93_vm0, %v1599_v26, 0.0 }
0x14a0   :  { %1602 = vadd.xlane.f32.xlu0 %v1601_v28 }
0x14a1   :  { %v1600_v29 = vmul.f32 %v1598_v27, %v1598_v27 }
0x14a3   :  { %v1604_v1 = vsel %vm93_vm0, %v1600_v29, 0.0 }
0x14a4   :  { %1605 = vadd.xlane.f32.xlu1 %v1604_v1 }
0x1529   :  { %v1603_v32 = vpop.xlane.xlu0 %1602 }
0x152a   :  { %v1607_v53 = vmul.f32 0.03125, %v1603_v32 }
0x152c   :  { %v1609_v33 = vadd.f32 1e-05, %v1607_v53 }
0x152d   :  { %v1606_v34 = vpop.xlane.xlu1 %1605 }
0x152e   :  { %2375 = vrsqrt.f32 %v1609_v33  ;;  %v1608_v36 = vmul.f32 0.03125, %v1606_v34  ;;  %v2029_v34 = vld [vmem:[%s2966_s15] ss:$0 sm:$0xff] }
0x1530   :  { %v1610_v37 = vadd.f32 1e-05, %v1608_v36 }
0x1532   :  { %2377 = vrsqrt.f32 %v1610_v37  ;;  %v2030_v37 = vld [vmem:[%s2967_s16] ss:$0 sm:$0xff] }
0x153b   :  { %v2376_v40 = vpop.eup %2375 }
0x153c   :  { %v1613_v41 = vmul.f32 %v2376_v40, %v1597_v23 }
0x153e   :  { %v1621_v35 = vmul.f32 %v1999_v57, %v1613_v41 }
0x153f   :  { %v2378_v38 = vpop.eup %2377 }
0x1540   :  { %v1614_v44 = vmul.f32 %v2378_v38, %v1598_v27  ;;  %v1629_v48 = vadd.f32 %v2000_v21, %v1621_v35 }
0x1542   :  { %v1622_v47 = vmul.f32 %v1999_v57, %v1614_v44 }
0x1544   :  { %v1630_v49 = vadd.f32 %v2000_v21, %v1622_v47 }
0x1546   :  { %v1631_v50 = vpack.c.bf16 %v1630_v49, %v1629_v48 }
0x1548   :  { %2258 = vmatmul.mubr.msk.bf16.vlgmr.msra.gmra.mxu1 %vm93_vm0, %v1631_v50 }
0x1549   :  { %2277 = vmatprep.mubr.msk.bf16.mxu1 %vm2427_vm1, %v2426_v16 }
0x1608   :  { %v1694_v25 = vpop.f32.mrf.mxu1 }
0x1609   :  { %v1695_v56 = vadd.f32 %v2006_v42, %v1694_v25 }
0x160a   :  { %v2259_v2 = vpop.f32.mrf.mxu1 }
0x160b   :  { %v2010_v58 = vmul.f32 -1.702, %v1695_v56 }
0x160c   :  { %v1697_v59 = vpop.f32.mrf.mxu1 }
0x160d   :  { %v1705_v60 = vmul.f32 1.442695, %v2010_v58  ;;  %v1698_v46 = vadd.f32 %v2006_v42, %v1697_v59 }
0x160e   :  { %v2260_v61 = vpop.f32.mrf.mxu1 }
0x160f   :  { %2379 = vpow2.f32 %v1705_v60  ;;  %v2011_v62 = vmul.f32 -1.702, %v1698_v46 }
0x1611   :  { %v1707_v63 = vmul.f32 1.442695, %v2011_v62 }
0x1613   :  { %2381 = vpow2.f32 %v1707_v63 }
0x161c   :  { %v2380_v0 = vpop.eup %2379 }
0x161d   :  { %v1709_v3 = vadd.f32 1.0, %v2380_v0 }
0x161f   :  { %2383 = vrcp.f32 %v1709_v3 }
0x1620   :  { %v2382_v4 = vpop.eup %2381 }
0x1621   :  { %v1710_v5 = vadd.f32 1.0, %v2382_v4 }
0x1623   :  { %2385 = vrcp.f32 %v1710_v5 }
0x162c   :  { %v2384_v6 = vpop.eup %2383 }
0x162d   :  { %v1715_v43 = vmul.f32 %v2384_v6, %v1695_v56 }
0x1630   :  { %v2386_v7 = vpop.eup %2385 }
0x1631   :  { %v1716_v8 = vmul.f32 %v2386_v7, %v1698_v46 }
0x1633   :  { %v1717_v9 = vpack.c.bf16 %v1716_v8, %v1715_v43 }
0x1635   :  { %2270 = vmatmul.mubr.msk.bf16.vlgmr.msra.gmra.mxu0 %vm898_vm6, %v1717_v9 }
0x16f5   :  { %v1796_v12 = vpop.f32.mrf.mxu0 }
0x16f6   :  { %v1797_v13 = vadd.f32 %v2021_v10, %v1796_v12 }
0x16f7   :  { %v2271_v14 = vpop.f32.mrf.mxu0 }
0x16f8   :  { %v1803_v17 = vadd.f32 %v1797_v13, %v2878_v15 }
0x16f9   :  { %v1799_v11 = vpop.f32.mrf.mxu0 }
0x16fa   :  { %1805 = vst.msk [vmem:[#allocation2] sm:$0xff] %vm93_vm0, %v1803_v17  ;;  %v1800_v39 = vadd.f32 %v2021_v10, %v1799_v11 }
0x16fb   :  { %v2272_v19 = vpop.f32.mrf.mxu0 }
0x16fc   :  { %v1804_v20 = vadd.f32 %v1800_v39, %v2883_v18  ;;  %v2321_v18 = vld [vmem:[%s2968_s17 + $0x8] sm:$0xff]   ;;  %s2434_s17 = smov [#allocation5]  }
0x16fd   :  { %2274 = vmatpush3.bf16.msra.mxu1 %v2321_v18  ;;  %s1918_s19 = sshll.u32 %s2434_s17, 4  ;;  %s1919_s19 = int_to_ptr.vmem [resolvable:$true] %s1918_s19 }
0x16fe   :  { %1806 = vst.msk [vmem:[#allocation2 + $0x8] sm:$0xff] %vm93_vm0, %v1804_v20  ;;  %2275 = vmatprep.subr.bf16.mxu1 %v2426_v16  ;;  %s2401_s11 = scalar_lea.vmem %s1919_s19, 32  ;;  %p2406_p6 = scmp.lt.s32.totalorder %s1919_s19, %s1919_s19 }
0x16ff   :  { %p2402_p5 = scmp.ne.s32.totalorder %s1919_s19, %s2401_s11  ;;  %p2407_p7 = scmp.lt.s32.totalorder %s2401_s11, %s2401_s11 }
0x1701   :  { %2276 = vmatpush3.bf16.msra.mxu1 %v2322_v30  ;;  %p2408_p8 = por %p2407_p7, %p2406_p6 }
0x1703   :  { %p2409_p9 = pnand %p2408_p8, %p2402_p5 }
0x1705   :  { %v2028_v22 = vld [vmem:[%s1927_s6 + $0x8] sm:$0x1]  ;;  %v1810_v45 = vld [vmem:[%s1809_s14] sm:$0x1] }
0x1706   :  { %v1817_v23 = vrot.slane %v2028_v22, 7 }
0x1708   :  { %v1820_v24 = vsel %vm1819_vm7, %v1810_v45, %v1817_v23 }
0x1709   :  { %v1824_v15 = vsel %vm1823_vm8, %v1820_v24, 0.0 }
0x170a   :  { %1825 = vadd.xlane.f32.xlu0 %v1824_v15 }
0x1793   :  { %v1826_v26 = vpop.xlane.xlu0 %1825 }
0x1794   :  { %v1827_v27 = vmul.f32 0.03125, %v1826_v26 }
0x1796   :  { %v1828_v28 = vsub.f32 %v1820_v24, %v1827_v27 }
0x1798   :  { %v1829_v29 = vmul.f32 %v1828_v28, %v1828_v28 }
0x179a   :  { %v1830_v1 = vsel %vm1823_vm8, %v1829_v29, 0.0 }
0x179b   :  { %1831 = vadd.xlane.f32.xlu1 %v1830_v1 }
0x1824   :  { %v1832_v31 = vpop.xlane.xlu1 %1831 }
0x1825   :  { %v1833_v32 = vmul.f32 0.03125, %v1832_v31 }
0x1827   :  { %v1834_v53 = vadd.f32 1e-05, %v1833_v32 }
0x1829   :  { %2387 = vrsqrt.f32 %v1834_v53 }
0x1836   :  { %v2388_v33 = vpop.eup %2387 }
0x1837   :  { %v1836_v36 = vmul.f32 %v2388_v33, %v1828_v28 }
0x1839   :  { %v1843_v40 = vmul.f32 %v2029_v34, %v1836_v36 }
0x183b   :  { %v1850_v41 = vadd.f32 %v2030_v37, %v1843_v40 }
0x183d   :  { %v1851_v57 = vpack.c.bf16 %v1850_v41, %v1850_v41 }
0x183f   :  { %2278 = vmatmul.mubr.msk.bf16.vlgmr.msra.gmra.mxu1 %vm93_vm0, %v1851_v57 }
0x18ff   :  { %v1905_v16 = vpop.f32.mrf.mxu1 }
0x1900   :  { %1911 = vst [vmem:[#allocation5] sm:$0x3] %v1905_v16 }
0x1901   :  { %v2279_v38 = vpop.f32.mrf.mxu1 }
0x1902   :  { %2412 = shalt.err (!%p2409_p9)
}
0x1903   :  { %1921 = dma.vmem_to_hbm [thread:$0]  %s1919_s19, 32, %s2969_s18, [#allocation6]   ;;  %v1908_v44 = vpop.f32.mrf.mxu1 }
0x1905   :  { %v2280_v35 = vpop.f32.mrf.mxu1 }
0x1906   :  { %2423 = dma.done.wait [#allocation6], 32  }
0x1907   :  { %2424 = vsyncadd [#allocation6], 4294967264 }
0x1908   :  { %1925 = vsyncpa [#allocation6], 1 }

// kernel: _lambda_.2
= control target key start
LH: loop header
LB: loop body
LE: loop exit
PB: predicated region body
PF: predicated region fallthrough
CT: control target
= control target key end

     0   :  { %s7352_s0 = inlined_call_operand.vmem [shape: bf16[2,5,192], index: 0, kind: input, shape index: {}]   ;;  %s7353_s1 = inlined_call_operand.vmem [shape: bf16[192,32], index: 1, kind: input, shape index: {}]   ;;  %s7354_s2 = inlined_call_operand.vmem [shape: f32[5,32], index: 2, kind: input, shape index: {}]   ;;  %s7355_s3 = inlined_call_operand.vmem [shape: f32[1,32], index: 3, kind: input, shape index: {}, may-alias: {3,17}]   ;;  %s7356_s4 = inlined_call_operand.vmem [shape: f32[1,32], index: 4, kind: input, shape index: {}, may-alias: {4,18}]   ;;  %s7357_s5 = inlined_call_operand.vmem [shape: f32[2,1,32], index: 5, kind: input, shape index: {}, may-alias: {5,11}]   ;;  %s7358_s6 = inlined_call_operand.vmem [shape: f32[2,1,32], index: 6, kind: input, shape index: {}, may-alias: {6,10,12,16}]   ;;  %s7359_s7 = inlined_call_operand.vmem [shape: bf16[2,32,96], index: 7, kind: input, shape index: {}]   ;;  %s7360_s8 = inlined_call_operand.vmem [shape: f32[2,1,96], index: 8, kind: input, shape index: {}]   ;;  %s7361_s9 = inlined_call_operand.vmem [shape: bf16[2,32,32], index: 9, kind: input, shape index: {}]   ;;  %s7362_s10 = inlined_call_operand.vmem [shape: f32[2,1,32], index: 10, kind: input, shape index: {}, may-alias: {6,10,12,16}]   ;;  %s7363_s11 = inlined_call_operand.vmem [shape: f32[2,1,32], index: 11, kind: input, shape index: {}, may-alias: {5,11}]   ;;  %s7364_s12 = inlined_call_operand.vmem [shape: f32[2,1,32], index: 12, kind: input, shape index: {}, may-alias: {6,10,12,16}]   ;;  %s7365_s13 = inlined_call_operand.vmem [shape: bf16[2,32,64], index: 13, kind: input, shape index: {}]   ;;  %s7366_s14 = inlined_call_operand.vmem [shape: f32[2,1,64], index: 14, kind: input, shape index: {}]   ;;  %s7367_s15 = inlined_call_operand.vmem [shape: bf16[2,64,32], index: 15, kind: input, shape index: {}]   ;;  %s7368_s16 = inlined_call_operand.vmem [shape: f32[2,1,32], index: 16, kind: input, shape index: {}, may-alias: {6,10,12,16}]   ;;  %s7369_s17 = inlined_call_operand.vmem [shape: f32[1,32], index: 17, kind: input, shape index: {}, may-alias: {3,17}]   ;;  %s7370_s18 = inlined_call_operand.vmem [shape: f32[1,32], index: 18, kind: input, shape index: {}, may-alias: {4,18}]   ;;  %s7371_s19 = inlined_call_operand.vmem [shape: bf16[32,128], index: 19, kind: input, shape index: {}]   ;;  %s7372_s20 = inlined_call_operand.hbm [shape: f32[2,128], index: 20, kind: output, shape index: {}]  }
   0x1   :  { %7389 = sst [smem:[#allocation9_spill]] %s7352_s0 }
   0x2   :  { %7390 = sst [smem:[#allocation10_spill]] %s7353_s1 }
   0x3   :  { %7391 = sst [smem:[#allocation11_spill]] %s7354_s2 }
   0x4   :  { %7392 = sst [smem:[#allocation12_spill]] %s7355_s3 }
   0x5   :  { %7393 = sst [smem:[#allocation13_spill]] %s7356_s4 }
   0x6   :  { %s7394_s23 = sld [smem:[#allocation10_spill]]  ;;  %v5981_v1 = vmov 0   ;;  %v82_v4 = vlaneseq  ;;  %v5982_v10 = vmov 1966171168  }
   0x7   :  { %289 = vmatprep.subr.bf16.mxu0 %v5981_v1  ;;  %s7395_s0 = sld [smem:[#allocation9_spill]]  ;;  %v80_v11 = vunpack.c.l.s4 %v5982_v10 }
   0x8   :  { %v6114_v6 = vshrl.u32 %v82_v4, 7 }
   0x9   :  { %v81_v13 = vunpack.c.0.s8 %v80_v11 }
   0xb   :  { %v6130_v16 = vsub.s32 %v81_v13, %v6114_v6 }
   0xc   :  { %v5854_v0 = vld [vmem:[%s7394_s23 + $0x38] sm:$0xff]   ;;  %v5855_v2 = vld [vmem:[%s7394_s23 + $0x30] sm:$0xff]   ;;  %v5856_v3 = vld [vmem:[%s7394_s23 + $0x28] sm:$0xff]  }
   0xd   :  { %290 = vmatpush1.bf16.msra.mxu0 %v5854_v0  ;;  %v5857_v5 = vld [vmem:[%s7394_s23 + $0x20] sm:$0xff]   ;;  %v5858_v7 = vld [vmem:[%s7394_s23 + $0x18] sm:$0xff]   ;;  %v5479_v9 = vld.sshfl [vmem:[%s7395_s0 + $0x8] sm:$0x5f pattern:$0x75316420] }
   0xe   :  { %291 = vmatprep.subr.bf16.mxu0 %v5981_v1  ;;  %v5478_v8 = vld.sshfl [vmem:[%s7395_s0] sm:$0x5f pattern:$0x75316420]  ;;  %v101_v14 = vcombine.high %v5479_v9, %v5479_v9  ;;  %v5859_v15 = vld [vmem:[%s7394_s23 + $0x10] sm:$0xff]   ;;  %v108_v19 = vrot.slane %v5479_v9, %v6130_v16  ;;  %v5860_v21 = vld [vmem:[%s7394_s23 + $0x8] sm:$0xff]  }
   0xf   :  { %v78_v12 = vcombine.high %v5478_v8, %v5478_v8  ;;  %v85_v17 = vrot.slane %v5478_v8, %v6130_v16  ;;  %v5861_v30 = vld [vmem:[%s7394_s23] sm:$0xff]  }
  0x10   :  { %v115_v20 = vrot.slane %v101_v14, %v6130_v16  ;;  %v116_v23 = vcombine.high %v108_v19, %v108_v19  ;;  %v123_v24 = vunpack.i.h.s16 %v108_v19 }
  0x11   :  { %292 = vmatpush1.bf16.msra.mxu0 %v5855_v2  ;;  %v92_v18 = vrot.slane %v78_v12, %v6130_v16  ;;  %v93_v22 = vcombine.high %v85_v17, %v85_v17 }
  0x12   :  { %293 = vmatprep.subr.bf16.mxu0 %v5981_v1  ;;  %v125_v25 = vunpack.i.h.s16 %v115_v20  ;;  %v5481_v28 = vpack.i.b16 %v115_v20, %v123_v24 }
  0x13   :  { %v156_v26 = vcombine.low %v85_v17, %v92_v18  ;;  %v5480_v27 = vpack.i.b16 %v108_v19, %v93_v22 }
  0x14   :  { %v5482_v29 = vpack.i.b16 %v116_v23, %v125_v25 }
  0x15   :  { %294 = vmatpush1.bf16.msra.mxu0 %v5856_v3  ;;  %v157_v31 = vcombine.low %v5480_v27, %v5481_v28  ;;  %v164_v32 = vrot.slane %v156_v26, %v6130_v16 }
  0x16   :  { %295 = vmatprep.subr.bf16.mxu0 %v5981_v1  ;;  %v178_v33 = vrot.slane %v5482_v29, %v6130_v16 }
  0x17   :  { %v171_v34 = vrot.slane %v157_v31, %v6130_v16 }
  0x18   :  { %v181_v35 = vcombine.high %v178_v33, %v178_v33 }
  0x19   :  { %296 = vmatpush1.bf16.msra.mxu0 %v5857_v5 }
  0x1a   :  { %297 = vmatprep.subr.bf16.mxu0 %v5981_v1 }
  0x1d   :  { %298 = vmatpush1.bf16.msra.mxu0 %v5858_v7 }
  0x1e   :  { %299 = vmatprep.subr.bf16.mxu0 %v5981_v1 }
  0x21   :  { %300 = vmatpush1.bf16.msra.mxu0 %v5859_v15 }
  0x22   :  { %301 = vmatprep.subr.bf16.mxu0 %v5981_v1 }
  0x25   :  { %302 = vmatpush1.bf16.msra.mxu0 %v5860_v21 }
  0x26   :  { %303 = vmatprep.subr.bf16.mxu0 %v5981_v1 }
  0x27   :  { %25 = vsyncpa [#allocation3], 0  ;;  %v180_v36 = vcombine.high %v164_v32, %v171_v34  ;;  %v209_v37 = vrot.slane %v181_v35, %v6130_v16  ;;  %v5862_v38 = vld [vmem:[%s7394_s23 + $0x58] sm:$0xff]   ;;  %vm285_vm0 = vcmask 523264   ;;  %v5863_v41 = vld [vmem:[%s7394_s23 + $0x50] sm:$0xff]   ;;  %v179_v42 = vcombine.low %v164_v32, %v171_v34  ;;  %s7396_s2 = sld [smem:[#allocation11_spill]] }
  0x28   :  { %v5864_v43 = vld [vmem:[%s7394_s23 + $0x48] sm:$0xff]   ;;  %v202_v45 = vrot.slane %v178_v33, %v6130_v16  ;;  %v5865_v46 = vld [vmem:[%s7394_s23 + $0x40] sm:$0xff]   ;;  %vm547_vm1 = vcmask 261120   ;;  %vm551_vm2 = vcmask 254976   ;;  %s7400_s3 = sld [smem:[#allocation12_spill]]  ;;  %vm5984_vm3 = vmmov 0  }
  0x29   :  { %304 = vmatpush1.bf16.msra.mxu0 %v5861_v30  ;;  %v195_v39 = vrot.slane %v180_v36, %v6130_v16  ;;  %v188_v44 = vrot.slane %v179_v42, %v6130_v16  ;;  %s7401_s28 = sld [smem:[#allocation13_spill]]  ;;  %s5985_s25 = smov 96   ;;  %vm1599_vm4 = vcmask 130048   ;;  %vm1720_vm5 = vcmask 36864  }
  0x2a   :  { %313 = vmatprep.subr.bf16.mxu0 %v5981_v1  ;;  %s5987_s26 = smov 80   ;;  %s5988_s27 = smov 112   ;;  %vm1751_vm6 = vcmask 1041408   ;;  %vm1752_vm7 = vcmask 1042432   ;;  %vm1747_vm8 = vcmask 39936   ;;  %vm5372_vm9 = vcmask 1040384  }
  0x2b   :  { %v211_v40 = vcombine.low %v195_v39, %v209_v37  ;;  %v210_v47 = vcombine.low %v188_v44, %v202_v45  ;;  %v6197_v45 = vsub.s32 0, %v6114_v6  ;;  %s5991_s4 = smov 16  }
  0x2d   :  { %314 = vmatpush2.bf16.msra.mxu0 %v5862_v38  ;;  %5495 = vmatprep.mubr.msk.bf16.mxu0 %vm285_vm0, %v211_v40  ;;  %v413_v48 = vld [vmem:[%s7396_s2] sm:$0x1f] }
  0x2e   :  { %315 = vmatprep.subr.bf16.mxu0 %v5981_v1  ;;  %v422_v49 = vrot.slane %v413_v48, %v6130_v16  ;;  %v415_v50 = vcombine.high %v413_v48, %v413_v48  ;;  %v6206_v48 = vsub.s32 3, %v6114_v6 }
  0x30   :  { %v430_v51 = vcombine.high %v422_v49, %v422_v49  ;;  %v429_v55 = vrot.slane %v415_v50, %v6130_v16  ;;  %v437_v56 = vrot.slane %v422_v49, %v6130_v16  ;;  %v6209_v50 = vsub.s32 4, %v6114_v6 }
  0x31   :  { %316 = vmatpush2.bf16.msra.mxu0 %v5863_v41 }
  0x32   :  { %317 = vmatprep.subr.bf16.mxu0 %v5981_v1  ;;  %v451_v57 = vrot.slane %v430_v51, %v6130_v16  ;;  %v444_v2 = vrot.slane %v429_v55, %v6130_v16  ;;  %v452_v4 = vcombine.high %v437_v56, %v437_v56  ;;  %v6212_v51 = vsub.s32 5, %v6114_v6 }
  0x34   :  { %v453_v7 = vcombine.high %v451_v57, %v451_v57  ;;  %7397 = vst [vmem:[#allocation5_spill] sm:$0xff] %v6212_v51 }
  0x35   :  { %318 = vmatpush2.bf16.msra.mxu0 %v5864_v43 }
  0x36   :  { %319 = vmatprep.subr.bf16.mxu0 %v5981_v1 }
  0x39   :  { %320 = vmatpush2.bf16.msra.mxu0 %v5865_v46  ;;  %v6200_v46 = vsub.s32 1, %v6114_v6 }
  0x3c   :  { %322 = vmatmul.mubr.bf16.vlgmr.msra.gmra.mxu0 %v210_v47  ;;  %v6203_v47 = vsub.s32 2, %v6114_v6 }
  0xfc   :  { %v323_v52 = vpop.f32.mrf.mxu0 }
  0xfd   :  { %v332_v53 = vcombine.high %v323_v52, %v323_v52  ;;  %v339_v54 = vrot.slane %v323_v52, %v6130_v16  ;;  %v6215_v52 = vsub.s32 6, %v6114_v6 }
  0xfe   :  { %v325_v58 = vpop.f32.mrf.mxu0 }
  0xff   :  { %v346_v59 = vrot.slane %v332_v53, %v6130_v16  ;;  %v347_v60 = vcombine.high %v339_v54, %v339_v54  ;;  %v355_v61 = vrot.slane %v339_v54, %v6130_v16  ;;  %7398 = vst [vmem:[#allocation6_spill] sm:$0xff] %v6215_v52  ;;  %v6218_v53 = vsub.s32 7, %v6114_v6 }
 0x100   :  { %v326_v62 = vpop.f32.mrf.mxu0 }
 0x101   :  { %v348_v63 = vcombine.high %v346_v59, %v346_v59  ;;  %v362_v0 = vrot.slane %v346_v59, %v6130_v16  ;;  %v369_v1 = vrot.slane %v347_v60, %v6130_v16  ;;  %v377_v3 = vcombine.high %v355_v61, %v355_v61  ;;  %7399 = vst [vmem:[#allocation7_spill] sm:$0xff] %v6218_v53 }
 0x102   :  { %v387_v5 = vrot.slane %v326_v62, %v6130_v16  ;;  %v328_v8 = vpop.f32.mrf.mxu0  ;;  %v459_v13 = vadd.f32 %v437_v56, %v355_v61 }
 0x103   :  { %v376_v9 = vrot.slane %v348_v63, %v6130_v16  ;;  %v378_v10 = vcombine.high %v362_v0, %v362_v0  ;;  %v379_v11 = vcombine.high %v369_v1, %v369_v1  ;;  %v460_v12 = vadd.f32 %v451_v57, %v369_v1 }
 0x104   :  { %v388_v14 = vcombine.high %v387_v5, %v387_v5  ;;  %v463_v17 = vadd.f32 %v444_v2, %v362_v0  ;;  %v395_v19 = vrot.slane %v387_v5, %v6130_v16  ;;  %v461_v20 = vadd.f32 %v452_v4, %v377_v3 }
 0x105   :  { %v380_v15 = vcombine.high %v376_v9, %v376_v9  ;;  %v464_v18 = vadd.f32 %v437_v56, %v376_v9  ;;  %v481_v21 = vcombine.low %v459_v13, %v460_v12  ;;  %v462_v23 = vadd.f32 %v453_v7, %v379_v11 }
 0x106   :  { %v402_v22 = vrot.slane %v388_v14, %v6130_v16  ;;  %v465_v24 = vadd.f32 %v451_v57, %v378_v10  ;;  %v467_v29 = vadd.f32 %v453_v7, %v395_v19 }
 0x107   :  { %v466_v25 = vadd.f32 %v452_v4, %v380_v15  ;;  %v483_v26 = vcombine.low %v463_v17, %v464_v18  ;;  %v482_v28 = vcombine.low %v461_v20, %v462_v23  ;;  %v491_v31 = vrot.slane %v481_v21, %v6130_v16 }
 0x108   :  { %v468_v27 = vadd.f32 %v444_v2, %v402_v22 }
 0x109   :  { %v484_v30 = vcombine.low %v465_v24, %v466_v25  ;;  %v498_v32 = vrot.slane %v482_v28, %v6130_v16  ;;  %v505_v33 = vrot.slane %v483_v26, %v6130_v16 }
 0x10a   :  { %v530_v35 = vcombine.low %v467_v29, %v468_v27 }
 0x10b   :  { %v512_v34 = vrot.slane %v484_v30, %v6130_v16  ;;  %v513_v36 = vcombine.low %v491_v31, %v498_v32 }
 0x10c   :  { %v537_v40 = vrot.slane %v530_v35, %v6130_v16 }
 0x10d   :  { %v514_v37 = vcombine.low %v505_v33, %v512_v34  ;;  %v521_v38 = vrot.slane %v513_v36, %v6130_v16 }
 0x10e   :  { %v544_v43 = vrot.slane %v537_v40, %v6130_v16 }
 0x10f   :  { %v528_v39 = vrot.slane %v514_v37, %v6130_v16 }
 0x110   :  { %v552_v44 = vsel %vm551_vm2, %v544_v43, 0.0  ;;  %v5497_v43 = vld [vmem:[%s7401_s28] ss:$0 sm:$0xff]  ;;  %s5990_s28 = smov 48  }
 0x111   :  { %v529_v41 = vcombine.low %v521_v38, %v528_v39 }
 0x113   :  { %v548_v42 = vsel %vm547_vm1, %v529_v41, 0.0 }
 0x114   :  { %549 = vadd.xlane.f32.xlu0 %v548_v42  ;;  %v5496_v42 = vld [vmem:[%s7400_s3] ss:$0 sm:$0xff]  ;;  %s5986_s3 = smov 64  }
 0x118   :  { %553 = vadd.xlane.f32.xlu0 %v552_v44 }
 0x19d   :  { %v550_v49 = vpop.xlane.xlu0 %549 }
 0x19e   :  { %v556_v54 = vmul.f32 0.03125, %v550_v49 }
 0x1a0   :  { %v563_v55 = vrot.slane %v556_v54, %v6197_v45  ;;  %v567_v56 = vrot.slane %v556_v54, %v6200_v46  ;;  %v571_v57 = vrot.slane %v556_v54, %v6203_v47  ;;  %v575_v58 = vrot.slane %v556_v54, %v6206_v48 }
 0x1a1   :  { %v554_v59 = vpop.xlane.xlu0 %553  ;;  %v579_v60 = vrot.slane %v556_v54, %v6209_v50  ;;  %v583_v61 = vrot.slane %v556_v54, %v6212_v51  ;;  %v587_v62 = vrot.slane %v556_v54, %v6215_v52  ;;  %v591_v63 = vrot.slane %v556_v54, %v6218_v53 }
 0x1a2   :  { %v557_v6 = vmul.f32 0.03125, %v554_v59  ;;  %v6228_v0 = vsub.f32 %v459_v13, %v563_v55  ;;  %v6230_v1 = vsub.f32 %v460_v12, %v567_v56  ;;  %v6232_v2 = vsub.f32 %v461_v20, %v571_v57 }
 0x1a3   :  { %v6234_v3 = vsub.f32 %v462_v23, %v575_v58  ;;  %v6236_v4 = vsub.f32 %v463_v17, %v579_v60  ;;  %v6238_v5 = vsub.f32 %v464_v18, %v583_v61  ;;  %v6240_v7 = vsub.f32 %v465_v24, %v587_v62 }
 0x1a4   :  { %v595_v8 = vrot.slane %v557_v6, %v6197_v45  ;;  %v599_v9 = vrot.slane %v557_v6, %v6200_v46  ;;  %v6244_v10 = vsub.f32 %v466_v25, %v591_v63  ;;  %v620_v11 = vmul.f32 %v6228_v0, %v6228_v0 }
 0x1a5   :  { %v621_v12 = vmul.f32 %v6230_v1, %v6230_v1  ;;  %v622_v13 = vmul.f32 %v6232_v2, %v6232_v2  ;;  %v623_v14 = vmul.f32 %v6234_v3, %v6234_v3  ;;  %v624_v15 = vmul.f32 %v6236_v4, %v6236_v4 }
 0x1a6   :  { %v6256_v17 = vsub.f32 %v467_v29, %v595_v8  ;;  %v6258_v18 = vsub.f32 %v468_v27, %v599_v9  ;;  %v625_v19 = vmul.f32 %v6238_v5, %v6238_v5  ;;  %v626_v20 = vmul.f32 %v6240_v7, %v6240_v7 }
 0x1a7   :  { %v627_v21 = vmul.f32 %v6244_v10, %v6244_v10  ;;  %v640_v22 = vcombine.low %v620_v11, %v621_v12  ;;  %v641_v23 = vcombine.low %v622_v13, %v623_v14  ;;  %v785_v54 = vcombine.high %v5496_v42, %v5496_v42 }
 0x1a8   :  { %v628_v24 = vmul.f32 %v6256_v17, %v6256_v17  ;;  %v629_v25 = vmul.f32 %v6258_v18, %v6258_v18  ;;  %v642_v26 = vcombine.low %v624_v15, %v625_v19  ;;  %v857_v55 = vcombine.high %v5497_v43, %v5497_v43 }
 0x1a9   :  { %v643_v27 = vcombine.low %v626_v20, %v627_v21  ;;  %v650_v28 = vrot.slane %v640_v22, %v6130_v16  ;;  %v657_v29 = vrot.slane %v641_v23, %v6130_v16  ;;  %v792_v59 = vrot.slane %v5496_v42, %v6130_v16 }
 0x1aa   :  { %v664_v30 = vrot.slane %v642_v26, %v6130_v16  ;;  %v689_v33 = vcombine.low %v628_v24, %v629_v25  ;;  %v799_v60 = vrot.slane %v785_v54, %v6130_v16  ;;  %v864_v61 = vrot.slane %v5497_v43, %v6130_v16 }
 0x1ab   :  { %v671_v31 = vrot.slane %v643_v27, %v6130_v16  ;;  %v672_v32 = vcombine.low %v650_v28, %v657_v29  ;;  %v871_v62 = vrot.slane %v857_v55, %v6130_v16  ;;  %v800_v6 = vcombine.high %v792_v59, %v792_v59 }
 0x1ac   :  { %v696_v37 = vrot.slane %v689_v33, %v6130_v16  ;;  %v801_v8 = vcombine.high %v799_v60, %v799_v60  ;;  %v872_v9 = vcombine.high %v864_v61, %v864_v61  ;;  %v808_v12 = vrot.slane %v792_v59, %v6130_v16 }
 0x1ad   :  { %v673_v34 = vcombine.low %v664_v30, %v671_v31  ;;  %v680_v35 = vrot.slane %v672_v32, %v6130_v16  ;;  %v873_v11 = vcombine.high %v871_v62, %v871_v62  ;;  %v815_v13 = vrot.slane %v799_v60, %v6130_v16 }
 0x1ae   :  { %v703_v40 = vrot.slane %v696_v37, %v6130_v16  ;;  %v822_v14 = vrot.slane %v800_v6, %v6130_v16  ;;  %v829_v15 = vrot.slane %v801_v8, %v6130_v16  ;;  %v880_v19 = vrot.slane %v864_v61, %v6130_v16 }
 0x1af   :  { %v687_v36 = vrot.slane %v673_v34, %v6130_v16  ;;  %v887_v20 = vrot.slane %v871_v62, %v6130_v16  ;;  %v894_v21 = vrot.slane %v872_v9, %v6130_v16  ;;  %v901_v22 = vrot.slane %v873_v11, %v6130_v16 }
 0x1b0   :  { %v709_v41 = vsel %vm551_vm2, %v703_v40, 0.0  ;;  %v830_v23 = vcombine.high %v808_v12, %v808_v12  ;;  %v831_v24 = vcombine.high %v815_v13, %v815_v13  ;;  %v832_v25 = vcombine.high %v822_v14, %v822_v14 }
 0x1b1   :  { %v688_v38 = vcombine.low %v680_v35, %v687_v36  ;;  %v833_v26 = vcombine.high %v829_v15, %v829_v15  ;;  %v902_v28 = vcombine.high %v880_v19, %v880_v19  ;;  %v903_v29 = vcombine.high %v887_v20, %v887_v20 }
 0x1b2   :  { %v904_v30 = vcombine.high %v894_v21, %v894_v21  ;;  %v905_v31 = vcombine.high %v901_v22, %v901_v22 }
 0x1b3   :  { %v706_v39 = vsel %vm547_vm1, %v688_v38, 0.0 }
 0x1b4   :  { %707 = vadd.xlane.f32.xlu1 %v706_v39 }
 0x1b8   :  { %710 = vadd.xlane.f32.xlu1 %v709_v41 }
 0x23d   :  { %v708_v44 = vpop.xlane.xlu1 %707 }
 0x23e   :  { %v712_v49 = vmul.f32 0.03125, %v708_v44 }
 0x240   :  { %v714_v56 = vadd.f32 1e-05, %v712_v49 }
 0x241   :  { %v711_v57 = vpop.xlane.xlu1 %710 }
 0x242   :  { %5889 = vrsqrt.f32 %v714_v56  ;;  %v713_v58 = vmul.f32 0.03125, %v711_v57 }
 0x244   :  { %v715_v63 = vadd.f32 1e-05, %v713_v58 }
 0x246   :  { %5891 = vrsqrt.f32 %v715_v63 }
 0x24f   :  { %v5890_v27 = vpop.eup %5889 }
 0x250   :  { %v723_v32 = vrot.slane %v5890_v27, %v6197_v45  ;;  %v727_v33 = vrot.slane %v5890_v27, %v6200_v46  ;;  %v731_v34 = vrot.slane %v5890_v27, %v6203_v47  ;;  %v735_v35 = vrot.slane %v5890_v27, %v6206_v48 }
 0x251   :  { %v739_v36 = vrot.slane %v5890_v27, %v6209_v50  ;;  %v743_v37 = vrot.slane %v5890_v27, %v6212_v51  ;;  %v747_v38 = vrot.slane %v5890_v27, %v6215_v52  ;;  %v751_v39 = vrot.slane %v5890_v27, %v6218_v53 }
 0x252   :  { %v770_v40 = vmul.f32 %v723_v32, %v6228_v0  ;;  %v771_v41 = vmul.f32 %v727_v33, %v6230_v1  ;;  %v772_v42 = vmul.f32 %v731_v34, %v6232_v2  ;;  %v773_v43 = vmul.f32 %v735_v35, %v6234_v3 }
 0x253   :  { %v5892_v44 = vpop.eup %5891  ;;  %v774_v49 = vmul.f32 %v739_v36, %v6236_v4  ;;  %v775_v54 = vmul.f32 %v743_v37, %v6238_v5  ;;  %v776_v55 = vmul.f32 %v747_v38, %v6240_v7  ;;  %v777_v56 = vmul.f32 %v751_v39, %v6244_v10 }
 0x254   :  { %v755_v57 = vrot.slane %v5892_v44, %v6197_v45  ;;  %v759_v58 = vrot.slane %v5892_v44, %v6200_v46  ;;  %v842_v0 = vmul.f32 %v808_v12, %v770_v40  ;;  %v843_v59 = vmul.f32 %v822_v14, %v771_v41 }
 0x255   :  { %v844_v1 = vmul.f32 %v830_v23, %v772_v42  ;;  %v845_v60 = vmul.f32 %v832_v25, %v773_v43  ;;  %v846_v2 = vmul.f32 %v815_v13, %v774_v49  ;;  %v847_v61 = vmul.f32 %v829_v15, %v775_v54 }
 0x256   :  { %v848_v3 = vmul.f32 %v831_v24, %v776_v55  ;;  %v849_v62 = vmul.f32 %v833_v26, %v777_v56  ;;  %v6316_v63 = vadd.f32 %v880_v19, %v842_v0  ;;  %v6318_v4 = vadd.f32 %v894_v21, %v843_v59 }
 0x257   :  { %v6320_v5 = vadd.f32 %v902_v28, %v844_v1  ;;  %v6322_v7 = vadd.f32 %v904_v30, %v845_v60  ;;  %v6324_v10 = vadd.f32 %v887_v20, %v846_v2  ;;  %v6326_v6 = vadd.f32 %v901_v22, %v847_v61 }
 0x258   :  { %v6328_v8 = vadd.f32 %v903_v29, %v848_v3  ;;  %v6330_v9 = vadd.f32 %v905_v31, %v849_v62  ;;  %v936_v11 = vcombine.low %v6316_v63, %v6318_v4  ;;  %v778_v13 = vmul.f32 %v755_v57, %v6256_v17 }
 0x259   :  { %v937_v15 = vcombine.low %v6320_v5, %v6322_v7  ;;  %v938_v23 = vcombine.low %v6324_v10, %v6326_v6  ;;  %v779_v20 = vmul.f32 %v759_v58, %v6258_v18 }
 0x25a   :  { %v939_v22 = vcombine.low %v6328_v8, %v6330_v9  ;;  %v946_v24 = vrot.slane %v936_v11, %v6130_v16  ;;  %v850_v25 = vmul.f32 %v808_v12, %v778_v13 }
 0x25b   :  { %v953_v26 = vrot.slane %v937_v15, %v6130_v16  ;;  %v960_v27 = vrot.slane %v938_v23, %v6130_v16  ;;  %v851_v28 = vmul.f32 %v822_v14, %v779_v20 }
 0x25c   :  { %v967_v17 = vrot.slane %v939_v22, %v6130_v16  ;;  %v6346_v29 = vadd.f32 %v880_v19, %v850_v25 }
 0x25d   :  { %v968_v30 = vcombine.low %v946_v24, %v953_v26  ;;  %v6348_v31 = vadd.f32 %v894_v21, %v851_v28 }
 0x25e   :  { %v969_v32 = vcombine.low %v960_v27, %v967_v17 }
 0x25f   :  { %v976_v18 = vrot.slane %v968_v30, %v6130_v16  ;;  %v985_v33 = vcombine.low %v6346_v29, %v6348_v31 }
 0x260   :  { %v983_v12 = vrot.slane %v969_v32, %v6130_v16 }
 0x261   :  { %v992_v34 = vrot.slane %v985_v33, %v6130_v16 }
 0x262   :  { %v984_v35 = vcombine.low %v976_v18, %v983_v12 }
 0x263   :  { %v999_v14 = vrot.slane %v992_v34, %v6130_v16 }
 0x264   :  { %v1002_v36 = vsel %vm547_vm1, %v984_v35, 0.0 }
 0x265   :  { %1003 = vadd.xlane.f32.xlu0 %v1002_v36  ;;  %v1005_v19 = vsel %vm551_vm2, %v999_v14, 0.0 }
 0x266   :  { %1006 = vadd.xlane.f32.xlu1 %v1005_v19 }
 0x2ee   :  { %v1004_v21 = vpop.xlane.xlu0 %1003 }
 0x2ef   :  { %v1007_v37 = vpop.xlane.xlu1 %1006  ;;  %v1008_v38 = vmul.f32 0.03125, %v1004_v21 }
 0x2f0   :  { %v1009_v39 = vmul.f32 0.03125, %v1007_v37 }
 0x2f1   :  { %v1015_v40 = vrot.slane %v1008_v38, %v6197_v45  ;;  %v1019_v41 = vrot.slane %v1008_v38, %v6200_v46  ;;  %v1023_v42 = vrot.slane %v1008_v38, %v6203_v47  ;;  %v1027_v43 = vrot.slane %v1008_v38, %v6206_v48 }
 0x2f2   :  { %v1047_v44 = vrot.slane %v1009_v39, %v6197_v45  ;;  %v1051_v49 = vrot.slane %v1009_v39, %v6200_v46  ;;  %v1031_v54 = vrot.slane %v1008_v38, %v6209_v50  ;;  %v1035_v55 = vrot.slane %v1008_v38, %v6212_v51 }
 0x2f3   :  { %v1039_v56 = vrot.slane %v1008_v38, %v6215_v52  ;;  %v1043_v57 = vrot.slane %v1008_v38, %v6218_v53  ;;  %v6369_v58 = vsub.f32 %v6316_v63, %v1015_v40  ;;  %v6372_v0 = vsub.f32 %v6318_v4, %v1019_v41 }
 0x2f4   :  { %v6375_v59 = vsub.f32 %v6346_v29, %v1047_v44  ;;  %v6378_v1 = vsub.f32 %v6348_v31, %v1051_v49  ;;  %v6381_v60 = vsub.f32 %v6320_v5, %v1023_v42  ;;  %v6384_v2 = vsub.f32 %v6322_v7, %v1027_v43  ;;  %v5867_v43 = vld [vmem:[%s7359_s7 + $0x8] sm:$0xff]   ;;  %v5868_v49 = vld [vmem:[%s7359_s7] sm:$0xff]  }
 0x2f5   :  { %v6387_v61 = vsub.f32 %v6324_v10, %v1031_v54  ;;  %v6390_v3 = vsub.f32 %v6326_v6, %v1035_v55  ;;  %v6393_v62 = vsub.f32 %v6328_v8, %v1039_v56  ;;  %v6396_v11 = vsub.f32 %v6330_v9, %v1043_v57  ;;  %v5498_v57 = vld [vmem:[%s7357_s5] ss:$0 sm:$0xff] }
 0x2f6   :  { %v1080_v13 = vmul.f32 %v6375_v59, %v6375_v59  ;;  %v1081_v15 = vmul.f32 %v6378_v1, %v6378_v1  ;;  %v1072_v23 = vmul.f32 %v6369_v58, %v6369_v58  ;;  %v1073_v20 = vmul.f32 %v6372_v0, %v6372_v0 }
 0x2f7   :  { %v1074_v22 = vmul.f32 %v6381_v60, %v6381_v60  ;;  %v1075_v24 = vmul.f32 %v6384_v2, %v6384_v2  ;;  %v1076_v25 = vmul.f32 %v6387_v61, %v6387_v61  ;;  %v1077_v26 = vmul.f32 %v6390_v3, %v6390_v3 }
 0x2f8   :  { %v1141_v27 = vcombine.low %v1080_v13, %v1081_v15  ;;  %v1078_v28 = vmul.f32 %v6393_v62, %v6393_v62  ;;  %v1079_v17 = vmul.f32 %v6396_v11, %v6396_v11  ;;  %v1092_v30 = vcombine.low %v1072_v23, %v1073_v20  ;;  %v5499_v13 = vld [vmem:[%s7358_s6] ss:$0 sm:$0xff] }
 0x2f9   :  { %v1093_v32 = vcombine.low %v1074_v22, %v1075_v24  ;;  %v1094_v18 = vcombine.low %v1076_v25, %v1077_v26  ;;  %v7375_v44 = vmov 0.0   ;;  %v1237_v20 = vcombine.high %v5498_v57, %v5498_v57 }
 0x2fa   :  { %v1148_v33 = vrot.slane %v1141_v27, %v6130_v16  ;;  %v1095_v12 = vcombine.low %v1078_v28, %v1079_v17  ;;  %v1102_v34 = vrot.slane %v1092_v30, %v6130_v16  ;;  %5666 = vmatprep.subr.bf16.mxu1 %v7375_v44  ;;  %5670 = vmatprep.mubr.msk.bf16.mxu1 %vm5984_vm3, %v7375_v44 }
 0x2fb   :  { %v1109_v35 = vrot.slane %v1093_v32, %v6130_v16  ;;  %v1116_v14 = vrot.slane %v1094_v18, %v6130_v16  ;;  %5667 = vmatpush3.bf16.msra.mxu1 %v5867_v43  ;;  %5704 = vmatprep.subr.bf16.mxu0 %v7375_v44  ;;  %v1309_v22 = vcombine.high %v5499_v13, %v5499_v13 }
 0x2fc   :  { %v1155_v36 = vrot.slane %v1148_v33, %v6130_v16  ;;  %v1123_v19 = vrot.slane %v1095_v12, %v6130_v16  ;;  %5668 = vmatprep.subr.bf16.mxu1 %v7375_v44  ;;  %5706 = vmatprep.mubr.msk.bf16.mxu0 %vm5984_vm3, %v7375_v44  ;;  %v1251_v25 = vrot.slane %v1237_v20, %v6130_v16 }
 0x2fd   :  { %v1124_v21 = vcombine.low %v1102_v34, %v1109_v35  ;;  %v1244_v26 = vrot.slane %v5498_v57, %v6130_v16  ;;  %v1323_v27 = vrot.slane %v1309_v22, %v6130_v16  ;;  %v1316_v28 = vrot.slane %v5499_v13, %v6130_v16 }
 0x2fe   :  { %v1161_v37 = vsel %vm551_vm2, %v1155_v36, 0.0  ;;  %v1125_v38 = vcombine.low %v1116_v14, %v1123_v19  ;;  %v1253_v17 = vcombine.high %v1251_v25, %v1251_v25  ;;  %v1267_v12 = vrot.slane %v1251_v25, %v6130_v16 }
 0x2ff   :  { %1162 = vadd.xlane.f32.xlu1 %v1161_v37  ;;  %v1132_v39 = vrot.slane %v1124_v21, %v6130_v16  ;;  %5669 = vmatpush3.bf16.msra.mxu1 %v5868_v49  ;;  %v1252_v30 = vcombine.high %v1244_v26, %v1244_v26  ;;  %v1325_v32 = vcombine.high %v1323_v27, %v1323_v27 }
 0x300   :  { %v1139_v40 = vrot.slane %v1125_v38, %v6130_v16  ;;  %5674 = vmatprep.subr.bf16.mxu1 %v7375_v44  ;;  %v1324_v18 = vcombine.high %v1316_v28, %v1316_v28  ;;  %v1281_v14 = vrot.slane %v1253_v17, %v6130_v16  ;;  %v1260_v36 = vrot.slane %v1244_v26, %v6130_v16 }
 0x301   :  { %v1274_v19 = vrot.slane %v1252_v30, %v6130_v16  ;;  %v1339_v21 = vrot.slane %v1323_v27, %v6130_v16  ;;  %v1353_v37 = vrot.slane %v1325_v32, %v6130_v16  ;;  %v1283_v43 = vcombine.high %v1267_v12, %v1267_v12 }
 0x302   :  { %v1140_v41 = vcombine.low %v1132_v39, %v1139_v40  ;;  %v1332_v40 = vrot.slane %v1316_v28, %v6130_v16 }
 0x303   :  { %v1284_v49 = vcombine.high %v1274_v19, %v1274_v19  ;;  %v1357_v20 = vcombine.high %v1353_v37, %v1353_v37 }
 0x304   :  { %v1158_v42 = vsel %vm547_vm1, %v1140_v41, 0.0  ;;  %v1346_v41 = vrot.slane %v1324_v18, %v6130_v16 }
 0x305   :  { %1159 = vadd.xlane.f32.xlu0 %v1158_v42  ;;  %v1282_v42 = vcombine.high %v1260_v36, %v1260_v36 }
 0x388   :  { %v1163_v54 = vpop.xlane.xlu1 %1162 }
 0x389   :  { %v1165_v55 = vmul.f32 0.03125, %v1163_v54  ;;  %v1285_v54 = vcombine.high %v1281_v14, %v1281_v14 }
 0x38b   :  { %v1167_v56 = vadd.f32 1e-05, %v1165_v55  ;;  %v1354_v55 = vcombine.high %v1332_v40, %v1332_v40 }
 0x38d   :  { %5893 = vrsqrt.f32 %v1167_v56  ;;  %v1356_v56 = vcombine.high %v1346_v41, %v1346_v41 }
 0x38e   :  { %v1160_v15 = vpop.xlane.xlu0 %1159 }
 0x38f   :  { %v1164_v23 = vmul.f32 0.03125, %v1160_v15 }
 0x391   :  { %v1166_v24 = vadd.f32 1e-05, %v1164_v23  ;;  %v1355_v23 = vcombine.high %v1339_v21, %v1339_v21 }
 0x393   :  { %5895 = vrsqrt.f32 %v1166_v24 }
 0x39a   :  { %v5894_v33 = vpop.eup %5893 }
 0x39b   :  { %v1207_v34 = vrot.slane %v5894_v33, %v6197_v45  ;;  %v1211_v35 = vrot.slane %v5894_v33, %v6200_v46 }
 0x39d   :  { %v1230_v38 = vmul.f32 %v1207_v34, %v6375_v59  ;;  %v1231_v39 = vmul.f32 %v1211_v35, %v6378_v1 }
 0x39f   :  { %v1302_v13 = vmul.f32 %v1260_v36, %v1230_v38  ;;  %v1303_v15 = vmul.f32 %v1274_v19, %v1231_v39 }
 0x3a0   :  { %v5896_v57 = vpop.eup %5895 }
 0x3a1   :  { %v1175_v22 = vrot.slane %v5896_v57, %v6197_v45  ;;  %v1179_v59 = vrot.slane %v5896_v57, %v6200_v46  ;;  %v1183_v1 = vrot.slane %v5896_v57, %v6203_v47  ;;  %v1187_v24 = vrot.slane %v5896_v57, %v6206_v48 }
 0x3a2   :  { %v1191_v25 = vrot.slane %v5896_v57, %v6209_v50  ;;  %v1195_v26 = vrot.slane %v5896_v57, %v6212_v51  ;;  %v1199_v27 = vrot.slane %v5896_v57, %v6215_v52  ;;  %v1203_v28 = vrot.slane %v5896_v57, %v6218_v53 }
 0x3a3   :  { %v1222_v17 = vmul.f32 %v1175_v22, %v6369_v58  ;;  %v1223_v30 = vmul.f32 %v1179_v59, %v6372_v0  ;;  %v1224_v32 = vmul.f32 %v1183_v1, %v6381_v60  ;;  %v1225_v18 = vmul.f32 %v1187_v24, %v6384_v2 }
 0x3a4   :  { %v1226_v33 = vmul.f32 %v1191_v25, %v6387_v61  ;;  %v1227_v34 = vmul.f32 %v1195_v26, %v6390_v3  ;;  %v1228_v35 = vmul.f32 %v1199_v27, %v6393_v62  ;;  %v1229_v38 = vmul.f32 %v1203_v28, %v6396_v11 }
 0x3a5   :  { %v1294_v39 = vmul.f32 %v1260_v36, %v1222_v17  ;;  %v1295_v44 = vmul.f32 %v1274_v19, %v1223_v30  ;;  %v1296_v52 = vmul.f32 %v1282_v42, %v1224_v32  ;;  %v1297_v57 = vmul.f32 %v1284_v49, %v1225_v18 }
 0x3a6   :  { %v1298_v53 = vmul.f32 %v1267_v12, %v1226_v33  ;;  %v1299_v58 = vmul.f32 %v1281_v14, %v1227_v34  ;;  %v1300_v22 = vmul.f32 %v1283_v43, %v1228_v35  ;;  %v1301_v0 = vmul.f32 %v1285_v54, %v1229_v38 }
 0x3a7   :  { %v1366_v59 = vadd.f32 %v1332_v40, %v1294_v39  ;;  %v1367_v60 = vadd.f32 %v1346_v41, %v1295_v44  ;;  %v1368_v1 = vadd.f32 %v1354_v55, %v1296_v52  ;;  %v1369_v2 = vadd.f32 %v1356_v56, %v1297_v57 }
 0x3a8   :  { %v1370_v24 = vadd.f32 %v1339_v21, %v1298_v53  ;;  %v1371_v61 = vadd.f32 %v1353_v37, %v1299_v58  ;;  %v1372_v25 = vadd.f32 %v1355_v23, %v1300_v22  ;;  %v1373_v3 = vadd.f32 %v1357_v20, %v1301_v0 }
 0x3a9   :  { %v1374_v26 = vadd.f32 %v1332_v40, %v1302_v13  ;;  %v1375_v62 = vadd.f32 %v1346_v41, %v1303_v15  ;;  %v1386_v27 = vcombine.low %v1366_v59, %v1367_v60  ;;  %v1387_v11 = vcombine.low %v1368_v1, %v1369_v2  ;;  %v5500_v13 = vld [vmem:[%s7360_s8] ss:$0 sm:$0xff] }
 0x3aa   :  { %v1388_v36 = vcombine.low %v1370_v24, %v1371_v61  ;;  %v1389_v19 = vcombine.low %v1372_v25, %v1373_v3  ;;  %v7402_v55 = vmov 0.0  }
 0x3ab   :  { %v1396_v42 = vrot.slane %v1386_v27, %v6130_v16  ;;  %v1403_v12 = vrot.slane %v1387_v11, %v6130_v16  ;;  %v1435_v14 = vcombine.low %v1374_v26, %v1375_v62 }
 0x3ac   :  { %v1410_v43 = vrot.slane %v1388_v36, %v6130_v16  ;;  %v1417_v52 = vrot.slane %v1389_v19, %v6130_v16 }
 0x3ad   :  { %v1418_v44 = vcombine.low %v1396_v42, %v1403_v12  ;;  %v1442_v21 = vrot.slane %v1435_v14, %v6130_v16 }
 0x3ae   :  { %v1419_v53 = vcombine.low %v1410_v43, %v1417_v52 }
 0x3af   :  { %v1426_v37 = vrot.slane %v1418_v44, %v6130_v16  ;;  %v1449_v49 = vrot.slane %v1442_v21, %v6130_v16 }
 0x3b0   :  { %v1433_v40 = vrot.slane %v1419_v53, %v6130_v16 }
 0x3b2   :  { %v1434_v41 = vcombine.low %v1426_v37, %v1433_v40 }
 0x3b4   :  { %v1452_v54 = vpack.c.bf16 %v1449_v49, %v1434_v41 }
 0x3b6   :  { %5671 = vmatmul.mubr.msk.bf16.vlgmr.msra.gmra.mxu1 %vm547_vm1, %v1452_v54 }
 0x3b7   :  { %5676 = vmatprep.mubr.msk.bf16.mxu1 %vm5984_vm3, %v7402_v55 }
 0x476   :  { %v1513_v56 = vpop.f32.mrf.mxu1 }
 0x477   :  { %v1514_v20 = vadd.f32 %v5500_v13, %v1513_v56 }
 0x478   :  { %v5672_v15 = vpop.f32.mrf.mxu1 }
 0x47a   :  { %v1516_v23 = vpop.f32.mrf.mxu1 }
 0x47b   :  { %v1517_v28 = vadd.f32 %v5500_v13, %v1516_v23 }
 0x47c   :  { %v5673_v17 = vpop.f32.mrf.mxu1 }
 0x47d   :  { %v1520_v30 = vpack.c.bf16 %v1517_v28, %v1514_v20  ;;  %v5504_v32 = vpack.c.bf16 %v1517_v28, %v1517_v28 }
 0x47f   :  { %v1529_v18 = vrot.slane %v1520_v30, %v6130_v16  ;;  %v1536_v33 = vrot.slane %v5504_v32, %v6130_v16 }
 0x481   :  { %v1537_v34 = vcombine.high %v1529_v18, %v1529_v18  ;;  %v1544_v35 = vrot.slane %v1529_v18, %v6130_v16  ;;  %v1551_v57 = vrot.slane %v1536_v33, %v6130_v16 }
 0x483   :  { %v1558_v38 = vrot.slane %v1537_v34, %v6130_v16  ;;  %v1559_v39 = vcombine.high %v1544_v35, %v1544_v35  ;;  %v1570_v24 = vunpack.i.h.s16 %v1551_v57 }
 0x485   :  { %v1560_v58 = vcombine.high %v1558_v38, %v1558_v38  ;;  %v1565_v22 = vunpack.i.l.s16 %v1559_v39  ;;  %v1566_v0 = vunpack.i.h.s16 %v1559_v39  ;;  %v1574_v59 = vcombine.low %v1544_v35, %v1558_v38 }
 0x486   :  { %v1663_v11 = vrot.slane %v1570_v24, %v6130_v16  ;;  %v5989_v38 = vmov 65535  }
 0x487   :  { %v1568_v60 = vunpack.i.h.s16 %v1560_v58  ;;  %v1581_v1 = vrot.slane %v1574_v59, %v6130_v16  ;;  %v1588_v2 = vrot.slane %v1565_v22, %v6130_v16  ;;  %v5506_v25 = vpack.i.b16 %v1560_v58, %v1566_v0 }
 0x488   :  { %v1753_v39 = vsel %vm1751_vm6, 4294967295, %v5989_v38 }
 0x489   :  { %v1589_v61 = vcombine.low %v1581_v1, %v1588_v2  ;;  %v5507_v3 = vpack.i.b16 %v1551_v57, %v1568_v60  ;;  %v6541_v57 = vsel %vm1752_vm7, %v1753_v39, 0 }
 0x48a   :  { %7403 = vst [vmem:[#allocation8_spill] sm:$0xff] %v6541_v57 }
 0x48b   :  { %v6502_v26 = vrot.slane %v1589_v61, %v6130_v16  ;;  %v1649_v62 = vcombine.low %v5506_v25, %v5507_v3 }
 0x48d   :  { %v1656_v27 = vrot.slane %v1649_v62, %v6130_v16  ;;  %1597 = vrot.lane.b32.xlu0 %v6502_v26, %s5985_s25 }
 0x48f   :  { %v1664_v36 = vcombine.low %v1656_v27, %v1663_v11 }
 0x491   :  { %v6509_v19 = vrot.slane %v1664_v36, %v6130_v16 }
 0x493   :  { %1672 = vrot.lane.b32.xlu1 %v6509_v19, %s5985_s25 }
 0x4ff   :  { %v1598_v42 = vpop.permute.xlu0 %1597 }
 0x500   :  { %v1604_v12 = vsel %vm1599_vm4, %v1598_v42, 0 }
 0x501   :  { %5675 = vmatpush3.bf16.xpose.msra.mxu1 %v1604_v12 }
 0x502   :  { %5680 = vmatprep.subr.bf16.mxu1 %v7402_v55 }
 0x505   :  { %v1673_v14 = vpop.permute.xlu1 %1672 }
 0x506   :  { %v1678_v43 = vsel %vm1599_vm4, %v1673_v14, 0 }
 0x508   :  { %5677 = vmatmul.mubr.msk.bf16.vlgmr.msra.gmra.mxu1 %vm1599_vm4, %v6502_v26 }
 0x509   :  { %5681 = vmatpush3.bf16.xpose.msra.mxu1 %v1678_v43  ;;  %5682 = vmatprep.mubr.msk.bf16.mxu1 %vm5984_vm3, %v7402_v55 }
 0x50a   :  { %5686 = vmatprep.subr.bf16.mxu1 %v7402_v55 }
 0x510   :  { %5683 = vmatmul.mubr.msk.bf16.vlgmr.msra.gmra.mxu1 %vm1599_vm4, %v6509_v19 }
 0x511   :  { %5688 = vmatprep.mubr.msk.bf16.mxu1 %vm5984_vm3, %v7402_v55 }
 0x5c8   :  { %v1640_v52 = vpop.f32.mrf.mxu1 }
 0x5c9   :  { %v1721_v44 = vsel %vm1720_vm5, %v1640_v52, -inf }
 0x5ca   :  { %1722 = vmax.xlane.f32.xlu1 %v1721_v44  ;;  %v5678_v53 = vpop.f32.mrf.mxu1 }
 0x5cc   :  { %v1643_v21 = vpop.f32.mrf.mxu1 }
 0x5ce   :  { %v5679_v37 = vpop.f32.mrf.mxu1 }
 0x5d0   :  { %v1714_v40 = vpop.f32.mrf.mxu1 }
 0x5d1   :  { %v1724_v41 = vsel %vm1720_vm5, %v1714_v40, -inf }
 0x5d2   :  { %1725 = vmax.xlane.f32.xlu0 %v1724_v41  ;;  %v5684_v49 = vpop.f32.mrf.mxu1 }
 0x5d4   :  { %v1717_v54 = vpop.f32.mrf.mxu1 }
 0x5d6   :  { %v5685_v56 = vpop.f32.mrf.mxu1 }
 0x5db   :  { %1798 = vrot.lane.b32.xlu1 %v6509_v19, %s5986_s3 }
 0x5df   :  { %1848 = vrot.lane.b32.xlu1 %v6502_v26, %s5987_s26 }
 0x653   :  { %v1723_v13 = vpop.xlane.xlu1 %1722 }
 0x654   :  { %v1727_v15 = vsub.f32 %v1640_v52, %v1723_v13 }
 0x656   :  { %v1729_v23 = vmul.f32 1.442695, %v1727_v15 }
 0x657   :  { %v1799_v34 = vpop.permute.xlu1 %1798 }
 0x658   :  { %5897 = vpow2.f32 %v1729_v23  ;;  %v1804_v25 = vand.u32 %v1799_v34, %v6541_v57 }
 0x65b   :  { %v1726_v20 = vpop.xlane.xlu0 %1725  ;;  %v1849_v58 = vpop.permute.xlu1 %1848 }
 0x65c   :  { %v1728_v28 = vsub.f32 %v1714_v40, %v1726_v20  ;;  %v1854_v36 = vsel %vm1599_vm4, %v1849_v58, 0 }
 0x65e   :  { %v1731_v17 = vmul.f32 1.442695, %v1728_v28 }
 0x660   :  { %5899 = vpow2.f32 %v1731_v17 }
 0x665   :  { %v5898_v30 = vpop.eup %5897 }
 0x666   :  { %v1733_v32 = vsel %vm1720_vm5, %v5898_v30, 0.0 }
 0x667   :  { %1734 = vadd.xlane.f32.xlu0 %v1733_v32 }
 0x66d   :  { %v5900_v18 = vpop.eup %5899 }
 0x66e   :  { %v1736_v33 = vsel %vm1720_vm5, %v5900_v18, 0.0 }
 0x66f   :  { %1737 = vadd.xlane.f32.xlu1 %v1736_v33 }
 0x67d   :  { %1745 = vrot.lane.b32.xlu0 %v6502_v26, %s5986_s3 }
 0x680   :  { %1898 = vrot.lane.b32.xlu1 %v6509_v19, %s5987_s26 }
 0x681   :  { %1846 = vrot.lane.b32.xlu0 %v6502_v26, %s5988_s27 }
 0x684   :  { %1896 = vrot.lane.b32.xlu1 %v6509_v19, %s5988_s27 }
 0x6f0   :  { %v1735_v35 = vpop.xlane.xlu0 %1734 }
 0x6f1   :  { %5901 = vrcp.f32 %v1735_v35 }
 0x6f4   :  { %v1746_v22 = vpop.permute.xlu0 %1745 }
 0x6f5   :  { %v1756_v0 = vand.u32 %v6541_v57, %v1746_v22 }
 0x6f7   :  { %5687 = vmatpush3.bf16.msra.mxu1 %v1756_v0 }
 0x6f8   :  { %v1738_v59 = vpop.xlane.xlu1 %1737  ;;  %5692 = vmatprep.subr.bf16.mxu1 %v7402_v55  ;;  %v1847_v42 = vpop.permute.xlu0 %1846 }
 0x6f9   :  { %5903 = vrcp.f32 %v1738_v59 }
 0x6fc   :  { %v1899_v60 = vpop.permute.xlu1 %1898 }
 0x6fd   :  { %v1904_v1 = vsel %vm1599_vm4, %v1899_v60, 0 }
 0x6fe   :  { %v5902_v2 = vpop.eup %5901  ;;  %5705 = vmatpush3.bf16.xpose.msra.mxu0 %v1904_v1 }
 0x6ff   :  { %v1741_v24 = vmul.f32 %v5902_v2, %v5898_v30  ;;  %5716 = vmatprep.subr.bf16.mxu0 %v7402_v55 }
 0x700   :  { %v1897_v3 = vpop.permute.xlu1 %1896 }
 0x701   :  { %v1743_v61 = vpack.c.bf16 %v1741_v24, %v1741_v24 }
 0x703   :  { %5689 = vmatmul.mubr.msk.bf16.vlgmr.msra.gmra.mxu1 %vm1747_vm8, %v1743_v61 }
 0x704   :  { %5693 = vmatpush3.bf16.msra.mxu1 %v1804_v25  ;;  %5694 = vmatprep.mubr.msk.bf16.mxu1 %vm5984_vm3, %v7402_v55 }
 0x705   :  { %5707 = vmatmul.mubr.msk.bf16.vlgmr.msra.gmra.mxu0 %vm1599_vm4, %v1897_v3  ;;  %5698 = vmatprep.subr.bf16.mxu1 %v7402_v55 }
 0x706   :  { %v5904_v62 = vpop.eup %5903  ;;  %5718 = vmatprep.mubr.msk.bf16.mxu0 %vm5984_vm3, %v7402_v55 }
 0x707   :  { %v1742_v27 = vmul.f32 %v5904_v62, %v5900_v18 }
 0x709   :  { %v1744_v11 = vpack.c.bf16 %v1742_v27, %v1742_v27 }
 0x70b   :  { %5695 = vmatmul.mubr.msk.bf16.vlgmr.msra.gmra.mxu1 %vm1747_vm8, %v1744_v11 }
 0x70c   :  { %5699 = vmatpush3.bf16.xpose.msra.mxu1 %v1854_v36  ;;  %5700 = vmatprep.mubr.msk.bf16.mxu1 %vm5984_vm3, %v7402_v55 }
 0x70d   :  { %5710 = vmatprep.subr.bf16.mxu1 %v7402_v55 }
 0x713   :  { %5701 = vmatmul.mubr.msk.bf16.vlgmr.msra.gmra.mxu1 %vm1599_vm4, %v1847_v42 }
 0x714   :  { %5712 = vmatprep.mubr.msk.bf16.mxu1 %vm5984_vm3, %v7402_v55 }
 0x7c3   :  { %v6563_v12 = vpop.f32.mrf.mxu1 }
 0x7c5   :  { %v5690_v14 = vpop.f32.mrf.mxu1  ;;  %v1940_v43 = vpop.f32.mrf.mxu0 }
 0x7c6   :  { %v1949_v52 = vsel %vm1720_vm5, %v1940_v43, -inf }
 0x7c7   :  { %v1795_v44 = vpop.f32.mrf.mxu1  ;;  %1950 = vmax.xlane.f32.xlu1 %v1949_v52  ;;  %v5708_v53 = vpop.f32.mrf.mxu0 }
 0x7c8   :  { %v5869_v44 = vld [vmem:[%s7361_s9 + $0x8] sm:$0xff]   ;;  %v5870_v53 = vld [vmem:[%s7361_s9] sm:$0xff]  }
 0x7c9   :  { %v5691_v21 = vpop.f32.mrf.mxu1  ;;  %v1943_v37 = vpop.f32.mrf.mxu0 }
 0x7cb   :  { %v6566_v40 = vpop.f32.mrf.mxu1  ;;  %v5709_v41 = vpop.f32.mrf.mxu0 }
 0x7cd   :  { %v5696_v49 = vpop.f32.mrf.mxu1 }
 0x7cf   :  { %v1843_v54 = vpop.f32.mrf.mxu1 }
 0x7d1   :  { %v5697_v56 = vpop.f32.mrf.mxu1 }
 0x7d3   :  { %v1890_v13 = vpop.f32.mrf.mxu1 }
 0x7d4   :  { %v1946_v15 = vsel %vm1720_vm5, %v1890_v13, -inf }
 0x7d5   :  { %1947 = vmax.xlane.f32.xlu0 %v1946_v15  ;;  %v5702_v23 = vpop.f32.mrf.mxu1 }
 0x7d7   :  { %v1893_v20 = vpop.f32.mrf.mxu1 }
 0x7d8   :  { %2018 = vrot.lane.b32.xlu1 %v6509_v19, %s5990_s28 }
 0x7d9   :  { %v5703_v28 = vpop.f32.mrf.mxu1 }
 0x850   :  { %v1951_v17 = vpop.xlane.xlu1 %1950 }
 0x851   :  { %v1953_v30 = vsub.f32 %v1940_v43, %v1951_v17 }
 0x853   :  { %v1956_v32 = vmul.f32 1.442695, %v1953_v30 }
 0x854   :  { %v2019_v18 = vpop.permute.xlu1 %2018 }
 0x855   :  { %5905 = vpow2.f32 %v1956_v32  ;;  %v2024_v33 = vand.u32 %v2019_v18, %v6541_v57 }
 0x857   :  { %5717 = vmatpush3.bf16.msra.mxu0 %v2024_v33 }
 0x858   :  { %5730 = vmatprep.subr.bf16.mxu0 %v7402_v55 }
 0x85e   :  { %v1948_v34 = vpop.xlane.xlu0 %1947 }
 0x85f   :  { %v1952_v35 = vsub.f32 %v1890_v13, %v1948_v34 }
 0x861   :  { %v1954_v38 = vmul.f32 1.442695, %v1952_v35 }
 0x862   :  { %v5906_v39 = vpop.eup %5905 }
 0x863   :  { %5907 = vpow2.f32 %v1954_v38  ;;  %v1961_v58 = vsel %vm1720_vm5, %v5906_v39, 0.0 }
 0x864   :  { %1962 = vadd.xlane.f32.xlu0 %v1961_v58 }
 0x870   :  { %v5908_v19 = vpop.eup %5907 }
 0x871   :  { %v1958_v22 = vsel %vm1720_vm5, %v5908_v19, 0.0 }
 0x872   :  { %1959 = vadd.xlane.f32.xlu0 %v1958_v22 }
 0x888   :  { %1970 = vrot.lane.b32.xlu0 %v6502_v26, %s5990_s28 }
 0x8ed   :  { %v1963_v0 = vpop.xlane.xlu0 %1962 }
 0x8ee   :  { %5909 = vrcp.f32 %v1963_v0 }
 0x8fb   :  { %v5910_v59 = vpop.eup %5909  ;;  %v1960_v60 = vpop.xlane.xlu0 %1959 }
 0x8fc   :  { %5911 = vrcp.f32 %v1960_v60  ;;  %v1967_v1 = vmul.f32 %v5910_v59, %v5906_v39 }
 0x8fe   :  { %v1969_v2 = vpack.c.bf16 %v1967_v1, %v1967_v1 }
 0x8ff   :  { %v1971_v24 = vpop.permute.xlu0 %1970 }
 0x900   :  { %v1976_v61 = vand.u32 %v1971_v24, %v6541_v57  ;;  %5719 = vmatmul.mubr.msk.bf16.vlgmr.msra.gmra.mxu0 %vm1747_vm8, %v1969_v2 }
 0x901   :  { %5734 = vmatprep.mubr.msk.bf16.mxu0 %vm5984_vm3, %v7402_v55 }
 0x902   :  { %5711 = vmatpush3.bf16.msra.mxu1 %v1976_v61 }
 0x903   :  { %5722 = vmatprep.subr.bf16.mxu1 %v7402_v55 }
 0x909   :  { %v5912_v25 = vpop.eup %5911 }
 0x90a   :  { %v1966_v26 = vmul.f32 %v5912_v25, %v5908_v19 }
 0x90c   :  { %v1968_v3 = vpack.c.bf16 %v1966_v26, %v1966_v26 }
 0x90e   :  { %5713 = vmatmul.mubr.msk.bf16.vlgmr.msra.gmra.mxu1 %vm1747_vm8, %v1968_v3 }
 0x90f   :  { %5726 = vmatprep.mubr.msk.bf16.mxu1 %vm5984_vm3, %v7402_v55  ;;  %5723 = vmatpush3.bf16.msra.mxu1 %v5869_v44 }
 0x910   :  { %5724 = vmatprep.subr.bf16.mxu1 %v7402_v55 }
 0x913   :  { %5725 = vmatpush3.bf16.msra.mxu1 %v5870_v53 }
 0x914   :  { %5738 = vmatprep.subr.bf16.mxu1 %v7402_v55 }
 0x9c0   :  { %v2060_v62 = vpop.f32.mrf.mxu0 }
 0x9c2   :  { %v5720_v27 = vpop.f32.mrf.mxu0 }
 0x9c4   :  { %v2063_v11 = vpop.f32.mrf.mxu0 }
 0x9c5   :  { %v5516_v11 = vld [vmem:[%s7362_s10] ss:$0 sm:$0xff] }
 0x9c6   :  { %v5721_v36 = vpop.f32.mrf.mxu0 }
 0x9ce   :  { %v2012_v42 = vpop.f32.mrf.mxu1 }
 0x9cf   :  { %2068 = vrot.lane.b32.xlu1 %v2012_v42, %s5991_s4 }
 0x9d0   :  { %v5714_v14 = vpop.f32.mrf.mxu1 }
 0x9d2   :  { %v2015_v43 = vpop.f32.mrf.mxu1 }
 0x9d3   :  { %2070 = vrot.lane.b32.xlu1 %v2060_v62, %s5991_s4 }
 0x9d4   :  { %v5715_v52 = vpop.f32.mrf.mxu1 }
 0xa41   :  { %v2069_v21 = vpop.permute.xlu1 %2068 }
 0xa42   :  { %v2074_v37 = vsel %vm1599_vm4, %v6563_v12, %v2069_v21 }
 0xa43   :  { %v2078_v41 = vcombine.high %v2074_v37, %v2074_v37  ;;  %v2085_v49 = vrot.slane %v2074_v37, %v6130_v16 }
 0xa45   :  { %v2093_v54 = vcombine.high %v2085_v49, %v2085_v49  ;;  %v2071_v56 = vpop.permute.xlu1 %2070  ;;  %v2092_v13 = vrot.slane %v2078_v41, %v6130_v16  ;;  %v2100_v23 = vrot.slane %v2085_v49, %v6130_v16 }
 0xa46   :  { %v2075_v15 = vsel %vm1599_vm4, %v6566_v40, %v2071_v56 }
 0xa47   :  { %v2114_v20 = vrot.slane %v2093_v54, %v6130_v16  ;;  %v2117_v28 = vcombine.high %v2075_v15, %v2075_v15  ;;  %v2124_v17 = vrot.slane %v2075_v15, %v6130_v16  ;;  %v2107_v33 = vrot.slane %v2092_v13, %v6130_v16 }
 0xa49   :  { %v2156_v30 = vcombine.low %v2100_v23, %v2114_v20  ;;  %v5515_v32 = vcombine.high %v2100_v23, %v2114_v20  ;;  %v2131_v12 = vrot.slane %v2117_v28, %v6130_v16  ;;  %v2132_v18 = vcombine.high %v2124_v17, %v2124_v17 }
 0xa4a   :  { %v2139_v34 = vrot.slane %v2124_v17, %v6130_v16 }
 0xa4b   :  { %v2153_v35 = vrot.slane %v2132_v18, %v6130_v16  ;;  %v2166_v40 = vrot.slane %v2156_v30, %v6130_v16  ;;  %v2173_v38 = vrot.slane %v5515_v32, %v6130_v16  ;;  %v2146_v19 = vrot.slane %v2131_v12, %v6130_v16 }
 0xa4c   :  { %v2154_v39 = vcombine.high %v2139_v34, %v2139_v34  ;;  %v2158_v58 = vcombine.low %v2107_v33, %v2139_v34 }
 0xa4d   :  { %v2155_v22 = vcombine.high %v2153_v35, %v2153_v35  ;;  %v2188_v60 = vcombine.low %v2166_v40, %v2173_v38 }
 0xa4e   :  { %v2159_v0 = vcombine.low %v2153_v35, %v2154_v39  ;;  %v2180_v1 = vrot.slane %v2158_v58, %v6130_v16 }
 0xa4f   :  { %v2205_v59 = vcombine.low %v2155_v22, %v2146_v19  ;;  %v2196_v25 = vrot.slane %v2188_v60, %v6130_v16 }
 0xa50   :  { %v2187_v2 = vrot.slane %v2159_v0, %v6130_v16 }
 0xa51   :  { %v2212_v61 = vrot.slane %v2205_v59, %v6130_v16 }
 0xa52   :  { %v2189_v24 = vcombine.low %v2180_v1, %v2187_v2 }
 0xa53   :  { %v2219_v3 = vrot.slane %v2212_v61, %v6130_v16 }
 0xa54   :  { %v2203_v26 = vrot.slane %v2189_v24, %v6130_v16 }
 0xa56   :  { %v2204_v62 = vcombine.low %v2196_v25, %v2203_v26 }
 0xa58   :  { %v2222_v27 = vpack.c.bf16 %v2219_v3, %v2204_v62 }
 0xa5a   :  { %5727 = vmatmul.mubr.msk.bf16.vlgmr.msra.gmra.mxu1 %vm547_vm1, %v2222_v27 }
 0xa5b   :  { %5746 = vmatprep.mubr.msk.bf16.mxu1 %vm5984_vm3, %v7402_v55 }
 0xb1a   :  { %v2283_v36 = vpop.f32.mrf.mxu1 }
 0xb1b   :  { %v2284_v42 = vadd.f32 %v5516_v11, %v2283_v36 }
 0xb1c   :  { %v5728_v14 = vpop.f32.mrf.mxu1 }
 0xb1d   :  { %v2292_v43 = vcombine.high %v2284_v42, %v2284_v42  ;;  %v2299_v52 = vrot.slane %v2284_v42, %v6130_v16 }
 0xb1e   :  { %v2286_v44 = vpop.f32.mrf.mxu1 }
 0xb1f   :  { %v2306_v53 = vrot.slane %v2292_v43, %v6130_v16  ;;  %v2307_v21 = vcombine.high %v2299_v52, %v2299_v52  ;;  %v2315_v37 = vrot.slane %v2299_v52, %v6130_v16  ;;  %v2287_v41 = vadd.f32 %v5516_v11, %v2286_v44 }
 0xb20   :  { %v5729_v49 = vpop.f32.mrf.mxu1 }
 0xb21   :  { %v2308_v54 = vcombine.high %v2306_v53, %v2306_v53  ;;  %v2322_v56 = vrot.slane %v2306_v53, %v6130_v16  ;;  %v2329_v13 = vrot.slane %v2307_v21, %v6130_v16  ;;  %v2337_v15 = vcombine.high %v2315_v37, %v2315_v37 }
 0xb22   :  { %v2347_v23 = vrot.slane %v2287_v41, %v6130_v16  ;;  %v6634_v32 = vadd.f32 %v2315_v37, %v6316_v63 }
 0xb23   :  { %v2336_v20 = vrot.slane %v2308_v54, %v6130_v16  ;;  %v2338_v28 = vcombine.high %v2322_v56, %v2322_v56  ;;  %v2339_v17 = vcombine.high %v2329_v13, %v2329_v13  ;;  %v6631_v30 = vadd.f32 %v2329_v13, %v6318_v4  ;;  %v7404_v54 = vld [vmem:[#allocation6_spill] sm:$0xff]  ;;  %v7405_v13 = vld [vmem:[#allocation7_spill] sm:$0xff] }
 0xb24   :  { %v6637_v12 = vadd.f32 %v2337_v15, %v6320_v5  ;;  %v2348_v18 = vcombine.high %v2347_v23, %v2347_v23  ;;  %v2355_v33 = vrot.slane %v2347_v23, %v6130_v16  ;;  %v6644_v40 = vadd.f32 %v2322_v56, %v6324_v10 }
 0xb25   :  { %v2340_v34 = vcombine.high %v2336_v20, %v2336_v20  ;;  %v6641_v35 = vadd.f32 %v2339_v17, %v6322_v7  ;;  %v6647_v38 = vadd.f32 %v2336_v20, %v6326_v6  ;;  %v2395_v63 = vcombine.low %v6634_v32, %v6631_v30 }
 0xb26   :  { %v2362_v4 = vrot.slane %v2348_v18, %v6130_v16  ;;  %v6653_v5 = vadd.f32 %v2338_v28, %v6328_v8  ;;  %v6663_v6 = vadd.f32 %v2355_v33, %v6346_v29 }
 0xb27   :  { %v6656_v39 = vadd.f32 %v2340_v34, %v6330_v9  ;;  %v2396_v7 = vcombine.low %v6637_v12, %v6641_v35  ;;  %v2397_v10 = vcombine.low %v6644_v40, %v6647_v38  ;;  %v2405_v8 = vrot.slane %v2395_v63, %v6130_v16 }
 0xb28   :  { %v6666_v58 = vadd.f32 %v2362_v4, %v6348_v31 }
 0xb29   :  { %v2398_v19 = vcombine.low %v6653_v5, %v6656_v39  ;;  %v2412_v9 = vrot.slane %v2396_v7, %v6130_v16  ;;  %v2419_v0 = vrot.slane %v2397_v10, %v6130_v16 }
 0xb2a   :  { %v2444_v22 = vcombine.low %v6663_v6, %v6666_v58 }
 0xb2b   :  { %v2426_v59 = vrot.slane %v2398_v19, %v6130_v16  ;;  %v2427_v60 = vcombine.low %v2405_v8, %v2412_v9 }
 0xb2c   :  { %v2451_v29 = vrot.slane %v2444_v22, %v6130_v16 }
 0xb2d   :  { %v2428_v1 = vcombine.low %v2419_v0, %v2426_v59  ;;  %v2435_v2 = vrot.slane %v2427_v60, %v6130_v16 }
 0xb2e   :  { %v2458_v31 = vrot.slane %v2451_v29, %v6130_v16 }
 0xb2f   :  { %v2442_v24 = vrot.slane %v2428_v1, %v6130_v16 }
 0xb30   :  { %v2464_v61 = vsel %vm551_vm2, %v2458_v31, 0.0 }
 0xb31   :  { %2465 = vadd.xlane.f32.xlu1 %v2464_v61  ;;  %v2443_v25 = vcombine.low %v2435_v2, %v2442_v24 }
 0xb33   :  { %v2461_v26 = vsel %vm547_vm1, %v2443_v25, 0.0 }
 0xb34   :  { %2462 = vadd.xlane.f32.xlu0 %v2461_v26 }
 0xbba   :  { %v2466_v3 = vpop.xlane.xlu1 %2465 }
 0xbbb   :  { %v2468_v62 = vmul.f32 0.03125, %v2466_v3 }
 0xbbd   :  { %v2506_v27 = vrot.slane %v2468_v62, %v6197_v45  ;;  %v2510_v11 = vrot.slane %v2468_v62, %v6200_v46  ;;  %v2463_v36 = vpop.xlane.xlu0 %2462 }
 0xbbe   :  { %v2467_v42 = vmul.f32 0.03125, %v2463_v36 }
 0xbbf   :  { %v6685_v14 = vsub.f32 %v6663_v6, %v2506_v27  ;;  %v6692_v21 = vsub.f32 %v6666_v58, %v2510_v11 }
 0xbc0   :  { %v2474_v43 = vrot.slane %v2467_v42, %v6197_v45  ;;  %v2478_v52 = vrot.slane %v2467_v42, %v6200_v46  ;;  %v2482_v44 = vrot.slane %v2467_v42, %v6203_v47  ;;  %v2486_v53 = vrot.slane %v2467_v42, %v6206_v48 }
 0xbc1   :  { %v2539_v37 = vmul.f32 %v6685_v14, %v6685_v14  ;;  %v2490_v41 = vrot.slane %v2467_v42, %v6209_v50  ;;  %v2494_v49 = vrot.slane %v2467_v42, %v6212_v51  ;;  %v2498_v56 = vrot.slane %v2467_v42, %v7404_v54 }
 0xbc2   :  { %v2502_v15 = vrot.slane %v2467_v42, %v7405_v13  ;;  %v6701_v23 = vsub.f32 %v6634_v32, %v2474_v43  ;;  %v6704_v20 = vsub.f32 %v6631_v30, %v2478_v52  ;;  %v6707_v28 = vsub.f32 %v6637_v12, %v2482_v44 }
 0xbc3   :  { %v6710_v17 = vsub.f32 %v6641_v35, %v2486_v53  ;;  %v6713_v18 = vsub.f32 %v6644_v40, %v2490_v41  ;;  %v6716_v33 = vsub.f32 %v6647_v38, %v2494_v49  ;;  %v6719_v34 = vsub.f32 %v6653_v5, %v2498_v56  ;;  %v5871_v53 = vld [vmem:[%s7365_s13 + $0x8] sm:$0xff]   ;;  %v5520_v41 = vld [vmem:[%s7363_s11] ss:$0 sm:$0xff] }
 0xbc4   :  { %v6722_v4 = vsub.f32 %v6656_v39, %v2502_v15  ;;  %v2531_v63 = vmul.f32 %v6701_v23, %v6701_v23  ;;  %v2532_v7 = vmul.f32 %v6704_v20, %v6704_v20  ;;  %v2533_v10 = vmul.f32 %v6707_v28, %v6707_v28  ;;  %5731 = vmatpush3.bf16.msra.mxu0 %v5871_v53  ;;  %v5521_v49 = vld [vmem:[%s7364_s12] ss:$0 sm:$0xff] }
 0xbc5   :  { %v2534_v19 = vmul.f32 %v6710_v17, %v6710_v17  ;;  %v2535_v8 = vmul.f32 %v6713_v18, %v6713_v18  ;;  %v2536_v9 = vmul.f32 %v6716_v33, %v6716_v33  ;;  %v2540_v22 = vmul.f32 %v6692_v21, %v6692_v21  ;;  %5732 = vmatprep.subr.bf16.mxu0 %v7402_v55 }
 0xbc6   :  { %v2537_v0 = vmul.f32 %v6719_v34, %v6719_v34  ;;  %v2538_v59 = vmul.f32 %v6722_v4, %v6722_v4  ;;  %v2551_v60 = vcombine.low %v2531_v63, %v2532_v7  ;;  %v2696_v63 = vcombine.high %v5520_v41, %v5520_v41 }
 0xbc7   :  { %v2552_v29 = vcombine.low %v2533_v10, %v2534_v19  ;;  %v2553_v1 = vcombine.low %v2535_v8, %v2536_v9  ;;  %v2600_v26 = vcombine.low %v2539_v37, %v2540_v22  ;;  %v5872_v37 = vld [vmem:[%s7365_s13] sm:$0xff]   ;;  %v2768_v7 = vcombine.high %v5521_v49, %v5521_v49 }
 0xbc8   :  { %v2554_v31 = vcombine.low %v2537_v0, %v2538_v59  ;;  %v2561_v2 = vrot.slane %v2551_v60, %v6130_v16  ;;  %5733 = vmatpush3.bf16.msra.mxu0 %v5872_v37  ;;  %v2703_v8 = vrot.slane %v5520_v41, %v6130_v16  ;;  %v2710_v22 = vrot.slane %v2696_v63, %v6130_v16 }
 0xbc9   :  { %v2568_v24 = vrot.slane %v2552_v29, %v6130_v16  ;;  %v2575_v61 = vrot.slane %v2553_v1, %v6130_v16  ;;  %v2607_v36 = vrot.slane %v2600_v26, %v6130_v16  ;;  %5750 = vmatprep.subr.bf16.mxu0 %v7402_v55  ;;  %v2775_v0 = vrot.slane %v5521_v49, %v6130_v16 }
 0xbca   :  { %v2582_v25 = vrot.slane %v2554_v31, %v6130_v16  ;;  %v2782_v59 = vrot.slane %v2768_v7, %v6130_v16  ;;  %v2711_v29 = vcombine.high %v2703_v8, %v2703_v8  ;;  %v2712_v1 = vcombine.high %v2710_v22, %v2710_v22 }
 0xbcb   :  { %v2583_v3 = vcombine.low %v2561_v2, %v2568_v24  ;;  %v2614_v52 = vrot.slane %v2607_v36, %v6130_v16  ;;  %v2783_v31 = vcombine.high %v2775_v0, %v2775_v0  ;;  %v2719_v24 = vrot.slane %v2703_v8, %v6130_v16 }
 0xbcc   :  { %v2584_v62 = vcombine.low %v2575_v61, %v2582_v25  ;;  %v2784_v2 = vcombine.high %v2782_v59, %v2782_v59  ;;  %v2733_v61 = vrot.slane %v2711_v29, %v6130_v16  ;;  %v2726_v25 = vrot.slane %v2710_v22, %v6130_v16 }
 0xbcd   :  { %v2591_v27 = vrot.slane %v2583_v3, %v6130_v16  ;;  %v2620_v44 = vsel %vm551_vm2, %v2614_v52, 0.0  ;;  %v2740_v26 = vrot.slane %v2712_v1, %v6130_v16  ;;  %v2791_v3 = vrot.slane %v2775_v0, %v6130_v16 }
 0xbce   :  { %v2598_v11 = vrot.slane %v2584_v62, %v6130_v16  ;;  %v2798_v62 = vrot.slane %v2782_v59, %v6130_v16  ;;  %v2741_v36 = vcombine.high %v2719_v24, %v2719_v24 }
 0xbcf   :  { %v2744_v52 = vcombine.high %v2740_v26, %v2740_v26  ;;  %v2813_v53 = vcombine.high %v2791_v3, %v2791_v3 }
 0xbd0   :  { %v2599_v42 = vcombine.low %v2591_v27, %v2598_v11  ;;  %v2805_v27 = vrot.slane %v2783_v31, %v6130_v16  ;;  %v2812_v11 = vrot.slane %v2784_v2, %v6130_v16  ;;  %v2814_v37 = vcombine.high %v2798_v62, %v2798_v62 }
 0xbd2   :  { %v2617_v43 = vsel %vm547_vm1, %v2599_v42, 0.0  ;;  %v2742_v42 = vcombine.high %v2726_v25, %v2726_v25  ;;  %v2815_v41 = vcombine.high %v2805_v27, %v2805_v27  ;;  %v2816_v49 = vcombine.high %v2812_v11, %v2812_v11 }
 0xbd3   :  { %2618 = vadd.xlane.f32.xlu0 %v2617_v43  ;;  %v2743_v43 = vcombine.high %v2733_v61, %v2733_v61 }
 0xbd7   :  { %2621 = vadd.xlane.f32.xlu0 %v2620_v44 }
 0xc5c   :  { %v2619_v56 = vpop.xlane.xlu0 %2618 }
 0xc5d   :  { %v2623_v15 = vmul.f32 0.03125, %v2619_v56 }
 0xc5f   :  { %v2625_v10 = vadd.f32 1e-05, %v2623_v15 }
 0xc60   :  { %v2622_v19 = vpop.xlane.xlu0 %2621 }
 0xc61   :  { %5913 = vrsqrt.f32 %v2625_v10  ;;  %v2624_v9 = vmul.f32 0.03125, %v2622_v19 }
 0xc63   :  { %v2626_v60 = vadd.f32 1e-05, %v2624_v9 }
 0xc65   :  { %5915 = vrsqrt.f32 %v2626_v60 }
 0xc6e   :  { %v5914_v44 = vpop.eup %5913 }
 0xc6f   :  { %v2634_v56 = vrot.slane %v5914_v44, %v6197_v45  ;;  %v2638_v15 = vrot.slane %v5914_v44, %v6200_v46  ;;  %v2642_v63 = vrot.slane %v5914_v44, %v6203_v47  ;;  %v2646_v7 = vrot.slane %v5914_v44, %v6206_v48 }
 0xc70   :  { %v2650_v10 = vrot.slane %v5914_v44, %v6209_v50  ;;  %v2654_v19 = vrot.slane %v5914_v44, %v6212_v51  ;;  %v2658_v8 = vrot.slane %v5914_v44, %v7404_v54  ;;  %v2662_v9 = vrot.slane %v5914_v44, %v7405_v13 }
 0xc71   :  { %v2681_v22 = vmul.f32 %v2634_v56, %v6701_v23  ;;  %v2682_v0 = vmul.f32 %v2638_v15, %v6704_v20  ;;  %v2683_v59 = vmul.f32 %v2642_v63, %v6707_v28  ;;  %v2684_v60 = vmul.f32 %v2646_v7, %v6710_v17 }
 0xc72   :  { %v5916_v29 = vpop.eup %5915  ;;  %v2685_v1 = vmul.f32 %v2650_v10, %v6713_v18  ;;  %v2686_v31 = vmul.f32 %v2654_v19, %v6716_v33  ;;  %v2687_v2 = vmul.f32 %v2658_v8, %v6719_v34  ;;  %v2688_v57 = vmul.f32 %v2662_v9, %v6722_v4 }
 0xc73   :  { %v2666_v54 = vrot.slane %v5916_v29, %v6197_v45  ;;  %v2670_v44 = vrot.slane %v5916_v29, %v6200_v46  ;;  %v2753_v23 = vmul.f32 %v2719_v24, %v2681_v22  ;;  %v2754_v56 = vmul.f32 %v2733_v61, %v2682_v0 }
 0xc74   :  { %v2755_v20 = vmul.f32 %v2741_v36, %v2683_v59  ;;  %v2756_v15 = vmul.f32 %v2743_v43, %v2684_v60  ;;  %v2757_v28 = vmul.f32 %v2726_v25, %v2685_v1  ;;  %v2758_v63 = vmul.f32 %v2740_v26, %v2686_v31  ;;  %v5876_v60 = vld [vmem:[%s7367_s15] sm:$0xff]  }
 0xc75   :  { %v2689_v17 = vmul.f32 %v2666_v54, %v6685_v14  ;;  %v2690_v18 = vmul.f32 %v2670_v44, %v6692_v21  ;;  %v2759_v7 = vmul.f32 %v2742_v42, %v2687_v2  ;;  %v2760_v33 = vmul.f32 %v2744_v52, %v2688_v57  ;;  %v5522_v1 = vld [vmem:[%s7366_s14] ss:$0 sm:$0xff] }
 0xc76   :  { %v2825_v10 = vadd.f32 %v2791_v3, %v2753_v23  ;;  %v2826_v34 = vadd.f32 %v2805_v27, %v2754_v56  ;;  %v2827_v19 = vadd.f32 %v2813_v53, %v2755_v20  ;;  %v2828_v4 = vadd.f32 %v2815_v41, %v2756_v15  ;;  %v5874_v41 = vld [vmem:[%s7367_s15 + $0x10] sm:$0xff]  }
 0xc77   :  { %v2761_v8 = vmul.f32 %v2719_v24, %v2689_v17  ;;  %v2762_v9 = vmul.f32 %v2733_v61, %v2690_v18  ;;  %v2829_v13 = vadd.f32 %v2798_v62, %v2757_v28  ;;  %v2830_v29 = vadd.f32 %v2812_v11, %v2758_v63 }
 0xc78   :  { %v2831_v22 = vadd.f32 %v2814_v37, %v2759_v7  ;;  %v2832_v0 = vadd.f32 %v2816_v49, %v2760_v33  ;;  %v2845_v36 = vcombine.low %v2825_v10, %v2826_v34  ;;  %v2846_v43 = vcombine.low %v2827_v19, %v2828_v4  ;;  %v5873_v37 = vld [vmem:[%s7367_s15 + $0x18] sm:$0xff]   ;;  %v5875_v49 = vld [vmem:[%s7367_s15 + $0x8] sm:$0xff]  }
 0xc79   :  { %v2833_v25 = vadd.f32 %v2791_v3, %v2761_v8  ;;  %v2834_v26 = vadd.f32 %v2805_v27, %v2762_v9  ;;  %v2847_v59 = vcombine.low %v2829_v13, %v2830_v29  ;;  %5739 = vmatpush3.bf16.msra.mxu1 %v5873_v37  ;;  %v5528_v29 = vld [vmem:[%s7368_s16] ss:$0 sm:$0xff] }
 0xc7a   :  { %v2848_v14 = vcombine.low %v2831_v22, %v2832_v0  ;;  %v2855_v21 = vrot.slane %v2845_v36, %v6130_v16  ;;  %v2862_v57 = vrot.slane %v2846_v43, %v6130_v16  ;;  %5740 = vmatprep.subr.bf16.mxu1 %v7402_v55 }
 0xc7b   :  { %v2869_v54 = vrot.slane %v2847_v59, %v6130_v16  ;;  %v2894_v42 = vcombine.low %v2833_v25, %v2834_v26 }
 0xc7c   :  { %v2876_v24 = vrot.slane %v2848_v14, %v6130_v16  ;;  %v2877_v61 = vcombine.low %v2855_v21, %v2862_v57 }
 0xc7d   :  { %v2901_v62 = vrot.slane %v2894_v42, %v6130_v16  ;;  %5741 = vmatpush3.bf16.msra.mxu1 %v5874_v41 }
 0xc7e   :  { %v2878_v11 = vcombine.low %v2869_v54, %v2876_v24  ;;  %v2885_v52 = vrot.slane %v2877_v61, %v6130_v16  ;;  %5742 = vmatprep.subr.bf16.mxu1 %v7402_v55 }
 0xc7f   :  { %v2908_v13 = vrot.slane %v2901_v62, %v6130_v16 }
 0xc80   :  { %v2892_v3 = vrot.slane %v2878_v11, %v6130_v16 }
 0xc81   :  { %5743 = vmatpush3.bf16.msra.mxu1 %v5875_v49 }
 0xc82   :  { %v2893_v27 = vcombine.low %v2885_v52, %v2892_v3  ;;  %5744 = vmatprep.subr.bf16.mxu1 %v7402_v55 }
 0xc84   :  { %v2911_v53 = vpack.c.bf16 %v2908_v13, %v2893_v27 }
 0xc85   :  { %5745 = vmatpush3.bf16.msra.mxu1 %v5876_v60 }
 0xc86   :  { %5735 = vmatmul.mubr.msk.bf16.vlgmr.msra.gmra.mxu0 %vm547_vm1, %v2911_v53  ;;  %5764 = vmatprep.subr.bf16.mxu1 %v7402_v55 }
 0xc87   :  { %5754 = vmatprep.mubr.msk.bf16.mxu0 %vm5984_vm3, %v7402_v55 }
 0xd46   :  { %v2972_v31 = vpop.f32.mrf.mxu0 }
 0xd47   :  { %v2973_v2 = vadd.f32 %v5522_v1, %v2972_v31 }
 0xd48   :  { %v5736_v44 = vpop.f32.mrf.mxu0 }
 0xd49   :  { %v5526_v23 = vmul.f32 -1.702, %v2973_v2 }
 0xd4a   :  { %v2975_v56 = vpop.f32.mrf.mxu0 }
 0xd4b   :  { %v2983_v20 = vmul.f32 1.442695, %v5526_v23  ;;  %v2976_v15 = vadd.f32 %v5522_v1, %v2975_v56 }
 0xd4c   :  { %v5737_v28 = vpop.f32.mrf.mxu0 }
 0xd4d   :  { %5917 = vpow2.f32 %v2983_v20  ;;  %v5527_v63 = vmul.f32 -1.702, %v2976_v15 }
 0xd4f   :  { %v2985_v17 = vmul.f32 1.442695, %v5527_v63 }
 0xd51   :  { %5919 = vpow2.f32 %v2985_v17 }
 0xd5a   :  { %v5918_v18 = vpop.eup %5917 }
 0xd5b   :  { %v2987_v7 = vadd.f32 1.0, %v5918_v18 }
 0xd5d   :  { %5921 = vrcp.f32 %v2987_v7 }
 0xd5e   :  { %v5920_v33 = vpop.eup %5919 }
 0xd5f   :  { %v2988_v10 = vadd.f32 1.0, %v5920_v33 }
 0xd61   :  { %5923 = vrcp.f32 %v2988_v10 }
 0xd6a   :  { %v5922_v34 = vpop.eup %5921 }
 0xd6b   :  { %v2993_v4 = vmul.f32 %v5922_v34, %v2973_v2 }
 0xd6e   :  { %v5924_v19 = vpop.eup %5923 }
 0xd6f   :  { %v2994_v8 = vmul.f32 %v5924_v19, %v2976_v15 }
 0xd71   :  { %v2995_v9 = vpack.c.bf16 %v2994_v8, %v2993_v4 }
 0xd73   :  { %5747 = vmatmul.mubr.msk.bf16.vlgmr.msra.gmra.mxu1 %vm285_vm0, %v2995_v9 }
 0xd74   :  { %5766 = vmatprep.mubr.msk.bf16.mxu1 %vm5984_vm3, %v7402_v55 }
 0xe33   :  { %v3072_v22 = vpop.f32.mrf.mxu1 }
 0xe34   :  { %v3073_v0 = vadd.f32 %v5528_v29, %v3072_v22 }
 0xe35   :  { %v5748_v36 = vpop.f32.mrf.mxu1 }
 0xe36   :  { %v3081_v43 = vcombine.high %v3073_v0, %v3073_v0  ;;  %v3088_v25 = vrot.slane %v3073_v0, %v6130_v16 }
 0xe37   :  { %v3075_v26 = vpop.f32.mrf.mxu1 }
 0xe38   :  { %v3095_v59 = vrot.slane %v3081_v43, %v6130_v16  ;;  %v3096_v14 = vcombine.high %v3088_v25, %v3088_v25  ;;  %v3104_v21 = vrot.slane %v3088_v25, %v6130_v16  ;;  %v3076_v57 = vadd.f32 %v5528_v29, %v3075_v26 }
 0xe39   :  { %v5749_v54 = vpop.f32.mrf.mxu1 }
 0xe3a   :  { %v3097_v42 = vcombine.high %v3095_v59, %v3095_v59  ;;  %v3111_v24 = vrot.slane %v3095_v59, %v6130_v16  ;;  %v3118_v61 = vrot.slane %v3096_v14, %v6130_v16  ;;  %v3126_v62 = vcombine.high %v3104_v21, %v3104_v21 }
 0xe3b   :  { %v3136_v11 = vrot.slane %v3076_v57, %v6130_v16  ;;  %v6845_v53 = vadd.f32 %v3104_v21, %v6634_v32 }
 0xe3c   :  { %v3125_v52 = vrot.slane %v3097_v42, %v6130_v16  ;;  %v3127_v3 = vcombine.high %v3111_v24, %v3111_v24  ;;  %v3128_v13 = vcombine.high %v3118_v61, %v3118_v61  ;;  %v6842_v27 = vadd.f32 %v3118_v61, %v6631_v30  ;;  %v7406_v42 = vld [vmem:[#allocation6_spill] sm:$0xff]  ;;  %v7407_v61 = vld [vmem:[#allocation7_spill] sm:$0xff] }
 0xe3d   :  { %v6848_v37 = vadd.f32 %v3126_v62, %v6637_v12  ;;  %v3137_v41 = vcombine.high %v3136_v11, %v3136_v11  ;;  %v3144_v49 = vrot.slane %v3136_v11, %v6130_v16  ;;  %v6855_v31 = vadd.f32 %v3111_v24, %v6644_v40 }
 0xe3e   :  { %v3129_v60 = vcombine.high %v3125_v52, %v3125_v52  ;;  %v6852_v1 = vadd.f32 %v3128_v13, %v6641_v35  ;;  %v6858_v2 = vadd.f32 %v3125_v52, %v6647_v38  ;;  %v3186_v32 = vcombine.low %v6845_v53, %v6842_v27 }
 0xe3f   :  { %v3151_v30 = vrot.slane %v3137_v41, %v6130_v16  ;;  %v6864_v12 = vadd.f32 %v3127_v3, %v6653_v5  ;;  %v6874_v38 = vadd.f32 %v3144_v49, %v6663_v6 }
 0xe40   :  { %v6867_v44 = vadd.f32 %v3129_v60, %v6656_v39  ;;  %v3187_v35 = vcombine.low %v6848_v37, %v6852_v1  ;;  %v3188_v40 = vcombine.low %v6855_v31, %v6858_v2  ;;  %v3196_v5 = vrot.slane %v3186_v32, %v6130_v16 }
 0xe41   :  { %v6877_v23 = vadd.f32 %v3151_v30, %v6666_v58 }
 0xe42   :  { %v3189_v56 = vcombine.low %v6864_v12, %v6867_v44  ;;  %v3203_v39 = vrot.slane %v3187_v35, %v6130_v16  ;;  %v3210_v15 = vrot.slane %v3188_v40, %v6130_v16 }
 0xe43   :  { %v3235_v20 = vcombine.low %v6874_v38, %v6877_v23 }
 0xe44   :  { %v3217_v28 = vrot.slane %v3189_v56, %v6130_v16  ;;  %v3218_v63 = vcombine.low %v3196_v5, %v3203_v39 }
 0xe45   :  { %v3242_v6 = vrot.slane %v3235_v20, %v6130_v16 }
 0xe46   :  { %v3219_v17 = vcombine.low %v3210_v15, %v3217_v28  ;;  %v3226_v18 = vrot.slane %v3218_v63, %v6130_v16 }
 0xe47   :  { %v3249_v58 = vrot.slane %v3242_v6, %v6130_v16 }
 0xe48   :  { %v3233_v7 = vrot.slane %v3219_v17, %v6130_v16 }
 0xe49   :  { %v3255_v33 = vsel %vm551_vm2, %v3249_v58, 0.0 }
 0xe4a   :  { %3256 = vadd.xlane.f32.xlu1 %v3255_v33  ;;  %v3234_v10 = vcombine.low %v3226_v18, %v3233_v7 }
 0xe4c   :  { %v3252_v34 = vsel %vm547_vm1, %v3234_v10, 0.0 }
 0xe4d   :  { %3253 = vadd.xlane.f32.xlu0 %v3252_v34 }
 0xed3   :  { %v3257_v19 = vpop.xlane.xlu1 %3256 }
 0xed4   :  { %v3259_v4 = vmul.f32 0.03125, %v3257_v19 }
 0xed6   :  { %v3297_v8 = vrot.slane %v3259_v4, %v6197_v45  ;;  %v3301_v9 = vrot.slane %v3259_v4, %v6200_v46  ;;  %v3254_v29 = vpop.xlane.xlu0 %3253 }
 0xed7   :  { %v3258_v22 = vmul.f32 0.03125, %v3254_v29 }
 0xed8   :  { %v6896_v0 = vsub.f32 %v6874_v38, %v3297_v8  ;;  %v6899_v36 = vsub.f32 %v6877_v23, %v3301_v9 }
 0xed9   :  { %v3265_v43 = vrot.slane %v3258_v22, %v6197_v45  ;;  %v3269_v25 = vrot.slane %v3258_v22, %v6200_v46  ;;  %v3273_v26 = vrot.slane %v3258_v22, %v6203_v47  ;;  %v3277_v59 = vrot.slane %v3258_v22, %v6206_v48 }
 0xeda   :  { %v3330_v14 = vmul.f32 %v6896_v0, %v6896_v0  ;;  %v3331_v21 = vmul.f32 %v6899_v36, %v6899_v36  ;;  %v3281_v57 = vrot.slane %v3258_v22, %v6209_v50  ;;  %v3285_v54 = vrot.slane %v3258_v22, %v6212_v51 }
 0xedb   :  { %v3289_v24 = vrot.slane %v3258_v22, %v7406_v42  ;;  %v3293_v62 = vrot.slane %v3258_v22, %v7407_v61  ;;  %v6914_v11 = vsub.f32 %v6845_v53, %v3265_v43  ;;  %v6917_v52 = vsub.f32 %v6842_v27, %v3269_v25 }
 0xedc   :  { %v3391_v3 = vcombine.low %v3330_v14, %v3331_v21  ;;  %v6920_v13 = vsub.f32 %v6848_v37, %v3273_v26  ;;  %v6923_v41 = vsub.f32 %v6852_v1, %v3277_v59  ;;  %v6926_v49 = vsub.f32 %v6855_v31, %v3281_v57  ;;  %v5877_v26 = vld [vmem:[%s7359_s7 + $0x18] sm:$0xff]   ;;  %v5878_v59 = vld [vmem:[%s7359_s7 + $0x10] sm:$0xff]  }
 0xedd   :  { %v6929_v60 = vsub.f32 %v6858_v2, %v3285_v54  ;;  %v6932_v30 = vsub.f32 %v6864_v12, %v3289_v24  ;;  %v6935_v32 = vsub.f32 %v6867_v44, %v3293_v62  ;;  %v3322_v35 = vmul.f32 %v6914_v11, %v6914_v11  ;;  %5751 = vmatpush3.bf16.msra.mxu0 %v5877_v26  ;;  %v5536_v54 = vld [vmem:[%s7357_s5 + $0x1] ss:$0 sm:$0xff] }
 0xede   :  { %v3398_v40 = vrot.slane %v3391_v3, %v6130_v16  ;;  %v3323_v56 = vmul.f32 %v6917_v52, %v6917_v52  ;;  %v3324_v5 = vmul.f32 %v6920_v13, %v6920_v13  ;;  %v3325_v39 = vmul.f32 %v6923_v41, %v6923_v41  ;;  %5752 = vmatprep.subr.bf16.mxu0 %v7402_v55 }
 0xedf   :  { %v3326_v20 = vmul.f32 %v6926_v49, %v6926_v49  ;;  %v3327_v15 = vmul.f32 %v6929_v60, %v6929_v60  ;;  %v3328_v28 = vmul.f32 %v6932_v30, %v6932_v30  ;;  %v3329_v63 = vmul.f32 %v6935_v32, %v6935_v32 }
 0xee0   :  { %v3405_v6 = vrot.slane %v3398_v40, %v6130_v16  ;;  %v3342_v17 = vcombine.low %v3322_v35, %v3323_v56  ;;  %v3343_v58 = vcombine.low %v3324_v5, %v3325_v39  ;;  %v3487_v62 = vcombine.high %v5536_v54, %v5536_v54  ;;  %v5537_v35 = vld [vmem:[%s7358_s6 + $0x1] ss:$0 sm:$0xff] }
 0xee1   :  { %v3344_v18 = vcombine.low %v3326_v20, %v3327_v15  ;;  %v3345_v7 = vcombine.low %v3328_v28, %v3329_v63  ;;  %5753 = vmatpush3.bf16.msra.mxu0 %v5878_v59  ;;  %v3494_v40 = vrot.slane %v5536_v54, %v6130_v16  ;;  %v3559_v56 = vcombine.high %v5537_v35, %v5537_v35 }
 0xee2   :  { %v3411_v33 = vsel %vm551_vm2, %v3405_v6, 0.0  ;;  %v3352_v10 = vrot.slane %v3342_v17, %v6130_v16  ;;  %v3359_v34 = vrot.slane %v3343_v58, %v6130_v16  ;;  %5758 = vmatprep.subr.bf16.mxu0 %v7402_v55  ;;  %v3501_v39 = vrot.slane %v3487_v62, %v6130_v16 }
 0xee3   :  { %3412 = vadd.xlane.f32.xlu1 %v3411_v33  ;;  %v3366_v19 = vrot.slane %v3344_v18, %v6130_v16  ;;  %v3373_v4 = vrot.slane %v3345_v7, %v6130_v16  ;;  %v3566_v20 = vrot.slane %v5537_v35, %v6130_v16  ;;  %v3502_v15 = vcombine.high %v3494_v40, %v3494_v40 }
 0xee4   :  { %v3374_v8 = vcombine.low %v3352_v10, %v3359_v34  ;;  %v3573_v28 = vrot.slane %v3559_v56, %v6130_v16  ;;  %v3510_v6 = vrot.slane %v3494_v40, %v6130_v16  ;;  %v3503_v17 = vcombine.high %v3501_v39, %v3501_v39 }
 0xee5   :  { %v3375_v9 = vcombine.low %v3366_v19, %v3373_v4  ;;  %v3574_v58 = vcombine.high %v3566_v20, %v3566_v20  ;;  %v3524_v18 = vrot.slane %v3502_v15, %v6130_v16  ;;  %v3517_v4 = vrot.slane %v3501_v39, %v6130_v16 }
 0xee6   :  { %v3382_v29 = vrot.slane %v3374_v8, %v6130_v16  ;;  %v3575_v10 = vcombine.high %v3573_v28, %v3573_v28  ;;  %v3531_v8 = vrot.slane %v3503_v17, %v6130_v16  ;;  %v3532_v59 = vcombine.high %v3510_v6, %v3510_v6 }
 0xee7   :  { %v3389_v22 = vrot.slane %v3375_v9, %v6130_v16  ;;  %v3582_v9 = vrot.slane %v3566_v20, %v6130_v16 }
 0xee8   :  { %v3603_v26 = vrot.slane %v3575_v10, %v6130_v16 }
 0xee9   :  { %v3390_v43 = vcombine.low %v3382_v29, %v3389_v22  ;;  %v3596_v29 = vrot.slane %v3574_v58, %v6130_v16 }
 0xeea   :  { %v3607_v62 = vcombine.high %v3603_v26, %v3603_v26 }
 0xeeb   :  { %v3408_v25 = vsel %vm547_vm1, %v3390_v43, 0.0 }
 0xeec   :  { %3409 = vadd.xlane.f32.xlu0 %v3408_v25  ;;  %v3589_v25 = vrot.slane %v3573_v28, %v6130_v16 }
 0xf6c   :  { %v3413_v14 = vpop.xlane.xlu1 %3412 }
 0xf6d   :  { %v3415_v21 = vmul.f32 0.03125, %v3413_v14  ;;  %v3533_v14 = vcombine.high %v3517_v4, %v3517_v4 }
 0xf6f   :  { %v3417_v57 = vadd.f32 1e-05, %v3415_v21  ;;  %v3534_v21 = vcombine.high %v3524_v18, %v3524_v18 }
 0xf71   :  { %5925 = vrsqrt.f32 %v3417_v57  ;;  %v3604_v57 = vcombine.high %v3582_v9, %v3582_v9 }
 0xf75   :  { %v3410_v24 = vpop.xlane.xlu0 %3409 }
 0xf76   :  { %v3414_v3 = vmul.f32 0.03125, %v3410_v24  ;;  %v3605_v24 = vcombine.high %v3589_v25, %v3589_v25 }
 0xf78   :  { %v3416_v5 = vadd.f32 1e-05, %v3414_v3 }
 0xf7a   :  { %5927 = vrsqrt.f32 %v3416_v5 }
 0xf7e   :  { %v5926_v63 = vpop.eup %5925 }
 0xf7f   :  { %v3457_v7 = vrot.slane %v5926_v63, %v6197_v45  ;;  %v3461_v33 = vrot.slane %v5926_v63, %v6200_v46 }
 0xf81   :  { %v3480_v34 = vmul.f32 %v3457_v7, %v6896_v0  ;;  %v3481_v19 = vmul.f32 %v3461_v33, %v6899_v36  ;;  %v3535_v0 = vcombine.high %v3531_v8, %v3531_v8  ;;  %v3606_v36 = vcombine.high %v3596_v29, %v3596_v29 }
 0xf83   :  { %v3552_v22 = vmul.f32 %v3510_v6, %v3480_v34  ;;  %v3553_v43 = vmul.f32 %v3524_v18, %v3481_v19 }
 0xf85   :  { %v3624_v3 = vadd.f32 %v3582_v9, %v3552_v22  ;;  %v3625_v35 = vadd.f32 %v3596_v29, %v3553_v43 }
 0xf87   :  { %v5928_v54 = vpop.eup %5927 }
 0xf88   :  { %v3425_v40 = vrot.slane %v5928_v54, %v6197_v45  ;;  %v3429_v56 = vrot.slane %v5928_v54, %v6200_v46  ;;  %v3433_v5 = vrot.slane %v5928_v54, %v6203_v47  ;;  %v3437_v39 = vrot.slane %v5928_v54, %v6206_v48 }
 0xf89   :  { %v3441_v20 = vrot.slane %v5928_v54, %v6209_v50  ;;  %v3445_v15 = vrot.slane %v5928_v54, %v6212_v51  ;;  %v3449_v28 = vrot.slane %v5928_v54, %v7406_v42  ;;  %v3453_v63 = vrot.slane %v5928_v54, %v7407_v61 }
 0xf8a   :  { %v3472_v17 = vmul.f32 %v3425_v40, %v6914_v11  ;;  %v3473_v58 = vmul.f32 %v3429_v56, %v6917_v52  ;;  %v3474_v7 = vmul.f32 %v3433_v5, %v6920_v13  ;;  %v3475_v33 = vmul.f32 %v3437_v39, %v6923_v41 }
 0xf8b   :  { %v3476_v10 = vmul.f32 %v3441_v20, %v6926_v49  ;;  %v3477_v34 = vmul.f32 %v3445_v15, %v6929_v60  ;;  %v3478_v19 = vmul.f32 %v3449_v28, %v6932_v30  ;;  %v3479_v22 = vmul.f32 %v3453_v63, %v6935_v32 }
 0xf8c   :  { %v3544_v43 = vmul.f32 %v3510_v6, %v3472_v17  ;;  %v3545_v42 = vmul.f32 %v3524_v18, %v3473_v58  ;;  %v3546_v51 = vmul.f32 %v3532_v59, %v3474_v7  ;;  %v3547_v54 = vmul.f32 %v3534_v21, %v3475_v33 }
 0xf8d   :  { %v3548_v61 = vmul.f32 %v3517_v4, %v3476_v10  ;;  %v3549_v11 = vmul.f32 %v3531_v8, %v3477_v34  ;;  %v3550_v40 = vmul.f32 %v3533_v14, %v3478_v19  ;;  %v3551_v52 = vmul.f32 %v3535_v0, %v3479_v22  ;;  %v5543_v0 = vld [vmem:[%s7360_s8 + $0x1] ss:$0 sm:$0xff] }
 0xf8e   :  { %v3616_v56 = vadd.f32 %v3582_v9, %v3544_v43  ;;  %v3617_v13 = vadd.f32 %v3596_v29, %v3545_v42  ;;  %v3618_v5 = vadd.f32 %v3604_v57, %v3546_v51  ;;  %v3619_v41 = vadd.f32 %v3606_v36, %v3547_v54 }
 0xf8f   :  { %v3620_v39 = vadd.f32 %v3589_v25, %v3548_v61  ;;  %v3621_v49 = vadd.f32 %v3603_v26, %v3549_v11  ;;  %v3622_v20 = vadd.f32 %v3605_v24, %v3550_v40  ;;  %v3623_v60 = vadd.f32 %v3607_v62, %v3551_v52 }
 0xf90   :  { %v3636_v15 = vcombine.low %v3616_v56, %v3617_v13  ;;  %v3637_v30 = vcombine.low %v3618_v5, %v3619_v41  ;;  %v3685_v6 = vcombine.low %v3624_v3, %v3625_v35 }
 0xf91   :  { %v3638_v28 = vcombine.low %v3620_v39, %v3621_v49  ;;  %v3639_v32 = vcombine.low %v3622_v20, %v3623_v60 }
 0xf92   :  { %v3646_v18 = vrot.slane %v3636_v15, %v6130_v16  ;;  %v3653_v4 = vrot.slane %v3637_v30, %v6130_v16  ;;  %v3692_v61 = vrot.slane %v3685_v6, %v6130_v16 }
 0xf93   :  { %v3660_v8 = vrot.slane %v3638_v28, %v6130_v16  ;;  %v3667_v9 = vrot.slane %v3639_v32, %v6130_v16 }
 0xf94   :  { %v3668_v42 = vcombine.low %v3646_v18, %v3653_v4  ;;  %v3699_v59 = vrot.slane %v3692_v61, %v6130_v16 }
 0xf95   :  { %v3669_v51 = vcombine.low %v3660_v8, %v3667_v9 }
 0xf96   :  { %v3676_v29 = vrot.slane %v3668_v42, %v6130_v16 }
 0xf97   :  { %v3683_v25 = vrot.slane %v3669_v51, %v6130_v16 }
 0xf99   :  { %v3684_v26 = vcombine.low %v3676_v29, %v3683_v25 }
 0xf9b   :  { %v3702_v14 = vpack.c.bf16 %v3699_v59, %v3684_v26 }
 0xf9d   :  { %5755 = vmatmul.mubr.msk.bf16.vlgmr.msra.gmra.mxu0 %vm547_vm1, %v3702_v14 }
 0xf9e   :  { %5760 = vmatprep.mubr.msk.bf16.mxu0 %vm5984_vm3, %v7402_v55 }
0x105d   :  { %v3765_v21 = vpop.f32.mrf.mxu0 }
0x105e   :  { %v3766_v24 = vadd.f32 %v5543_v0, %v3765_v21 }
0x105f   :  { %v5756_v57 = vpop.f32.mrf.mxu0 }
0x1061   :  { %v3768_v36 = vpop.f32.mrf.mxu0 }
0x1062   :  { %v3769_v62 = vadd.f32 %v5543_v0, %v3768_v36 }
0x1063   :  { %v5757_v3 = vpop.f32.mrf.mxu0 }
0x1064   :  { %v3772_v35 = vpack.c.bf16 %v3769_v62, %v3766_v24  ;;  %v5547_v63 = vpack.c.bf16 %v3769_v62, %v3769_v62  ;;  %v7408_v24 = vld [vmem:[#allocation8_spill] sm:$0xff] }
0x1066   :  { %v3781_v17 = vrot.slane %v3772_v35, %v6130_v16  ;;  %v3788_v58 = vrot.slane %v5547_v63, %v6130_v16 }
0x1068   :  { %v3789_v7 = vcombine.high %v3781_v17, %v3781_v17  ;;  %v3796_v33 = vrot.slane %v3781_v17, %v6130_v16  ;;  %v3803_v19 = vrot.slane %v3788_v58, %v6130_v16 }
0x106a   :  { %v3810_v10 = vrot.slane %v3789_v7, %v6130_v16  ;;  %v3811_v34 = vcombine.high %v3796_v33, %v3796_v33  ;;  %v3822_v13 = vunpack.i.h.s16 %v3803_v19 }
0x106c   :  { %v3812_v22 = vcombine.high %v3810_v10, %v3810_v10  ;;  %v3817_v43 = vunpack.i.l.s16 %v3811_v34  ;;  %v3818_v54 = vunpack.i.h.s16 %v3811_v34  ;;  %v3826_v11 = vcombine.low %v3796_v33, %v3810_v10 }
0x106d   :  { %v3914_v15 = vrot.slane %v3822_v13, %v6130_v16 }
0x106e   :  { %v3820_v40 = vunpack.i.h.s16 %v3812_v22  ;;  %v3833_v52 = vrot.slane %v3826_v11, %v6130_v16  ;;  %v3840_v56 = vrot.slane %v3817_v43, %v6130_v16  ;;  %v5549_v41 = vpack.i.b16 %v3812_v22, %v3818_v54 }
0x1070   :  { %v3841_v5 = vcombine.low %v3833_v52, %v3840_v56  ;;  %v5550_v39 = vpack.i.b16 %v3803_v19, %v3820_v40 }
0x1072   :  { %v7031_v49 = vrot.slane %v3841_v5, %v6130_v16  ;;  %v3900_v20 = vcombine.low %v5549_v41, %v5550_v39 }
0x1074   :  { %v3907_v60 = vrot.slane %v3900_v20, %v6130_v16  ;;  %3849 = vrot.lane.b32.xlu0 %v7031_v49, %s5985_s25 }
0x1076   :  { %v3915_v30 = vcombine.low %v3907_v60, %v3914_v15 }
0x1078   :  { %v7038_v28 = vrot.slane %v3915_v30, %v6130_v16 }
0x107a   :  { %3923 = vrot.lane.b32.xlu1 %v7038_v28, %s5985_s25 }
0x10e6   :  { %v3850_v32 = vpop.permute.xlu0 %3849 }
0x10e7   :  { %v3855_v6 = vsel %vm1599_vm4, %v3850_v32, 0 }
0x10e8   :  { %5759 = vmatpush3.bf16.xpose.msra.mxu0 %v3855_v6 }
0x10e9   :  { %5770 = vmatprep.subr.bf16.mxu0 %v7402_v55 }
0x10ec   :  { %v3924_v18 = vpop.permute.xlu1 %3923 }
0x10ed   :  { %v3929_v4 = vsel %vm1599_vm4, %v3924_v18, 0 }
0x10ee   :  { %5765 = vmatpush3.bf16.xpose.msra.mxu1 %v3929_v4 }
0x10ef   :  { %5761 = vmatmul.mubr.msk.bf16.vlgmr.msra.gmra.mxu0 %vm1599_vm4, %v7031_v49  ;;  %5776 = vmatprep.subr.bf16.mxu1 %v7402_v55 }
0x10f0   :  { %5772 = vmatprep.mubr.msk.bf16.mxu0 %vm5984_vm3, %v7402_v55 }
0x10f5   :  { %5767 = vmatmul.mubr.msk.bf16.vlgmr.msra.gmra.mxu1 %vm1599_vm4, %v7038_v28 }
0x10f6   :  { %5778 = vmatprep.mubr.msk.bf16.mxu1 %vm5984_vm3, %v7402_v55 }
0x11af   :  { %v3891_v8 = vpop.f32.mrf.mxu0 }
0x11b0   :  { %v3971_v9 = vsel %vm1720_vm5, %v3891_v8, -inf }
0x11b1   :  { %3972 = vmax.xlane.f32.xlu1 %v3971_v9  ;;  %v5762_v42 = vpop.f32.mrf.mxu0 }
0x11b3   :  { %v3894_v51 = vpop.f32.mrf.mxu0 }
0x11b5   :  { %v5763_v61 = vpop.f32.mrf.mxu0  ;;  %v3965_v29 = vpop.f32.mrf.mxu1 }
0x11b6   :  { %v3974_v25 = vsel %vm1720_vm5, %v3965_v29, -inf }
0x11b7   :  { %3975 = vmax.xlane.f32.xlu0 %v3974_v25  ;;  %v5768_v26 = vpop.f32.mrf.mxu1 }
0x11b9   :  { %v3968_v59 = vpop.f32.mrf.mxu1 }
0x11bb   :  { %v5769_v14 = vpop.f32.mrf.mxu1 }
0x11c2   :  { %4043 = vrot.lane.b32.xlu1 %v7038_v28, %s5986_s3 }
0x11c6   :  { %4093 = vrot.lane.b32.xlu1 %v7031_v49, %s5987_s26 }
0x123a   :  { %v3973_v21 = vpop.xlane.xlu1 %3972 }
0x123b   :  { %v3977_v0 = vsub.f32 %v3891_v8, %v3973_v21 }
0x123d   :  { %v3979_v57 = vmul.f32 1.442695, %v3977_v0 }
0x123e   :  { %v4044_v36 = vpop.permute.xlu1 %4043 }
0x123f   :  { %5929 = vpow2.f32 %v3979_v57  ;;  %v4049_v62 = vand.u32 %v4044_v36, %v7408_v24 }
0x1240   :  { %v3976_v3 = vpop.xlane.xlu0 %3975 }
0x1241   :  { %v3978_v35 = vsub.f32 %v3965_v29, %v3976_v3  ;;  %5777 = vmatpush3.bf16.msra.mxu1 %v4049_v62 }
0x1242   :  { %5788 = vmatprep.subr.bf16.mxu1 %v7402_v55  ;;  %v4094_v34 = vpop.permute.xlu1 %4093 }
0x1243   :  { %v3981_v63 = vmul.f32 1.442695, %v3978_v35  ;;  %v4099_v52 = vsel %vm1599_vm4, %v4094_v34, 0 }
0x1245   :  { %5931 = vpow2.f32 %v3981_v63 }
0x124c   :  { %v5930_v17 = vpop.eup %5929 }
0x124d   :  { %v3983_v58 = vsel %vm1720_vm5, %v5930_v17, 0.0 }
0x124e   :  { %3984 = vadd.xlane.f32.xlu0 %v3983_v58 }
0x1252   :  { %v5932_v7 = vpop.eup %5931 }
0x1253   :  { %v3986_v33 = vsel %vm1720_vm5, %v5932_v7, 0.0 }
0x1254   :  { %3987 = vadd.xlane.f32.xlu1 %v3986_v33 }
0x1264   :  { %3995 = vrot.lane.b32.xlu0 %v7031_v49, %s5986_s3 }
0x1265   :  { %4143 = vrot.lane.b32.xlu1 %v7038_v28, %s5987_s26 }
0x1268   :  { %4091 = vrot.lane.b32.xlu0 %v7031_v49, %s5988_s27 }
0x1269   :  { %4141 = vrot.lane.b32.xlu1 %v7038_v28, %s5988_s27 }
0x12d7   :  { %v3985_v10 = vpop.xlane.xlu0 %3984 }
0x12d8   :  { %5933 = vrcp.f32 %v3985_v10 }
0x12db   :  { %v3996_v19 = vpop.permute.xlu0 %3995 }
0x12dc   :  { %v4001_v22 = vand.u32 %v3996_v19, %v7408_v24 }
0x12dd   :  { %v3988_v43 = vpop.xlane.xlu1 %3987 }
0x12de   :  { %5935 = vrcp.f32 %v3988_v43  ;;  %5771 = vmatpush3.bf16.msra.mxu0 %v4001_v22 }
0x12df   :  { %5782 = vmatprep.subr.bf16.mxu0 %v7402_v55  ;;  %v4092_v20 = vpop.permute.xlu0 %4091 }
0x12e1   :  { %v4144_v5 = vpop.permute.xlu1 %4143 }
0x12e2   :  { %v4149_v39 = vsel %vm1599_vm4, %v4144_v5, 0 }
0x12e5   :  { %v5934_v54 = vpop.eup %5933  ;;  %v4142_v60 = vpop.permute.xlu1 %4141 }
0x12e6   :  { %v3991_v11 = vmul.f32 %v5934_v54, %v5930_v17 }
0x12e8   :  { %v3993_v40 = vpack.c.bf16 %v3991_v11, %v3991_v11 }
0x12ea   :  { %5773 = vmatmul.mubr.msk.bf16.vlgmr.msra.gmra.mxu0 %vm1747_vm8, %v3993_v40 }
0x12eb   :  { %v5936_v56 = vpop.eup %5935  ;;  %5783 = vmatpush3.bf16.xpose.msra.mxu0 %v4099_v52  ;;  %5784 = vmatprep.mubr.msk.bf16.mxu0 %vm5984_vm3, %v7402_v55 }
0x12ec   :  { %v3992_v13 = vmul.f32 %v5936_v56, %v5932_v7  ;;  %5794 = vmatprep.subr.bf16.mxu0 %v7402_v55 }
0x12ee   :  { %v3994_v41 = vpack.c.bf16 %v3992_v13, %v3992_v13 }
0x12f0   :  { %5779 = vmatmul.mubr.msk.bf16.vlgmr.msra.gmra.mxu1 %vm1747_vm8, %v3994_v41 }
0x12f1   :  { %5789 = vmatpush3.bf16.xpose.msra.mxu1 %v4149_v39  ;;  %5790 = vmatprep.mubr.msk.bf16.mxu1 %vm5984_vm3, %v7402_v55 }
0x12f2   :  { %5785 = vmatmul.mubr.msk.bf16.vlgmr.msra.gmra.mxu0 %vm1599_vm4, %v4092_v20  ;;  %5800 = vmatprep.subr.bf16.mxu1 %v7402_v55 }
0x12f3   :  { %5796 = vmatprep.mubr.msk.bf16.mxu0 %vm5984_vm3, %v7402_v55 }
0x12f8   :  { %5791 = vmatmul.mubr.msk.bf16.vlgmr.msra.gmra.mxu1 %vm1599_vm4, %v4142_v60  ;;  %v5879_v60 = vld [vmem:[%s7361_s9 + $0x18] sm:$0xff]  }
0x12f9   :  { %5802 = vmatprep.mubr.msk.bf16.mxu1 %vm5984_vm3, %v7402_v55 }
0x13aa   :  { %v7090_v15 = vpop.f32.mrf.mxu0 }
0x13ac   :  { %v5774_v30 = vpop.f32.mrf.mxu0 }
0x13ae   :  { %v4040_v32 = vpop.f32.mrf.mxu0 }
0x13af   :  { %v5880_v32 = vld [vmem:[%s7361_s9 + $0x10] sm:$0xff]  }
0x13b0   :  { %v5775_v6 = vpop.f32.mrf.mxu0  ;;  %v7092_v18 = vpop.f32.mrf.mxu1 }
0x13b2   :  { %v5780_v4 = vpop.f32.mrf.mxu1  ;;  %v4135_v8 = vpop.f32.mrf.mxu0 }
0x13b3   :  { %v4191_v9 = vsel %vm1720_vm5, %v4135_v8, -inf }
0x13b4   :  { %v4088_v42 = vpop.f32.mrf.mxu1  ;;  %4192 = vmax.xlane.f32.xlu0 %v4191_v9  ;;  %v5786_v51 = vpop.f32.mrf.mxu0 }
0x13b6   :  { %v5781_v61 = vpop.f32.mrf.mxu1  ;;  %v4138_v29 = vpop.f32.mrf.mxu0 }
0x13b8   :  { %v5787_v25 = vpop.f32.mrf.mxu0  ;;  %v4185_v26 = vpop.f32.mrf.mxu1 }
0x13b9   :  { %v4194_v59 = vsel %vm1720_vm5, %v4185_v26, -inf }
0x13ba   :  { %4195 = vmax.xlane.f32.xlu1 %v4194_v59  ;;  %v5792_v14 = vpop.f32.mrf.mxu1 }
0x13bc   :  { %v4188_v21 = vpop.f32.mrf.mxu1 }
0x13be   :  { %v5793_v0 = vpop.f32.mrf.mxu1 }
0x13cb   :  { %4263 = vrot.lane.b32.xlu1 %v7038_v28, %s5990_s28 }
0x143d   :  { %v4193_v57 = vpop.xlane.xlu0 %4192 }
0x143e   :  { %v4197_v36 = vsub.f32 %v4135_v8, %v4193_v57 }
0x1440   :  { %v4199_v62 = vmul.f32 1.442695, %v4197_v36 }
0x1442   :  { %5937 = vpow2.f32 %v4199_v62 }
0x1443   :  { %v4196_v3 = vpop.xlane.xlu1 %4195 }
0x1444   :  { %v4198_v35 = vsub.f32 %v4185_v26, %v4196_v3 }
0x1446   :  { %v4201_v63 = vmul.f32 1.442695, %v4198_v35 }
0x1447   :  { %v4264_v17 = vpop.permute.xlu1 %4263 }
0x1448   :  { %5939 = vpow2.f32 %v4201_v63  ;;  %v4269_v58 = vand.u32 %v4264_v17, %v7408_v24 }
0x144a   :  { %5801 = vmatpush3.bf16.msra.mxu1 %v4269_v58 }
0x144b   :  { %5814 = vmatprep.subr.bf16.mxu1 %v7402_v55 }
0x144f   :  { %v5938_v7 = vpop.eup %5937 }
0x1450   :  { %v4203_v33 = vsel %vm1720_vm5, %v5938_v7, 0.0 }
0x1451   :  { %4204 = vadd.xlane.f32.xlu0 %v4203_v33 }
0x1455   :  { %v5940_v10 = vpop.eup %5939 }
0x1456   :  { %v4206_v28 = vsel %vm1720_vm5, %v5940_v10, 0.0 }
0x1457   :  { %4207 = vadd.xlane.f32.xlu0 %v4206_v28 }
0x146d   :  { %4215 = vrot.lane.b32.xlu0 %v7031_v49, %s5990_s28 }
0x14da   :  { %v4205_v34 = vpop.xlane.xlu0 %4204 }
0x14db   :  { %5941 = vrcp.f32 %v4205_v34 }
0x14e0   :  { %v4208_v19 = vpop.xlane.xlu0 %4207 }
0x14e1   :  { %5943 = vrcp.f32 %v4208_v19 }
0x14e4   :  { %v4216_v22 = vpop.permute.xlu0 %4215 }
0x14e5   :  { %v4221_v43 = vand.u32 %v4216_v22, %v7408_v24 }
0x14e7   :  { %5795 = vmatpush3.bf16.msra.mxu0 %v4221_v43 }
0x14e8   :  { %v5942_v54 = vpop.eup %5941  ;;  %5806 = vmatprep.subr.bf16.mxu0 %v7402_v55 }
0x14e9   :  { %v4211_v11 = vmul.f32 %v5942_v54, %v5938_v7 }
0x14eb   :  { %v4213_v40 = vpack.c.bf16 %v4211_v11, %v4211_v11 }
0x14ed   :  { %5797 = vmatmul.mubr.msk.bf16.vlgmr.msra.gmra.mxu0 %vm1747_vm8, %v4213_v40 }
0x14ee   :  { %v5944_v52 = vpop.eup %5943  ;;  %5810 = vmatprep.mubr.msk.bf16.mxu0 %vm5984_vm3, %v7402_v55  ;;  %5807 = vmatpush3.bf16.msra.mxu0 %v5879_v60 }
0x14ef   :  { %v4212_v49 = vmul.f32 %v5944_v52, %v5940_v10  ;;  %5808 = vmatprep.subr.bf16.mxu0 %v7402_v55 }
0x14f1   :  { %v4214_v56 = vpack.c.bf16 %v4212_v49, %v4212_v49 }
0x14f2   :  { %5809 = vmatpush3.bf16.msra.mxu0 %v5880_v32 }
0x14f3   :  { %5803 = vmatmul.mubr.msk.bf16.vlgmr.msra.gmra.mxu1 %vm1747_vm8, %v4214_v56  ;;  %5822 = vmatprep.subr.bf16.mxu0 %v7402_v55 }
0x14f4   :  { %5818 = vmatprep.mubr.msk.bf16.mxu1 %vm5984_vm3, %v7402_v55 }
0x15ad   :  { %v4257_v24 = vpop.f32.mrf.mxu0 }
0x15ae   :  { %4313 = vrot.lane.b32.xlu1 %v4257_v24, %s5991_s4  ;;  %v5564_v24 = vld [vmem:[%s7362_s10 + $0x1] ss:$0 sm:$0xff] }
0x15af   :  { %v5798_v13 = vpop.f32.mrf.mxu0 }
0x15b1   :  { %v4260_v5 = vpop.f32.mrf.mxu0 }
0x15b3   :  { %v5799_v41 = vpop.f32.mrf.mxu0  ;;  %v4305_v39 = vpop.f32.mrf.mxu1 }
0x15b4   :  { %4315 = vrot.lane.b32.xlu1 %v4305_v39, %s5991_s4 }
0x15b5   :  { %v5804_v20 = vpop.f32.mrf.mxu1 }
0x15b7   :  { %v4308_v30 = vpop.f32.mrf.mxu1 }
0x15b9   :  { %v5805_v6 = vpop.f32.mrf.mxu1 }
0x1620   :  { %v4314_v4 = vpop.permute.xlu1 %4313 }
0x1621   :  { %v4319_v8 = vsel %vm1599_vm4, %v7090_v15, %v4314_v4 }
0x1622   :  { %v4330_v9 = vrot.slane %v4319_v8, %v6130_v16  ;;  %v4323_v42 = vcombine.high %v4319_v8, %v4319_v8 }
0x1624   :  { %v4338_v51 = vcombine.high %v4330_v9, %v4330_v9  ;;  %v4337_v25 = vrot.slane %v4323_v42, %v6130_v16  ;;  %v4345_v26 = vrot.slane %v4330_v9, %v6130_v16 }
0x1626   :  { %v4359_v61 = vrot.slane %v4338_v51, %v6130_v16  ;;  %v4316_v29 = vpop.permute.xlu1 %4315  ;;  %v4352_v62 = vrot.slane %v4337_v25, %v6130_v16 }
0x1627   :  { %v4320_v59 = vsel %vm1599_vm4, %v7092_v18, %v4316_v29 }
0x1628   :  { %v4362_v14 = vcombine.high %v4320_v59, %v4320_v59  ;;  %v4369_v21 = vrot.slane %v4320_v59, %v6130_v16  ;;  %v4401_v0 = vcombine.low %v4345_v26, %v4359_v61  ;;  %v5558_v57 = vcombine.high %v4345_v26, %v4359_v61 }
0x162a   :  { %v4376_v15 = vrot.slane %v4362_v14, %v6130_v16  ;;  %v4377_v36 = vcombine.high %v4369_v21, %v4369_v21  ;;  %v4384_v3 = vrot.slane %v4369_v21, %v6130_v16  ;;  %v4411_v63 = vrot.slane %v4401_v0, %v6130_v16 }
0x162b   :  { %v4418_v17 = vrot.slane %v5558_v57, %v6130_v16 }
0x162c   :  { %v4398_v35 = vrot.slane %v4377_v36, %v6130_v16  ;;  %v4399_v58 = vcombine.high %v4384_v3, %v4384_v3  ;;  %v4403_v18 = vcombine.low %v4352_v62, %v4384_v3  ;;  %v4391_v7 = vrot.slane %v4376_v15, %v6130_v16 }
0x162d   :  { %v4433_v34 = vcombine.low %v4411_v63, %v4418_v17 }
0x162e   :  { %v4400_v33 = vcombine.high %v4398_v35, %v4398_v35  ;;  %v4404_v10 = vcombine.low %v4398_v35, %v4399_v58  ;;  %v4425_v19 = vrot.slane %v4403_v18, %v6130_v16 }
0x162f   :  { %v4441_v11 = vrot.slane %v4433_v34, %v6130_v16 }
0x1630   :  { %v4450_v28 = vcombine.low %v4400_v33, %v4391_v7  ;;  %v4432_v22 = vrot.slane %v4404_v10, %v6130_v16 }
0x1632   :  { %v4434_v43 = vcombine.low %v4425_v19, %v4432_v22  ;;  %v4457_v54 = vrot.slane %v4450_v28, %v6130_v16 }
0x1634   :  { %v4448_v40 = vrot.slane %v4434_v43, %v6130_v16  ;;  %v4464_v52 = vrot.slane %v4457_v54, %v6130_v16 }
0x1636   :  { %v4449_v49 = vcombine.low %v4441_v11, %v4448_v40 }
0x1638   :  { %v4467_v56 = vpack.c.bf16 %v4464_v52, %v4449_v49 }
0x163a   :  { %5811 = vmatmul.mubr.msk.bf16.vlgmr.msra.gmra.mxu0 %vm547_vm1, %v4467_v56 }
0x163b   :  { %5830 = vmatprep.mubr.msk.bf16.mxu0 %vm5984_vm3, %v7402_v55 }
0x16fa   :  { %v4530_v13 = vpop.f32.mrf.mxu0 }
0x16fb   :  { %v4531_v5 = vadd.f32 %v5564_v24, %v4530_v13 }
0x16fc   :  { %v5812_v41 = vpop.f32.mrf.mxu0 }
0x16fd   :  { %v4539_v39 = vcombine.high %v4531_v5, %v4531_v5  ;;  %v4546_v20 = vrot.slane %v4531_v5, %v6130_v16 }
0x16fe   :  { %v4533_v60 = vpop.f32.mrf.mxu0 }
0x16ff   :  { %v4553_v30 = vrot.slane %v4539_v39, %v6130_v16  ;;  %v4554_v32 = vcombine.high %v4546_v20, %v4546_v20  ;;  %v4562_v6 = vrot.slane %v4546_v20, %v6130_v16  ;;  %v4534_v4 = vadd.f32 %v5564_v24, %v4533_v60 }
0x1700   :  { %v5813_v8 = vpop.f32.mrf.mxu0 }
0x1701   :  { %v4555_v9 = vcombine.high %v4553_v30, %v4553_v30  ;;  %v4569_v42 = vrot.slane %v4553_v30, %v6130_v16  ;;  %v4576_v51 = vrot.slane %v4554_v32, %v6130_v16  ;;  %v4584_v61 = vcombine.high %v4562_v6, %v4562_v6  ;;  %v7410_v8 = vld [vmem:[#allocation6_spill] sm:$0xff] }
0x1702   :  { %v4594_v29 = vrot.slane %v4534_v4, %v6130_v16  ;;  %v7159_v21 = vadd.f32 %v4562_v6, %v6845_v53  ;;  %v7409_v6 = vld [vmem:[#allocation5_spill] sm:$0xff] }
0x1703   :  { %v4583_v25 = vrot.slane %v4555_v9, %v6130_v16  ;;  %v4585_v26 = vcombine.high %v4569_v42, %v4569_v42  ;;  %v4586_v59 = vcombine.high %v4576_v51, %v4576_v51  ;;  %v4621_v14 = vadd.f32 %v4576_v51, %v6842_v27 }
0x1704   :  { %v4622_v0 = vadd.f32 %v4584_v61, %v6848_v37  ;;  %v4595_v57 = vcombine.high %v4594_v29, %v4594_v29  ;;  %v4602_v15 = vrot.slane %v4594_v29, %v6130_v16  ;;  %v4624_v3 = vadd.f32 %v4569_v42, %v6855_v31  ;;  %v7411_v42 = vld [vmem:[#allocation7_spill] sm:$0xff] }
0x1705   :  { %v4587_v36 = vcombine.high %v4583_v25, %v4583_v25  ;;  %v4623_v62 = vadd.f32 %v4586_v59, %v6852_v1  ;;  %v7166_v35 = vadd.f32 %v4583_v25, %v6858_v2  ;;  %v4644_v27 = vcombine.low %v7159_v21, %v4621_v14 }
0x1706   :  { %v4609_v63 = vrot.slane %v4595_v57, %v6130_v16  ;;  %v4626_v53 = vadd.f32 %v4585_v26, %v6864_v12  ;;  %v4628_v18 = vadd.f32 %v4602_v15, %v6874_v38 }
0x1707   :  { %v4627_v17 = vadd.f32 %v4587_v36, %v6867_v44  ;;  %v4645_v37 = vcombine.low %v4622_v0, %v4623_v62  ;;  %v4646_v58 = vcombine.low %v4624_v3, %v7166_v35  ;;  %v4654_v31 = vrot.slane %v4644_v27, %v6130_v16 }
0x1708   :  { %v4629_v1 = vadd.f32 %v4609_v63, %v6877_v23 }
0x1709   :  { %v4647_v7 = vcombine.low %v4626_v53, %v4627_v17  ;;  %v4661_v2 = vrot.slane %v4645_v37, %v6130_v16  ;;  %v4668_v10 = vrot.slane %v4646_v58, %v6130_v16 }
0x170a   :  { %v4693_v33 = vcombine.low %v4628_v18, %v4629_v1 }
0x170b   :  { %v4675_v28 = vrot.slane %v4647_v7, %v6130_v16  ;;  %v4676_v12 = vcombine.low %v4654_v31, %v4661_v2 }
0x170c   :  { %v4700_v44 = vrot.slane %v4693_v33, %v6130_v16 }
0x170d   :  { %v4677_v34 = vcombine.low %v4668_v10, %v4675_v28  ;;  %v4684_v38 = vrot.slane %v4676_v12, %v6130_v16 }
0x170e   :  { %v4707_v19 = vrot.slane %v4700_v44, %v6130_v16 }
0x170f   :  { %v4691_v23 = vrot.slane %v4677_v34, %v6130_v16 }
0x1710   :  { %v4713_v22 = vsel %vm551_vm2, %v4707_v19, 0.0 }
0x1711   :  { %4714 = vadd.xlane.f32.xlu1 %v4713_v22  ;;  %v4692_v43 = vcombine.low %v4684_v38, %v4691_v23 }
0x1713   :  { %v4710_v54 = vsel %vm547_vm1, %v4692_v43, 0.0 }
0x1714   :  { %4711 = vadd.xlane.f32.xlu0 %v4710_v54 }
0x179a   :  { %v4715_v11 = vpop.xlane.xlu1 %4714 }
0x179b   :  { %v4717_v40 = vmul.f32 0.03125, %v4715_v11  ;;  %v5881_v11 = vld [vmem:[%s7365_s13 + $0x18] sm:$0xff]  }
0x179c   :  { %5815 = vmatpush3.bf16.msra.mxu1 %v5881_v11 }
0x179d   :  { %v4755_v52 = vrot.slane %v4717_v40, %v6197_v45  ;;  %v4759_v49 = vrot.slane %v4717_v40, %v6200_v46  ;;  %v4712_v56 = vpop.xlane.xlu0 %4711  ;;  %v5882_v40 = vld [vmem:[%s7365_s13 + $0x10] sm:$0xff]   ;;  %5816 = vmatprep.subr.bf16.mxu1 %v7402_v55 }
0x179e   :  { %v4716_v24 = vmul.f32 0.03125, %v4712_v56 }
0x179f   :  { %v7187_v13 = vsub.f32 %v4628_v18, %v4755_v52  ;;  %v7193_v60 = vsub.f32 %v4629_v1, %v4759_v49  ;;  %v5570_v52 = vld [vmem:[%s7363_s11 + $0x1] ss:$0 sm:$0xff] }
0x17a0   :  { %v4723_v5 = vrot.slane %v4716_v24, %v6197_v45  ;;  %v4727_v41 = vrot.slane %v4716_v24, %v6200_v46  ;;  %v4731_v39 = vrot.slane %v4716_v24, %v6203_v47  ;;  %v4735_v20 = vrot.slane %v4716_v24, %v6206_v48  ;;  %5817 = vmatpush3.bf16.msra.mxu1 %v5882_v40  ;;  %v5571_v49 = vld [vmem:[%s7364_s12 + $0x1] ss:$0 sm:$0xff] }
0x17a1   :  { %v4788_v30 = vmul.f32 %v7187_v13, %v7187_v13  ;;  %v4739_v32 = vrot.slane %v4716_v24, %v6209_v50  ;;  %v4743_v4 = vrot.slane %v4716_v24, %v7409_v6  ;;  %v4747_v9 = vrot.slane %v4716_v24, %v7410_v8  ;;  %5834 = vmatprep.subr.bf16.mxu1 %v7402_v55 }
0x17a2   :  { %v4751_v51 = vrot.slane %v4716_v24, %v7411_v42  ;;  %v7202_v61 = vsub.f32 %v7159_v21, %v4723_v5  ;;  %v7204_v29 = vsub.f32 %v4621_v14, %v4727_v41  ;;  %v7206_v25 = vsub.f32 %v4622_v0, %v4731_v39 }
0x17a3   :  { %v7208_v26 = vsub.f32 %v4623_v62, %v4735_v20  ;;  %v7210_v59 = vsub.f32 %v4624_v3, %v4739_v32  ;;  %v7213_v57 = vsub.f32 %v7166_v35, %v4743_v4  ;;  %v7215_v15 = vsub.f32 %v4626_v53, %v4747_v9 }
0x17a4   :  { %v7217_v36 = vsub.f32 %v4627_v17, %v4751_v51  ;;  %v4780_v63 = vmul.f32 %v7202_v61, %v7202_v61  ;;  %v4781_v14 = vmul.f32 %v7204_v29, %v7204_v29  ;;  %v4782_v0 = vmul.f32 %v7206_v25, %v7206_v25 }
0x17a5   :  { %v4783_v62 = vmul.f32 %v7208_v26, %v7208_v26  ;;  %v4784_v3 = vmul.f32 %v7210_v59, %v7210_v59  ;;  %v4785_v27 = vmul.f32 %v7213_v57, %v7213_v57  ;;  %v4789_v53 = vmul.f32 %v7193_v60, %v7193_v60 }
0x17a6   :  { %v4786_v17 = vmul.f32 %v7215_v15, %v7215_v15  ;;  %v4787_v37 = vmul.f32 %v7217_v36, %v7217_v36  ;;  %v4800_v58 = vcombine.low %v4780_v63, %v4781_v14  ;;  %v4945_v5 = vcombine.high %v5570_v52, %v5570_v52 }
0x17a7   :  { %v4801_v18 = vcombine.low %v4782_v0, %v4783_v62  ;;  %v4802_v1 = vcombine.low %v4784_v3, %v4785_v27  ;;  %v4849_v28 = vcombine.low %v4788_v30, %v4789_v53  ;;  %v5017_v41 = vcombine.high %v5571_v49, %v5571_v49 }
0x17a8   :  { %v4803_v7 = vcombine.low %v4786_v17, %v4787_v37  ;;  %v4810_v31 = vrot.slane %v4800_v58, %v6130_v16  ;;  %v4952_v30 = vrot.slane %v5570_v52, %v6130_v16  ;;  %v4959_v4 = vrot.slane %v4945_v5, %v6130_v16 }
0x17a9   :  { %v4817_v2 = vrot.slane %v4801_v18, %v6130_v16  ;;  %v4824_v33 = vrot.slane %v4802_v1, %v6130_v16  ;;  %v4856_v38 = vrot.slane %v4849_v28, %v6130_v16  ;;  %v5024_v9 = vrot.slane %v5571_v49, %v6130_v16 }
0x17aa   :  { %v4831_v10 = vrot.slane %v4803_v7, %v6130_v16  ;;  %v5031_v51 = vrot.slane %v5017_v41, %v6130_v16  ;;  %v4960_v14 = vcombine.high %v4952_v30, %v4952_v30  ;;  %v4961_v0 = vcombine.high %v4959_v4, %v4959_v4 }
0x17ab   :  { %v4832_v12 = vcombine.low %v4810_v31, %v4817_v2  ;;  %v4863_v43 = vrot.slane %v4856_v38, %v6130_v16  ;;  %v5032_v62 = vcombine.high %v5024_v9, %v5024_v9  ;;  %v4968_v27 = vrot.slane %v4952_v30, %v6130_v16 }
0x17ac   :  { %v4833_v44 = vcombine.low %v4824_v33, %v4831_v10  ;;  %v5033_v3 = vcombine.high %v5031_v51, %v5031_v51  ;;  %v4982_v53 = vrot.slane %v4960_v14, %v6130_v16  ;;  %v4975_v17 = vrot.slane %v4959_v4, %v6130_v16 }
0x17ad   :  { %v4840_v34 = vrot.slane %v4832_v12, %v6130_v16  ;;  %v4869_v54 = vsel %vm551_vm2, %v4863_v43, 0.0  ;;  %v4989_v37 = vrot.slane %v4961_v0, %v6130_v16  ;;  %v5040_v58 = vrot.slane %v5024_v9, %v6130_v16 }
0x17ae   :  { %v4847_v19 = vrot.slane %v4833_v44, %v6130_v16  ;;  %v5047_v18 = vrot.slane %v5031_v51, %v6130_v16  ;;  %v5054_v1 = vrot.slane %v5032_v62, %v6130_v16  ;;  %v5061_v7 = vrot.slane %v5033_v3, %v6130_v16 }
0x17af   :  { %v4990_v31 = vcombine.high %v4968_v27, %v4968_v27  ;;  %v4991_v2 = vcombine.high %v4975_v17, %v4975_v17  ;;  %v4992_v33 = vcombine.high %v4982_v53, %v4982_v53  ;;  %v4993_v10 = vcombine.high %v4989_v37, %v4989_v37 }
0x17b0   :  { %v4848_v23 = vcombine.low %v4840_v34, %v4847_v19  ;;  %v5062_v12 = vcombine.high %v5040_v58, %v5040_v58  ;;  %v5063_v44 = vcombine.high %v5047_v18, %v5047_v18  ;;  %v5064_v34 = vcombine.high %v5054_v1, %v5054_v1 }
0x17b1   :  { %v5065_v19 = vcombine.high %v5061_v7, %v5061_v7 }
0x17b2   :  { %v4866_v22 = vsel %vm547_vm1, %v4848_v23, 0.0 }
0x17b3   :  { %4867 = vadd.xlane.f32.xlu0 %v4866_v22 }
0x17b7   :  { %4870 = vadd.xlane.f32.xlu0 %v4869_v54 }
0x183c   :  { %v4868_v56 = vpop.xlane.xlu0 %4867 }
0x183d   :  { %v4872_v24 = vmul.f32 0.03125, %v4868_v56 }
0x183f   :  { %v4874_v39 = vadd.f32 1e-05, %v4872_v24 }
0x1840   :  { %v4871_v20 = vpop.xlane.xlu0 %4870 }
0x1841   :  { %5945 = vrsqrt.f32 %v4874_v39  ;;  %v4873_v32 = vmul.f32 0.03125, %v4871_v20 }
0x1843   :  { %v4875_v63 = vadd.f32 1e-05, %v4873_v32 }
0x1845   :  { %5947 = vrsqrt.f32 %v4875_v63 }
0x184e   :  { %v5946_v28 = vpop.eup %5945 }
0x184f   :  { %v4883_v38 = vrot.slane %v5946_v28, %v6197_v45  ;;  %v4887_v23 = vrot.slane %v5946_v28, %v6200_v46  ;;  %v4891_v22 = vrot.slane %v5946_v28, %v6203_v47  ;;  %v4895_v43 = vrot.slane %v5946_v28, %v6206_v48 }
0x1850   :  { %v4899_v54 = vrot.slane %v5946_v28, %v6209_v50  ;;  %v4903_v11 = vrot.slane %v5946_v28, %v7409_v6  ;;  %v4907_v40 = vrot.slane %v5946_v28, %v7410_v8  ;;  %v4911_v52 = vrot.slane %v5946_v28, %v7411_v42 }
0x1851   :  { %v4930_v49 = vmul.f32 %v4883_v38, %v7202_v61  ;;  %v4931_v56 = vmul.f32 %v4887_v23, %v7204_v29  ;;  %v4932_v24 = vmul.f32 %v4891_v22, %v7206_v25  ;;  %v4933_v5 = vmul.f32 %v4895_v43, %v7208_v26  ;;  %v5884_v38 = vld [vmem:[%s7367_s15 + $0x30] sm:$0xff]   ;;  %v5885_v23 = vld [vmem:[%s7367_s15 + $0x28] sm:$0xff]   ;;  %v5886_v22 = vld [vmem:[%s7367_s15 + $0x20] sm:$0xff]  }
0x1852   :  { %v5948_v41 = vpop.eup %5947  ;;  %v4934_v47 = vmul.f32 %v4899_v54, %v7210_v59  ;;  %v4935_v48 = vmul.f32 %v4903_v11, %v7213_v57  ;;  %v4936_v50 = vmul.f32 %v4907_v40, %v7215_v15  ;;  %v4937_v6 = vmul.f32 %v4911_v52, %v7217_v36  ;;  %v5577_v43 = vld [vmem:[%s7366_s14 + $0x1] ss:$0 sm:$0xff] }
0x1853   :  { %v4915_v8 = vrot.slane %v5948_v41, %v6197_v45  ;;  %v4919_v42 = vrot.slane %v5948_v41, %v6200_v46  ;;  %v5002_v61 = vmul.f32 %v4968_v27, %v4930_v49  ;;  %v5003_v39 = vmul.f32 %v4982_v53, %v4931_v56 }
0x1854   :  { %v5004_v29 = vmul.f32 %v4990_v31, %v4932_v24  ;;  %v5005_v20 = vmul.f32 %v4992_v33, %v4933_v5  ;;  %v5006_v25 = vmul.f32 %v4975_v17, %v4934_v47  ;;  %v5007_v30 = vmul.f32 %v4989_v37, %v4935_v48 }
0x1855   :  { %v4938_v26 = vmul.f32 %v4915_v8, %v7187_v13  ;;  %v4939_v59 = vmul.f32 %v4919_v42, %v7193_v60  ;;  %v5008_v32 = vmul.f32 %v4991_v2, %v4936_v50  ;;  %v5009_v57 = vmul.f32 %v4993_v10, %v4937_v6 }
0x1856   :  { %v5074_v4 = vadd.f32 %v5040_v58, %v5002_v61  ;;  %v5075_v15 = vadd.f32 %v5054_v1, %v5003_v39  ;;  %v5076_v9 = vadd.f32 %v5062_v12, %v5004_v29  ;;  %v5077_v36 = vadd.f32 %v5064_v34, %v5005_v20 }
0x1857   :  { %v5010_v51 = vmul.f32 %v4968_v27, %v4938_v26  ;;  %v5011_v63 = vmul.f32 %v4982_v53, %v4939_v59  ;;  %v5078_v14 = vadd.f32 %v5047_v18, %v5006_v25  ;;  %v5079_v46 = vadd.f32 %v5061_v7, %v5007_v30  ;;  %v5592_v25 = vld [vmem:[%s7368_s16 + $0x1] ss:$0 sm:$0xff] }
0x1858   :  { %v5080_v0 = vadd.f32 %v5063_v44, %v5008_v32  ;;  %v5081_v62 = vadd.f32 %v5065_v19, %v5009_v57  ;;  %v5094_v3 = vcombine.low %v5074_v4, %v5075_v15  ;;  %v5095_v31 = vcombine.low %v5076_v9, %v5077_v36  ;;  %v5883_v19 = vld [vmem:[%s7367_s15 + $0x38] sm:$0xff]  }
0x1859   :  { %v5082_v17 = vadd.f32 %v5040_v58, %v5010_v51  ;;  %v5083_v37 = vadd.f32 %v5054_v1, %v5011_v63  ;;  %v5096_v33 = vcombine.low %v5078_v14, %v5079_v46  ;;  %5823 = vmatpush3.bf16.msra.mxu0 %v5883_v19 }
0x185a   :  { %v5097_v13 = vcombine.low %v5080_v0, %v5081_v62  ;;  %v5104_v60 = vrot.slane %v5094_v3, %v6130_v16  ;;  %v5111_v2 = vrot.slane %v5095_v31, %v6130_v16  ;;  %5824 = vmatprep.subr.bf16.mxu0 %v7402_v55 }
0x185b   :  { %v5118_v10 = vrot.slane %v5096_v33, %v6130_v16  ;;  %v5143_v28 = vcombine.low %v5082_v17, %v5083_v37 }
0x185c   :  { %v5125_v27 = vrot.slane %v5097_v13, %v6130_v16  ;;  %v5126_v53 = vcombine.low %v5104_v60, %v5111_v2 }
0x185d   :  { %v5150_v18 = vrot.slane %v5143_v28, %v6130_v16  ;;  %5825 = vmatpush3.bf16.msra.mxu0 %v5884_v38 }
0x185e   :  { %v5127_v7 = vcombine.low %v5118_v10, %v5125_v27  ;;  %v5134_v12 = vrot.slane %v5126_v53, %v6130_v16  ;;  %5826 = vmatprep.subr.bf16.mxu0 %v7402_v55  ;;  %v5598_v10 = vld [vmem:[%s7369_s17] ss:$0 sm:$0xff] }
0x185f   :  { %v5157_v1 = vrot.slane %v5150_v18, %v6130_v16  ;;  %v5599_v27 = vld [vmem:[%s7370_s18] ss:$0 sm:$0xff] }
0x1860   :  { %v5141_v58 = vrot.slane %v5127_v7, %v6130_v16 }
0x1861   :  { %5827 = vmatpush3.bf16.msra.mxu0 %v5885_v23 }
0x1862   :  { %v5142_v44 = vcombine.low %v5134_v12, %v5141_v58  ;;  %5828 = vmatprep.subr.bf16.mxu0 %v7402_v55 }
0x1864   :  { %v5160_v34 = vpack.c.bf16 %v5157_v1, %v5142_v44 }
0x1865   :  { %5829 = vmatpush3.bf16.msra.mxu0 %v5886_v22 }
0x1866   :  { %5819 = vmatmul.mubr.msk.bf16.vlgmr.msra.gmra.mxu1 %vm547_vm1, %v5160_v34 }
0x1867   :  { %5838 = vmatprep.mubr.msk.bf16.mxu1 %vm5984_vm3, %v7402_v55 }
0x1926   :  { %v5223_v54 = vpop.f32.mrf.mxu1 }
0x1927   :  { %v5224_v11 = vadd.f32 %v5577_v43, %v5223_v54 }
0x1928   :  { %v5820_v40 = vpop.f32.mrf.mxu1 }
0x1929   :  { %v5581_v52 = vmul.f32 -1.702, %v5224_v11 }
0x192a   :  { %v5226_v49 = vpop.f32.mrf.mxu1 }
0x192b   :  { %v5234_v56 = vmul.f32 1.442695, %v5581_v52  ;;  %v5227_v24 = vadd.f32 %v5577_v43, %v5226_v49 }
0x192c   :  { %v5821_v5 = vpop.f32.mrf.mxu1 }
0x192d   :  { %5949 = vpow2.f32 %v5234_v56  ;;  %v5582_v41 = vmul.f32 -1.702, %v5227_v24 }
0x192f   :  { %v5236_v47 = vmul.f32 1.442695, %v5582_v41 }
0x1931   :  { %5951 = vpow2.f32 %v5236_v47 }
0x193a   :  { %v5950_v48 = vpop.eup %5949 }
0x193b   :  { %v5238_v50 = vadd.f32 1.0, %v5950_v48 }
0x193d   :  { %5953 = vrcp.f32 %v5238_v50 }
0x193e   :  { %v5952_v6 = vpop.eup %5951 }
0x193f   :  { %v5239_v8 = vadd.f32 1.0, %v5952_v6 }
0x1941   :  { %5955 = vrcp.f32 %v5239_v8 }
0x194a   :  { %v5954_v42 = vpop.eup %5953 }
0x194b   :  { %v5244_v39 = vmul.f32 %v5954_v42, %v5224_v11 }
0x194e   :  { %v5956_v61 = vpop.eup %5955 }
0x194f   :  { %v5245_v29 = vmul.f32 %v5956_v61, %v5227_v24 }
0x1951   :  { %v5246_v20 = vpack.c.bf16 %v5245_v29, %v5244_v39 }
0x1953   :  { %5831 = vmatmul.mubr.msk.bf16.vlgmr.msra.gmra.mxu0 %vm285_vm0, %v5246_v20 }
0x1a13   :  { %v5325_v30 = vpop.f32.mrf.mxu0 }
0x1a14   :  { %v5326_v26 = vadd.f32 %v5592_v25, %v5325_v30 }
0x1a15   :  { %v5832_v59 = vpop.f32.mrf.mxu0 }
0x1a16   :  { %v5332_v32 = vcombine.high %v5326_v26, %v5326_v26  ;;  %v5339_v4 = vrot.slane %v5326_v26, %v6130_v16 }
0x1a17   :  { %v5328_v57 = vpop.f32.mrf.mxu0 }
0x1a18   :  { %v5346_v15 = vrot.slane %v5332_v32, %v6130_v16  ;;  %v5354_v51 = vrot.slane %v5339_v4, %v6130_v16 }
0x1a19   :  { %v5833_v9 = vpop.f32.mrf.mxu0 }
0x1a1a   :  { %v5347_v36 = vcombine.high %v5346_v15, %v5346_v15  ;;  %v5364_v46 = vadd.f32 %v5354_v51, %v7159_v21 }
0x1a1c   :  { %v5361_v63 = vrot.slane %v5347_v36, %v6130_v16  ;;  %v5887_v16 = vld [vmem:[%s7371_s19 + $0x8] sm:$0xff]  }
0x1a1d   :  { %5835 = vmatpush3.bf16.msra.mxu1 %v5887_v16 }
0x1a1e   :  { %v5365_v14 = vadd.f32 %v5361_v63, %v7166_v35  ;;  %5836 = vmatprep.subr.bf16.mxu1 %v7402_v55 }
0x1a20   :  { %v5370_v0 = vrot.slane %v5365_v14, %v6197_v45  ;;  %v5888_v45 = vld [vmem:[%s7371_s19] sm:$0xff]   ;;  %s5992_s19 = smov [#allocation2]  }
0x1a21   :  { %5837 = vmatpush3.bf16.msra.mxu1 %v5888_v45  ;;  %s5470_s27 = sshll.u32 %s5992_s19, 4  ;;  %s5471_s27 = int_to_ptr.vmem [resolvable:$true] %s5470_s27 }
0x1a22   :  { %v5373_v62 = vsel %vm5372_vm9, %v5364_v46, %v5370_v0  ;;  %s5959_s28 = scalar_lea.vmem %s5471_s27, 32  ;;  %p5964_p1 = scmp.lt.s32.totalorder %s5471_s27, %s5471_s27 }
0x1a23   :  { %v5376_v3 = vsel %vm551_vm2, %v5373_v62, 0.0  ;;  %p5960_p0 = scmp.ne.s32.totalorder %s5471_s27, %s5959_s28  ;;  %p5965_p2 = scmp.lt.s32.totalorder %s5959_s28, %s5959_s28 }
0x1a24   :  { %5377 = vadd.xlane.f32.xlu0 %v5376_v3 }
0x1a25   :  { %p5966_p3 = por %p5965_p2, %p5964_p1 }
0x1a27   :  { %p5967_p4 = pnand %p5966_p3, %p5960_p0 }
0x1aad   :  { %v5378_v31 = vpop.xlane.xlu0 %5377 }
0x1aae   :  { %v5379_v17 = vmul.f32 0.03125, %v5378_v31 }
0x1ab0   :  { %v5380_v37 = vsub.f32 %v5373_v62, %v5379_v17 }
0x1ab2   :  { %v5381_v33 = vmul.f32 %v5380_v37, %v5380_v37 }
0x1ab4   :  { %v5382_v13 = vsel %vm551_vm2, %v5381_v33, 0.0 }
0x1ab5   :  { %5383 = vadd.xlane.f32.xlu1 %v5382_v13 }
0x1b3e   :  { %v5384_v21 = vpop.xlane.xlu1 %5383 }
0x1b3f   :  { %v5385_v35 = vmul.f32 0.03125, %v5384_v21 }
0x1b41   :  { %v5386_v60 = vadd.f32 1e-05, %v5385_v35 }
0x1b43   :  { %5957 = vrsqrt.f32 %v5386_v60 }
0x1b50   :  { %v5958_v2 = vpop.eup %5957 }
0x1b51   :  { %v5388_v28 = vmul.f32 %v5958_v2, %v5380_v37 }
0x1b53   :  { %v5395_v53 = vmul.f32 %v5598_v10, %v5388_v28 }
0x1b55   :  { %v5402_v18 = vadd.f32 %v5599_v27, %v5395_v53 }
0x1b57   :  { %v5403_v7 = vpack.c.bf16 %v5402_v18, %v5402_v18 }
0x1b59   :  { %5839 = vmatmul.mubr.msk.bf16.vlgmr.msra.gmra.mxu1 %vm547_vm1, %v5403_v7 }
0x1c19   :  { %v5457_v55 = vpop.f32.mrf.mxu1 }
0x1c1a   :  { %5463 = vst [vmem:[#allocation2] sm:$0x3] %v5457_v55 }
0x1c1b   :  { %v5840_v12 = vpop.f32.mrf.mxu1 }
0x1c1c   :  { %5970 = shalt.err (!%p5967_p4)
}
0x1c1d   :  { %5473 = dma.vmem_to_hbm [thread:$0]  %s5471_s27, 32, %s7372_s20, [#allocation3]   ;;  %v5460_v58 = vpop.f32.mrf.mxu1 }
0x1c1f   :  { %v5841_v1 = vpop.f32.mrf.mxu1 }
0x1c20   :  { %5979 = dma.done.wait [#allocation3], 32  }
0x1c21   :  { %5980 = vsyncadd [#allocation3], 4294967264 }
0x1c22   :  { %5477 = vsyncpa [#allocation3], 1 }

</bundles_post_ra>
